<compile_context>
chip_gen: v5e
topology: v5e:2x2
jax: 0.10.0
libtpu: 0.0.40
codegen_flags: <defaults>
</compile_context>

<pallas_src>
import functools

import numpy as np
import jax
import jax.numpy as jnp
from jax.experimental import pallas as pl
from jax.experimental.pallas import tpu as pltpu


# ----------------------------------------------------------------------------
# In-kernel helpers
# ----------------------------------------------------------------------------
def _exact_divmod(v, d):
    """Exact (quotient, remainder) of a non-negative int32 vector by a Python
    int constant using f32 mul/floor plus one integer correction step (avoids
    relying on vector integer division).  Exact for v < 2**24 with small
    quotients, which covers any realistic detection-head level."""
    q = jnp.floor(v.astype(jnp.float32) * (1.0 / d)).astype(jnp.int32)
    r = v - q * d
    q = q + (r >= d).astype(jnp.int32) - (r < 0).astype(jnp.int32)
    r = v - q * d
    return q, r


# ----------------------------------------------------------------------------
# Pallas kernel: one tile of TM pixels, all C = na*no fused channels.
# ----------------------------------------------------------------------------
def _ikeypoint_kernel(x_ref, w_ref, b_ref, tbl_ref, y_ref, draw_ref,
                      *, tm, nx, nynx, stride, ndet):
    x = x_ref[...]                                              # (TM, Cin)

    # Single fused, det-first-permuted, half-scaled 1x1 conv:
    #   raw_half = 0.5 * raw logits (ImplicitA/ImplicitM folded in; kpt-x/y
    #   channels carry an extra -0.25 bias shift implementing the -0.5*stride
    #   decode offset for free).
    raw_half = jnp.dot(x, w_ref[...],
                       preferred_element_type=jnp.float32) + b_ref[...]  # (TM, C)

    # sigmoid(raw) = 0.5*tanh(raw/2) + 0.5, and raw/2 == raw_half, so the
    # whole sigmoid is one EUP tanh (no VALU work, no exp-overflow NaN).
    th = jnp.tanh(raw_half)                                     # (TM, C)

    # Per-row grid coordinates from the flat row index (no HBM grid input):
    # row = b*ny*nx + gy*nx + gx.
    row0 = pl.program_id(0) * tm
    ridx = row0 + jax.lax.broadcasted_iota(jnp.int32, (tm, 1), 0)   # (TM, 1)
    _, pix = _exact_divmod(ridx, nynx)
    gy, gx = _exact_divmod(pix, nx)
    gx_s = (gx.astype(jnp.float32) + 0.5) * stride              # (TM, 1)
    gy_s = (gy.astype(jnp.float32) + 0.5) * stride              # (TM, 1)

    tbl = tbl_ref[...]                                          # (6, C)
    use_raw = tbl[0:1, :] > 0.5
    c1 = tbl[1:2, :]
    c2 = tbl[2:3, :]
    off = tbl[3:4, :]
    is_x = tbl[4:5, :] > 0.5
    is_y = tbl[5:6, :] > 0.5

    # Per-channel decode (~7 VPU ops/element):
    #   box x/y : s*th              + s*(g? + 0.5)
    #   box w/h : aw*(th+1)^2       = (2aw + aw*th)*th + aw
    #   obj/cls : 0.5*th + 0.5
    #   kpt x/y : 4s*raw_half       + s*(g? + 0.5)   (bias already shifted)
    #   kpt conf: 0.5*th + 0.5
    q = jnp.where(use_raw, raw_half, th)
    add = jnp.where(is_x, gx_s, jnp.where(is_y, gy_s, off))
    y_ref[...] = (c1 + c2 * q) * q + add

    # Raw det-view logits (torch's x[i][..., :6]); det channels are the first
    # na*6 fused channels, so this is a contiguous lane-0 slice.
    draw_ref[...] = raw_half[:, :ndet] * 2.0


# ----------------------------------------------------------------------------
# Host-side helpers / wrapper
# ----------------------------------------------------------------------------
def _det_first_perm(na, no):
    """Fused (det-first) channel k -> flat channel a*no + j of the torch cat/view."""
    det = [a * no + j for a in range(na) for j in range(6)]
    kpt = [a * no + j for a in range(na) for j in range(6, no)]
    return np.asarray(det + kpt, dtype=np.int32)


def _build_tables(na, no, anchor_grid, stride):
    """Decode coefficients (rows: use_raw, c1, c2, off, is_x, is_y) and the
    kpt-x/y bias shift, both in fused (det-first) channel order."""
    C = na * no
    tbl = np.zeros((6, C), np.float32)
    shift = np.zeros((1, C), np.float32)
    ag = np.asarray(anchor_grid, np.float32)
    s = float(stride)
    k = 0
    for a in range(na):                       # det channels first
        for j in range(6):
            if j == 0:                        # box x: s*th + s*(gx+0.5)
                tbl[1, k] = s
                tbl[4, k] = 1.0
            elif j == 1:                      # box y
                tbl[1, k] = s
                tbl[5, k] = 1.0
            elif j in (2, 3):                 # box w/h: aw*(th+1)^2
                aw = ag[a, j - 2]
                tbl[1, k] = 2.0 * aw
                tbl[2, k] = aw
                tbl[3, k] = aw
            else:                             # obj / cls: 0.5*th + 0.5
                tbl[1, k] = 0.5
                tbl[3, k] = 0.5
            k += 1
    for a in range(na):                       # then keypoint channels
        for j in range(6, no):
            r = (j - 6) % 3
            if r == 0:                        # kpt x: 4s*raw_half' + s*(gx+0.5)
                tbl[0, k] = 1.0
                tbl[1, k] = 4.0 * s
                tbl[4, k] = 1.0
                shift[0, k] = -0.25
            elif r == 1:                      # kpt y
                tbl[0, k] = 1.0
                tbl[1, k] = 4.0 * s
                tbl[5, k] = 1.0
                shift[0, k] = -0.25
            else:                             # kpt conf: 0.5*th + 0.5
                tbl[1, k] = 0.5
                tbl[3, k] = 0.5
            k += 1
    return jnp.asarray(tbl), jnp.asarray(shift)


def _fuse_params(p, na, no):
    """ImplicitA/ImplicitM folded 1x1 conv, halved (tanh-sigmoid trick) and
    channel-permuted det-first."""
    wdet_f = p["wdet"] * p["im"]                             # (cin, cdet)
    bdet_f = (p["bdet"] + p["ia"] @ p["wdet"]) * p["im"]     # (1, cdet)
    w_cat = jnp.concatenate([wdet_f, p["wkpt"]], axis=1)     # (cin, C)
    b_cat = jnp.concatenate([bdet_f, p["bkpt"]], axis=1)     # (1, C)
    perm = _det_first_perm(na, no)
    return 0.5 * w_cat[:, perm], 0.5 * b_cat[:, perm]


def _round_up(x, m):
    return ((x + m - 1) // m) * m


def _pick_tm(n_rows, cap=1024):
    """Single big tile when the level fits (best on 1-TC v5e/v6e); otherwise
    an even number of near-cap tiles so the 'parallel' axis splits evenly
    across v7x's two TensorCores.  No divisibility requirement: the wrapper
    pads N up to grid*tm."""
    if n_rows <= cap:
        return _round_up(n_rows, 8)
    steps = -(-n_rows // cap)
    if steps % 2:
        steps += 1
    return _round_up(-(-n_rows // steps), 8)


def ikeypoint_level(xi, p, stride, na, no_det, nkpt, cap=1024):
    """One detection level. xi is NCHW (like PyTorch)."""
    assert no_det == 6, "module hard-codes the 6-wide det slice (nc == 1)"
    no = no_det + 3 * nkpt
    bs, cin, ny, nx = xi.shape
    C = na * no
    ndet = na * 6
    N = bs * ny * nx
    tm = _pick_tm(N, cap)
    grid = -(-N // tm)
    n_pad = grid * tm

    # NCHW -> (pixels, channels), padded to a whole number of tiles.
    x_flat = jnp.transpose(xi, (0, 2, 3, 1)).reshape(N, cin)
    if n_pad != N:
        x_flat = jnp.pad(x_flat, ((0, n_pad - N), (0, 0)))

    w_half, b_half = _fuse_params(p, na, no)
    tbl, bias_shift = _build_tables(na, no, p["anchor_grid"], stride)
    b_half = b_half + bias_shift

    kernel = functools.partial(_ikeypoint_kernel, tm=tm, nx=nx, nynx=ny * nx,
                               stride=float(stride), ndet=ndet)
    const = lambda i: (0, 0)

    y_dec, det_raw = pl.pallas_call(
        kernel,
        out_shape=(jax.ShapeDtypeStruct((n_pad, C), jnp.float32),
                   jax.ShapeDtypeStruct((n_pad, ndet), jnp.float32)),
        grid_spec=pltpu.PrefetchScalarGridSpec(
            num_scalar_prefetch=0,
            grid=(grid,),
            in_specs=[
                pl.BlockSpec((tm, cin), lambda i: (i, 0)),   # pixel features
                pl.BlockSpec((cin, C), const),               # fused conv weight (x0.5, det-first)
                pl.BlockSpec((1, C), const),                 # fused conv bias (+kpt shift)
                pl.BlockSpec((6, C), const),                 # decode coefficients
            ],
            out_specs=[
                pl.BlockSpec((tm, C), lambda i: (i, 0)),     # decoded predictions
                pl.BlockSpec((tm, ndet), lambda i: (i, 0)),  # raw det logits
            ],
        ),
        compiler_params=pltpu.CompilerParams(
            dimension_semantics=("parallel",),
            vmem_limit_bytes=32 * 1024 * 1024),
    )(x_flat, w_half, b_half, tbl)

    if n_pad != N:
        y_dec = y_dec[:N]
        det_raw = det_raw[:N]

    # Reassemble torch's anchor-major layouts.
    # TODO(synk): if downstream consumers (NMS) don't need torch's exact row
    # order, skip these transposes/concats -- they are extra HBM passes.
    nk = no - 6
    ydet = y_dec[:, :ndet].reshape(bs, ny, nx, na, 6).transpose(0, 3, 1, 2, 4)
    ykpt = y_dec[:, ndet:].reshape(bs, ny, nx, na, nk).transpose(0, 3, 1, 2, 4)
    d5 = det_raw.reshape(bs, ny, nx, na, 6).transpose(0, 3, 1, 2, 4)
    z = jnp.concatenate([ydet, ykpt], axis=-1).reshape(bs, -1, no)
    x5 = jnp.concatenate([d5, ykpt], axis=-1)
    return z, x5


def ikeypoint_forward(xs, params, strides, na, no_det, nkpt):
    """Inference path (training=False): returns (cat(z, 1), x_list)."""
    # TODO(synk): when cin is shared across levels, all levels could be fused
    # into one pallas_call with a scalar-prefetched per-tile level id selecting
    # w/b/tbl blocks; kept per-level here for clarity (real heads differ in cin).
    z, x_out = [], []
    for xi, p, s in zip(xs, params, strides):
        zi, x5 = ikeypoint_level(xi, p, s, na, no_det, nkpt)
        z.append(zi)
        x_out.append(x5)
    return jnp.concatenate(z, axis=1), x_out


# ----------------------------------------------------------------------------
# Pure-JAX reference mirroring the PyTorch forward (for validation)
# ----------------------------------------------------------------------------
def ikeypoint_reference(xs, params, strides, na, no_det, nkpt):
    no = no_det + 3 * nkpt
    z, x_out = [], []
    for xi, p, stride in zip(xs, params, strides):
        bs, cin, ny, nx = xi.shape
        xa = xi + p["ia"].reshape(1, cin, 1, 1)
        det = jnp.einsum("bchw,co->bohw", xa, p["wdet"]) + p["bdet"].reshape(1, -1, 1, 1)
        det = det * p["im"].reshape(1, -1, 1, 1)
        kpt = jnp.einsum("bchw,co->bohw", xi, p["wkpt"]) + p["bkpt"].reshape(1, -1, 1, 1)
        t = jnp.concatenate([det, kpt], axis=1)
        t = t.reshape(bs, na, no, ny, nx).transpose(0, 1, 3, 4, 2)
        yv, xv = jnp.meshgrid(jnp.arange(ny), jnp.arange(nx), indexing="ij")
        grid = jnp.stack([xv, yv], axis=2).reshape(1, 1, ny, nx, 2).astype(jnp.float32)
        x_det = t[..., :6]
        x_kpt = t[..., 6:]
        y = jax.nn.sigmoid(x_det)
        xy = (y[..., 0:2] * 2.0 - 0.5 + grid) * stride
        wh = jnp.square(y[..., 2:4] * 2.0) * p["anchor_grid"].reshape(1, na, 1, 1, 2)
        kx = (x_kpt[..., 0::3] * 2.0 - 0.5 + grid[..., 0:1]) * stride
        ky = (x_kpt[..., 1::3] * 2.0 - 0.5 + grid[..., 1:2]) * stride
        kc = jax.nn.sigmoid(x_kpt[..., 2::3])
        x_kpt_dec = jnp.zeros_like(x_kpt)
        x_kpt_dec = x_kpt_dec.at[..., 0::3].set(kx).at[..., 1::3].set(ky).at[..., 2::3].set(kc)
        y_full = jnp.concatenate([xy, wh, y[..., 4:], x_kpt_dec], axis=-1)
        z.append(y_full.reshape(bs, -1, no))
        x_out.append(jnp.concatenate([x_det, x_kpt_dec], axis=-1))
    return jnp.concatenate(z, axis=1), x_out


# ----------------------------------------------------------------------------
# Deterministic parameter init (synthetic; shapes from IKeypoint.__init__)
# ----------------------------------------------------------------------------
def init_params(key, cin, na, no_det, nkpt, nl):
    # TODO(synk): the real m_kpt is a multi-layer DWConv/Conv stack; it is
    # approximated here by a single 1x1 conv of matching output channels.
    params = []
    cdet = na * no_det
    ckpt = na * 3 * nkpt
    for _ in range(nl):
        key, *ks = jax.random.split(key, 8)
        params.append(dict(
            wdet=jax.random.normal(ks[0], (cin, cdet), jnp.float32) * 0.1,
            bdet=jax.random.normal(ks[1], (1, cdet), jnp.float32) * 0.1,
            wkpt=jax.random.normal(ks[2], (cin, ckpt), jnp.float32) * 0.1,
            bkpt=jax.random.normal(ks[3], (1, ckpt), jnp.float32) * 0.1,
            ia=jax.random.normal(ks[4], (1, cin), jnp.float32) * 0.02,          # ImplicitA
            im=1.0 + jax.random.normal(ks[5], (1, cdet), jnp.float32) * 0.02,   # ImplicitM
            anchor_grid=8.0 + 32.0 * jnp.abs(
                jax.random.normal(ks[6], (na, 2), jnp.float32)),
        ))
    return params


if __name__ == "__main__":
    key = jax.random.PRNGKey(0)

    bs, cin = 2, 32
    na, nc, nkpt, nl = 3, 1, 17, 3
    no_det = nc + 5                       # = 6 (hard-coded slice in the module)
    no = no_det + 3 * nkpt                # = 57
    spatials = [(16, 16), (8, 8), (9, 7)]   # last level exercises the ragged/pad path
    strides = [8.0, 16.0, 32.0]

    kx, kp = jax.random.split(key)
    params = init_params(kp, cin, na, no_det, nkpt, nl)

    xs = []
    for (ny, nx) in spatials:
        kx, kk = jax.random.split(kx)
        xs.append(jax.random.normal(kk, (bs, cin, ny, nx), jnp.float32))

    z, x_out = ikeypoint_forward(xs, params, strides, na, no_det, nkpt)
    jax.block_until_ready(z)
    for xo in x_out:
        jax.block_until_ready(xo)

    # Validate against the pure-JAX reference of the PyTorch forward.
    z_ref, x_ref = ikeypoint_reference(xs, params, strides, na, no_det, nkpt)
    assert z.shape == (bs, na * sum(h * w for h, w in spatials), no)
    assert jnp.allclose(z, z_ref, atol=1e-3, rtol=1e-3), float(jnp.max(jnp.abs(z - z_ref)))
    for a, b in zip(x_out, x_ref):
        assert a.shape == b.shape
        assert jnp.allclose(a, b, atol=1e-3, rtol=1e-3), float(jnp.max(jnp.abs(a - b)))

    print("KERNEL_OK")
</pallas_src>

<mosaic_0001>
module attributes {stable_mosaic.version = 11 : i64} {
  func.func @_ikeypoint_kernel(%arg0: i32, %arg1: memref<512x32xf32, #tpu.memory_space<vmem>>, %arg2: memref<32x171xf32, #tpu.memory_space<vmem>>, %arg3: memref<1x171xf32, #tpu.memory_space<vmem>>, %arg4: memref<6x171xf32, #tpu.memory_space<vmem>>, %arg5: memref<512x171xf32, #tpu.memory_space<vmem>>, %arg6: memref<512x18xf32, #tpu.memory_space<vmem>>) attributes {dimension_semantics = [#tpu.dimension_semantics<parallel>], iteration_bounds = array<i64: 1>, scalar_prefetch = 0 : i64, scratch_operands = 0 : i64, tpu.core_type = #tpu.core_type<tc>, window_params = [{transform_indices = @transform_0, window_bounds = array<i64: 512, 32>}, {pipeline_mode = #tpu.pipeline_mode<synchronous>, transform_indices = @transform_1, window_bounds = array<i64: 32, 171>}, {pipeline_mode = #tpu.pipeline_mode<synchronous>, transform_indices = @transform_2, window_bounds = array<i64: 1, 171>}, {pipeline_mode = #tpu.pipeline_mode<synchronous>, transform_indices = @transform_3, window_bounds = array<i64: 6, 171>}, {transform_indices = @transform_4, window_bounds = array<i64: 512, 171>}, {transform_indices = @transform_5, window_bounds = array<i64: 512, 18>}]} {
    %c0 = arith.constant 0 : index
    %c0_0 = arith.constant 0 : index
    %0 = vector.load %arg1[%c0, %c0_0] : memref<512x32xf32, #tpu.memory_space<vmem>>, vector<512x32xf32>
    %c0_1 = arith.constant 0 : index
    %c0_2 = arith.constant 0 : index
    %1 = vector.load %arg2[%c0_1, %c0_2] : memref<32x171xf32, #tpu.memory_space<vmem>>, vector<32x171xf32>
    %cst = arith.constant dense<0.000000e+00> : vector<512x171xf32>
    %2 = tpu.matmul %0, %1, %cst {dimension_numbers = #tpu.dot_dimension_numbers<[1], [0], [0], [1], [0, 0, 1, 1], [], []>} : vector<512x32xf32>, vector<32x171xf32>, vector<512x171xf32> -> vector<512x171xf32>
    %c0_3 = arith.constant 0 : index
    %c0_4 = arith.constant 0 : index
    %3 = vector.load %arg3[%c0_3, %c0_4] : memref<1x171xf32, #tpu.memory_space<vmem>>, vector<1x171xf32>
    %4 = vector.broadcast %3 : vector<1x171xf32> to vector<512x171xf32>
    %5 = arith.addf %2, %4 : vector<512x171xf32>
    %6 = math.tanh %5 : vector<512x171xf32>
    %c512_i32 = arith.constant 512 : i32
    %7 = arith.muli %arg0, %c512_i32 : i32
    %8 = tpu.iota {dimensions = array<i32: 0>} : vector<512x1xi32>
    %9 = vector.broadcast %7 : i32 to vector<512x1xi32>
    %10 = arith.addi %9, %8 : vector<512x1xi32>
    %11 = arith.sitofp %10 : vector<512x1xi32> to vector<512x1xf32>
    %cst_5 = arith.constant 3.906250e-03 : f32
    %12 = vector.broadcast %cst_5 : f32 to vector<512x1xf32>
    %13 = arith.mulf %11, %12 : vector<512x1xf32>
    %14 = math.floor %13 : vector<512x1xf32>
    %15 = arith.fptosi %14 : vector<512x1xf32> to vector<512x1xi32>
    %c256_i32 = arith.constant 256 : i32
    %16 = vector.broadcast %c256_i32 : i32 to vector<512x1xi32>
    %17 = arith.muli %15, %16 : vector<512x1xi32>
    %18 = arith.subi %10, %17 : vector<512x1xi32>
    %c256_i32_6 = arith.constant 256 : i32
    %19 = vector.broadcast %c256_i32_6 : i32 to vector<512x1xi32>
    %20 = arith.cmpi sge, %18, %19 : vector<512x1xi32>
    %21 = arith.extui %20 : vector<512x1xi1> to vector<512x1xi32>
    %22 = arith.addi %15, %21 : vector<512x1xi32>
    %c0_i32 = arith.constant 0 : i32
    %23 = vector.broadcast %c0_i32 : i32 to vector<512x1xi32>
    %24 = arith.cmpi slt, %18, %23 : vector<512x1xi32>
    %25 = arith.extui %24 : vector<512x1xi1> to vector<512x1xi32>
    %26 = arith.subi %22, %25 : vector<512x1xi32>
    %c256_i32_7 = arith.constant 256 : i32
    %27 = vector.broadcast %c256_i32_7 : i32 to vector<512x1xi32>
    %28 = arith.muli %26, %27 : vector<512x1xi32>
    %29 = arith.subi %10, %28 : vector<512x1xi32>
    %30 = arith.sitofp %29 : vector<512x1xi32> to vector<512x1xf32>
    %cst_8 = arith.constant 6.250000e-02 : f32
    %31 = vector.broadcast %cst_8 : f32 to vector<512x1xf32>
    %32 = arith.mulf %30, %31 : vector<512x1xf32>
    %33 = math.floor %32 : vector<512x1xf32>
    %34 = arith.fptosi %33 : vector<512x1xf32> to vector<512x1xi32>
    %c16_i32 = arith.constant 16 : i32
    %35 = vector.broadcast %c16_i32 : i32 to vector<512x1xi32>
    %36 = arith.muli %34, %35 : vector<512x1xi32>
    %37 = arith.subi %29, %36 : vector<512x1xi32>
    %c16_i32_9 = arith.constant 16 : i32
    %38 = vector.broadcast %c16_i32_9 : i32 to vector<512x1xi32>
    %39 = arith.cmpi sge, %37, %38 : vector<512x1xi32>
    %40 = arith.extui %39 : vector<512x1xi1> to vector<512x1xi32>
    %41 = arith.addi %34, %40 : vector<512x1xi32>
    %c0_i32_10 = arith.constant 0 : i32
    %42 = vector.broadcast %c0_i32_10 : i32 to vector<512x1xi32>
    %43 = arith.cmpi slt, %37, %42 : vector<512x1xi32>
    %44 = arith.extui %43 : vector<512x1xi1> to vector<512x1xi32>
    %45 = arith.subi %41, %44 : vector<512x1xi32>
    %c16_i32_11 = arith.constant 16 : i32
    %46 = vector.broadcast %c16_i32_11 : i32 to vector<512x1xi32>
    %47 = arith.muli %45, %46 : vector<512x1xi32>
    %48 = arith.subi %29, %47 : vector<512x1xi32>
    %49 = arith.sitofp %48 : vector<512x1xi32> to vector<512x1xf32>
    %cst_12 = arith.constant 5.000000e-01 : f32
    %50 = vector.broadcast %cst_12 : f32 to vector<512x1xf32>
    %51 = arith.addf %49, %50 : vector<512x1xf32>
    %cst_13 = arith.constant 8.000000e+00 : f32
    %52 = vector.broadcast %cst_13 : f32 to vector<512x1xf32>
    %53 = arith.mulf %51, %52 : vector<512x1xf32>
    %54 = arith.sitofp %45 : vector<512x1xi32> to vector<512x1xf32>
    %cst_14 = arith.constant 5.000000e-01 : f32
    %55 = vector.broadcast %cst_14 : f32 to vector<512x1xf32>
    %56 = arith.addf %54, %55 : vector<512x1xf32>
    %cst_15 = arith.constant 8.000000e+00 : f32
    %57 = vector.broadcast %cst_15 : f32 to vector<512x1xf32>
    %58 = arith.mulf %56, %57 : vector<512x1xf32>
    %c0_16 = arith.constant 0 : index
    %c0_17 = arith.constant 0 : index
    %59 = vector.load %arg4[%c0_16, %c0_17] : memref<6x171xf32, #tpu.memory_space<vmem>>, vector<6x171xf32>
    %60 = vector.extract_strided_slice %59 {offsets = [0, 0], sizes = [1, 171], strides = [1, 1]} : vector<6x171xf32> to vector<1x171xf32>
    %cst_18 = arith.constant 5.000000e-01 : f32
    %61 = vector.broadcast %cst_18 : f32 to vector<1x171xf32>
    %62 = arith.cmpf ogt, %60, %61 : vector<1x171xf32>
    %63 = vector.extract_strided_slice %59 {offsets = [1, 0], sizes = [1, 171], strides = [1, 1]} : vector<6x171xf32> to vector<1x171xf32>
    %64 = vector.extract_strided_slice %59 {offsets = [2, 0], sizes = [1, 171], strides = [1, 1]} : vector<6x171xf32> to vector<1x171xf32>
    %65 = vector.extract_strided_slice %59 {offsets = [3, 0], sizes = [1, 171], strides = [1, 1]} : vector<6x171xf32> to vector<1x171xf32>
    %66 = vector.extract_strided_slice %59 {offsets = [4, 0], sizes = [1, 171], strides = [1, 1]} : vector<6x171xf32> to vector<1x171xf32>
    %cst_19 = arith.constant 5.000000e-01 : f32
    %67 = vector.broadcast %cst_19 : f32 to vector<1x171xf32>
    %68 = arith.cmpf ogt, %66, %67 : vector<1x171xf32>
    %69 = vector.extract_strided_slice %59 {offsets = [5, 0], sizes = [1, 171], strides = [1, 1]} : vector<6x171xf32> to vector<1x171xf32>
    %cst_20 = arith.constant 5.000000e-01 : f32
    %70 = vector.broadcast %cst_20 : f32 to vector<1x171xf32>
    %71 = arith.cmpf ogt, %69, %70 : vector<1x171xf32>
    %72 = vector.shape_cast %62 : vector<1x171xi1> to vector<1x171xi1>
    %73 = vector.broadcast %72 : vector<1x171xi1> to vector<512x171xi1>
    %74 = arith.select %73, %5, %6 : vector<512x171xi1>, vector<512x171xf32>
    %75 = vector.shape_cast %71 : vector<1x171xi1> to vector<1x171xi1>
    %76 = vector.broadcast %75 : vector<1x171xi1> to vector<512x171xi1>
    %77 = vector.shape_cast %58 : vector<512x1xf32> to vector<512x1xf32>
    %78 = vector.broadcast %77 : vector<512x1xf32> to vector<512x171xf32>
    %79 = vector.shape_cast %65 : vector<1x171xf32> to vector<1x171xf32>
    %80 = vector.broadcast %79 : vector<1x171xf32> to vector<512x171xf32>
    %81 = arith.select %76, %78, %80 : vector<512x171xi1>, vector<512x171xf32>
    %82 = vector.shape_cast %68 : vector<1x171xi1> to vector<1x171xi1>
    %83 = vector.broadcast %82 : vector<1x171xi1> to vector<512x171xi1>
    %84 = vector.shape_cast %53 : vector<512x1xf32> to vector<512x1xf32>
    %85 = vector.broadcast %84 : vector<512x1xf32> to vector<512x171xf32>
    %86 = arith.select %83, %85, %81 : vector<512x171xi1>, vector<512x171xf32>
    %87 = vector.broadcast %64 : vector<1x171xf32> to vector<512x171xf32>
    %88 = arith.mulf %87, %74 : vector<512x171xf32>
    %89 = vector.broadcast %63 : vector<1x171xf32> to vector<512x171xf32>
    %90 = arith.addf %89, %88 : vector<512x171xf32>
    %91 = arith.mulf %90, %74 : vector<512x171xf32>
    %92 = arith.addf %91, %86 : vector<512x171xf32>
    %c0_21 = arith.constant 0 : index
    %c0_22 = arith.constant 0 : index
    %93 = vector.load %arg5[%c0_21, %c0_22] : memref<512x171xf32, #tpu.memory_space<vmem>>, vector<512x171xf32>
    tpu.vector_store %arg5[%c0_21, %c0_22], %92 {strides = array<i32>} : memref<512x171xf32, #tpu.memory_space<vmem>>, vector<512x171xf32>,
    %94 = vector.extract_strided_slice %5 {offsets = [0, 0], sizes = [512, 18], strides = [1, 1]} : vector<512x171xf32> to vector<512x18xf32>
    %cst_23 = arith.constant 2.000000e+00 : f32
    %95 = vector.broadcast %cst_23 : f32 to vector<512x18xf32>
    %96 = arith.mulf %94, %95 : vector<512x18xf32>
    %c0_24 = arith.constant 0 : index
    %c0_25 = arith.constant 0 : index
    %97 = vector.load %arg6[%c0_24, %c0_25] : memref<512x18xf32, #tpu.memory_space<vmem>>, vector<512x18xf32>
    tpu.vector_store %arg6[%c0_24, %c0_25], %96 {strides = array<i32>} : memref<512x18xf32, #tpu.memory_space<vmem>>, vector<512x18xf32>,
    return
  }
  func.func @transform_0(%arg0: i32) -> (i32, i32) {
    %c0_i32 = arith.constant 0 : i32
    %c0_i32_0 = arith.constant 0 : i32
    return %arg0, %c0_i32 : i32, i32
  }
  func.func @transform_1(%arg0: i32) -> (i32, i32) {
    %c0_i32 = arith.constant 0 : i32
    %c0_i32_0 = arith.constant 0 : i32
    %c0_i32_1 = arith.constant 0 : i32
    return %c0_i32, %c0_i32_0 : i32, i32
  }
  func.func @transform_2(%arg0: i32) -> (i32, i32) {
    %c0_i32 = arith.constant 0 : i32
    %c0_i32_0 = arith.constant 0 : i32
    %c0_i32_1 = arith.constant 0 : i32
    return %c0_i32, %c0_i32_0 : i32, i32
  }
  func.func @transform_3(%arg0: i32) -> (i32, i32) {
    %c0_i32 = arith.constant 0 : i32
    %c0_i32_0 = arith.constant 0 : i32
    %c0_i32_1 = arith.constant 0 : i32
    return %c0_i32, %c0_i32_0 : i32, i32
  }
  func.func @transform_4(%arg0: i32) -> (i32, i32) {
    %c0_i32 = arith.constant 0 : i32
    %c0_i32_0 = arith.constant 0 : i32
    return %arg0, %c0_i32 : i32, i32
  }
  func.func @transform_5(%arg0: i32) -> (i32, i32) {
    %c0_i32 = arith.constant 0 : i32
    %c0_i32_0 = arith.constant 0 : i32
    return %arg0, %c0_i32 : i32, i32
  }
}

</mosaic_0001>

<bundles_post_ra>
// kernel: tpu_custom_call.1
= control target key start
LH: loop header
LB: loop body
LE: loop exit
PB: predicated region body
PF: predicated region fallthrough
CT: control target
= control target key end

     0   :  { %vm97_vm0 = vcmask 261120   ;;  %v837_v24 = vlaneseq  ;;  %v4978_v45 = vmov 0   ;;  %s9266_s1 = inlined_call_operand.vmem [shape: f32[32,171], index: 1, kind: input, shape index: {}]   ;;  %s9267_s0 = inlined_call_operand.vmem [shape: f32[512,32], index: 0, kind: input, shape index: {}]   ;;  %s9268_s3 = inlined_call_operand.vmem [shape: f32[6,171], index: 3, kind: input, shape index: {}]   ;;  %s9269_s2 = inlined_call_operand.vmem [shape: f32[1,171], index: 2, kind: input, shape index: {}]   ;;  %s9270_s5 = inlined_call_operand.vmem [shape: f32[512,18], index: 5, kind: output, shape index: {1}]   ;;  %s9271_s4 = inlined_call_operand.vmem [shape: f32[512,171], index: 4, kind: output, shape index: {0}]  }
   0x1   :  { %v89_v0 = vld [vmem:[%s9266_s1 + $0x30] sm:$0xff]  ;;  %v90_v1 = vld [vmem:[%s9266_s1 + $0x38] sm:$0xff]  ;;  %v87_v2 = vld [vmem:[%s9266_s1 + $0x20] sm:$0xff] }
   0x2   :  { %302 = vmatpush.msra.mxu0 %v89_v0  ;;  %4457 = vmatpush.msra.mxu2 %v89_v0  ;;  %v88_v3 = vld [vmem:[%s9266_s1 + $0x28] sm:$0xff]  ;;  %v85_v4 = vld [vmem:[%s9266_s1 + $0x10] sm:$0xff]  ;;  %v86_v5 = vld [vmem:[%s9266_s1 + $0x18] sm:$0xff]  ;;  %v5113_v25 = vshrl.u32 %v837_v24, 7 }
   0x3   :  { %511 = vmatpush.msra.mxu1 %v90_v1  ;;  %4461 = vmatpush.msra.mxu3 %v90_v1  ;;  %v83_v6 = vld [vmem:[%s9266_s1] sm:$0xff]  ;;  %v84_v7 = vld [vmem:[%s9266_s1 + $0x8] sm:$0xff]  ;;  %v21_v12 = vld [vmem:[%s9267_s0 + $0x10] sm:$0xff] }
   0x4   :  { %303 = vmatpush.msra.mxu0 %v87_v2  ;;  %4458 = vmatpush.msra.mxu2 %v87_v2  ;;  %v19_v8 = vld [vmem:[%s9267_s0] sm:$0xff]  ;;  %v20_v10 = vld [vmem:[%s9267_s0 + $0x8] sm:$0xff]  ;;  %v53_v13 = vld [vmem:[%s9267_s0 + $0x110] sm:$0xff]  ;;  %v967_v26 = vcvt.s32.f32 %v5113_v25  ;;  %v5125_v31 = vadd.s32 256, %v5113_v25  ;;  %v5131_v34 = vadd.s32 8, %v5113_v25  ;;  %v5147_v47 = vadd.s32 264, %v5113_v25 }
   0x5   :  { %512 = vmatpush.msra.mxu1 %v88_v3  ;;  %4462 = vmatpush.msra.mxu3 %v88_v3  ;;  %v51_v9 = vld [vmem:[%s9267_s0 + $0x100] sm:$0xff]  ;;  %v52_v11 = vld [vmem:[%s9267_s0 + $0x108] sm:$0xff]  ;;  %v22_v14 = vld [vmem:[%s9267_s0 + $0x18] sm:$0xff]  ;;  %v5153_v56 = vadd.s32 16, %v5113_v25 }
   0x6   :  { %304 = vmatpush.msra.mxu0 %v85_v4  ;;  %4459 = vmatpush.msra.mxu2 %v85_v4  ;;  %v54_v15 = vld [vmem:[%s9267_s0 + $0x118] sm:$0xff]  ;;  %v23_v16 = vld [vmem:[%s9267_s0 + $0x20] sm:$0xff]  ;;  %v24_v18 = vld [vmem:[%s9267_s0 + $0x28] sm:$0xff]  ;;  %v1031_v29 = vmul.f32 0.00390625, %v967_v26  ;;  %v999_v33 = vcvt.s32.f32 %v5125_v31  ;;  %v968_v37 = vcvt.s32.f32 %v5131_v34  ;;  %v1000_v52 = vcvt.s32.f32 %v5147_v47 }
   0x7   :  { %513 = vmatpush.msra.mxu1 %v86_v5  ;;  %4463 = vmatpush.msra.mxu3 %v86_v5  ;;  %v55_v17 = vld [vmem:[%s9267_s0 + $0x120] sm:$0xff]  ;;  %v56_v19 = vld [vmem:[%s9267_s0 + $0x128] sm:$0xff]  ;;  %v25_v20 = vld [vmem:[%s9267_s0 + $0x30] sm:$0xff]  ;;  %v969_v62 = vcvt.s32.f32 %v5153_v56 }
   0x8   :  { %305 = vmatpush.msra.mxu0 %v83_v6  ;;  %4460 = vmatpush.msra.mxu2 %v83_v6  ;;  %v57_v21 = vld [vmem:[%s9267_s0 + $0x130] sm:$0xff]  ;;  %v26_v22 = vld [vmem:[%s9267_s0 + $0x38] sm:$0xff]  ;;  %v27_v27 = vld [vmem:[%s9267_s0 + $0x40] sm:$0xff]  ;;  %v1095_v30 = vfloor.f32 %v1031_v29  ;;  %v1063_v36 = vmul.f32 0.00390625, %v999_v33  ;;  %v1032_v42 = vmul.f32 0.00390625, %v968_v37  ;;  %v1064_v59 = vmul.f32 0.00390625, %v1000_v52 }
   0x9   :  { %514 = vmatpush.msra.mxu1 %v84_v7  ;;  %4464 = vmatpush.msra.mxu3 %v84_v7  ;;  %v58_v23 = vld [vmem:[%s9267_s0 + $0x138] sm:$0xff]  ;;  %v59_v28 = vld [vmem:[%s9267_s0 + $0x140] sm:$0xff]  ;;  %v28_v38 = vld [vmem:[%s9267_s0 + $0x48] sm:$0xff]  ;;  %v1033_v6 = vmul.f32 0.00390625, %v969_v62 }
   0xa   :  { %4329 = vmatmul.msk.f32.vlgmr.msra.gmra.mxu0 %vm97_vm0, %v19_v8  ;;  %4361 = vmatmul.msk.f32.vlgmr.msra.gmra.mxu2 %vm97_vm0, %v51_v9  ;;  %v4466_v32 = vcvt.f32.s32 %v1095_v30  ;;  %v60_v39 = vld [vmem:[%s9267_s0 + $0x148] sm:$0xff]  ;;  %v1127_v41 = vfloor.f32 %v1063_v36  ;;  %v1096_v44 = vfloor.f32 %v1032_v42  ;;  %v29_v57 = vld [vmem:[%s9267_s0 + $0x50] sm:$0xff]  ;;  %v1128_v0 = vfloor.f32 %v1064_v59  ;;  %v31_v42 = vld [vmem:[%s9267_s0 + $0x60] sm:$0xff] }
   0xb   :  { %4393 = vmatmul.msk.f32.vlgmr.msra.gmra.mxu1 %vm97_vm0, %v19_v8  ;;  %4425 = vmatmul.msk.f32.vlgmr.msra.gmra.mxu3 %vm97_vm0, %v51_v9  ;;  %v61_v58 = vld [vmem:[%s9267_s0 + $0x150] sm:$0xff]  ;;  %v91_v59 = vld [vmem:[%s9269_s2] sm:$0x3] }
   0xc   :  { %v1223_v35 = vmul.u32 256, %v4466_v32  ;;  %v4530_v43 = vcvt.f32.s32 %v1127_v41  ;;  %v4468_v50 = vcvt.f32.s32 %v1096_v44  ;;  %v4532_v5 = vcvt.f32.s32 %v1128_v0 }
   0xe   :  { %v1287_v40 = vsub.s32 %v5113_v25, %v1223_v35  ;;  %v1255_v49 = vmul.u32 256, %v4530_v43  ;;  %v1224_v55 = vmul.u32 256, %v4468_v50 }
  0x10   :  { %vm1351_vm1 = vcmp.ge.s32.totalorder %v1287_v40, 256  ;;  %vm1543_vm2 = vcmp.lt.s32.totalorder %v1287_v40, 0  ;;  %v1319_v54 = vsub.s32 %v5125_v31, %v1255_v49  ;;  %v1288_v61 = vsub.s32 %v5131_v34, %v1224_v55 }
  0x11   :  { %v1415_v46 = vsel %vm1351_vm1, 1, %v4978_v45  ;;  %v1607_v51 = vsel %vm1543_vm2, 1, %v4978_v45 }
  0x12   :  { %4330 = vmatmul.msk.f32.gmra.mxu0 %vm97_vm0, %v20_v10  ;;  %4362 = vmatmul.msk.f32.gmra.mxu2 %vm97_vm0, %v52_v11  ;;  %v1479_v48 = vadd.s32 %v4466_v32, %v1415_v46  ;;  %vm1383_vm3 = vcmp.ge.s32.totalorder %v1319_v54, 256  ;;  %vm1575_vm4 = vcmp.lt.s32.totalorder %v1319_v54, 0  ;;  %vm1352_vm5 = vcmp.ge.s32.totalorder %v1288_v61, 256 }
  0x13   :  { %4394 = vmatmul.msk.f32.gmra.mxu1 %vm97_vm0, %v20_v10  ;;  %4426 = vmatmul.msk.f32.gmra.mxu3 %vm97_vm0, %v52_v11  ;;  %v1447_v63 = vsel %vm1383_vm3, 1, %v4978_v45  ;;  %v1639_v3 = vsel %vm1575_vm4, 1, %v4978_v45  ;;  %v1416_v4 = vsel %vm1352_vm5, 1, %v4978_v45  ;;  %vm1544_vm6 = vcmp.lt.s32.totalorder %v1288_v61, 0  ;;  %v3144_v61 = vld [vmem:[%s9268_s3 + $0x8] sm:$0x3f] }
  0x14   :  { %v1671_v53 = vsub.s32 %v1479_v48, %v1607_v51  ;;  %v1511_v2 = vadd.s32 %v4530_v43, %v1447_v63  ;;  %v1480_v9 = vadd.s32 %v4468_v50, %v1416_v4  ;;  %v1608_v10 = vsel %vm1544_vm6, 1, %v4978_v45  ;;  %v63_v43 = vld [vmem:[%s9267_s0 + $0x160] sm:$0xff] }
  0x15   :  { %v1256_v11 = vmul.u32 256, %v4532_v5  ;;  %vm3146_vm14 = vcmp.gt.f32.partialorder %v3144_v61, 0.5 }
  0x16   :  { %v1735_v60 = vmul.u32 256, %v1671_v53  ;;  %v1703_v8 = vsub.s32 %v1511_v2, %v1639_v3  ;;  %v3143_v53 = vld [vmem:[%s9268_s3] sm:$0x3f] }
  0x17   :  { %vm3145_vm13 = vcmp.gt.f32.partialorder %v3143_v53, 0.5 }
  0x18   :  { %v5167_v1 = vsub.s32 %v5113_v25, %v1735_v60 }
  0x1a   :  { %4331 = vmatmul.msk.f32.gmra.mxu0 %vm97_vm0, %v21_v12  ;;  %4363 = vmatmul.msk.f32.gmra.mxu2 %vm97_vm0, %v53_v13  ;;  %v1863_v7 = vcvt.s32.f32 %v5167_v1 }
  0x1b   :  { %4395 = vmatmul.msk.f32.gmra.mxu1 %vm97_vm0, %v21_v12  ;;  %4427 = vmatmul.msk.f32.gmra.mxu3 %vm97_vm0, %v53_v13  ;;  %v1097_v12 = vfloor.f32 %v1033_v6  ;;  %v5176_v13 = vadd.s32 272, %v5113_v25  ;;  %v32_v6 = vld [vmem:[%s9267_s0 + $0x68] sm:$0xff] }
  0x22   :  { %4332 = vmatmul.msk.f32.gmra.mxu0 %vm97_vm0, %v22_v14  ;;  %4364 = vmatmul.msk.f32.gmra.mxu2 %vm97_vm0, %v54_v15 }
  0x23   :  { %4396 = vmatmul.msk.f32.gmra.mxu1 %vm97_vm0, %v22_v14  ;;  %4428 = vmatmul.msk.f32.gmra.mxu3 %vm97_vm0, %v54_v15  ;;  %v1927_v14 = vmul.f32 0.0625, %v1863_v7  ;;  %v1767_v15 = vmul.u32 256, %v1703_v8  ;;  %v64_v7 = vld [vmem:[%s9267_s0 + $0x168] sm:$0xff]  ;;  %v5236_v8 = vperm.slane %v91_v59, 0 }
  0x2a   :  { %4333 = vmatmul.msk.f32.gmra.mxu0 %vm97_vm0, %v23_v16  ;;  %4365 = vmatmul.msk.f32.gmra.mxu2 %vm97_vm0, %v55_v17 }
  0x2b   :  { %4397 = vmatmul.msk.f32.gmra.mxu1 %vm97_vm0, %v23_v16  ;;  %4429 = vmatmul.msk.f32.gmra.mxu3 %vm97_vm0, %v55_v17  ;;  %v1672_v16 = vsub.s32 %v1480_v9, %v1608_v10  ;;  %v30_v17 = vld [vmem:[%s9267_s0 + $0x58] sm:$0xff] }
  0x2d   :  { %v1736_v24 = vmul.u32 256, %v1672_v16 }
  0x2f   :  { %v5193_v30 = vsub.s32 %v5131_v34, %v1736_v24 }
  0x31   :  { %v1864_v37 = vcvt.s32.f32 %v5193_v30 }
  0x32   :  { %4334 = vmatmul.msk.f32.gmra.mxu0 %vm97_vm0, %v24_v18  ;;  %4366 = vmatmul.msk.f32.gmra.mxu2 %vm97_vm0, %v56_v19 }
  0x33   :  { %4398 = vmatmul.msk.f32.gmra.mxu1 %vm97_vm0, %v24_v18  ;;  %4430 = vmatmul.msk.f32.gmra.mxu3 %vm97_vm0, %v56_v19  ;;  %v62_v18 = vld [vmem:[%s9267_s0 + $0x158] sm:$0xff]  ;;  %v1320_v19 = vsub.s32 %v5147_v47, %v1256_v11  ;;  %v1928_v41 = vmul.f32 0.0625, %v1864_v37  ;;  %v5243_v11 = vadd.s32 24, %v5113_v25 }
  0x35   :  { %vm1384_vm7 = vcmp.ge.s32.totalorder %v1320_v19, 256  ;;  %vm1576_vm8 = vcmp.lt.s32.totalorder %v1320_v19, 0  ;;  %v1992_v48 = vfloor.f32 %v1928_v41  ;;  %v5254_v19 = vsel %vm3146_vm14, 1, %v4978_v45  ;;  %v65_v41 = vld [vmem:[%s9267_s0 + $0x170] sm:$0xff] }
  0x36   :  { %v1448_v32 = vsel %vm1384_vm7, 1, %v4978_v45 }
  0x37   :  { %v4596_v55 = vcvt.f32.s32 %v1992_v48  ;;  %v5297_v48 = vperm.slane %v3144_v61, 3 }
  0x39   :  { %v2120_v0 = vmul.u32 16, %v4596_v55 }
  0x3a   :  { %4335 = vmatmul.msk.f32.gmra.mxu0 %vm97_vm0, %v25_v20  ;;  %4367 = vmatmul.msk.f32.gmra.mxu2 %vm97_vm0, %v57_v21 }
  0x3b   :  { %4399 = vmatmul.msk.f32.gmra.mxu1 %vm97_vm0, %v25_v20  ;;  %4431 = vmatmul.msk.f32.gmra.mxu3 %vm97_vm0, %v57_v21  ;;  %v4470_v20 = vcvt.f32.s32 %v1097_v12  ;;  %v1001_v21 = vcvt.s32.f32 %v5176_v13 }
  0x3d   :  { %v1225_v26 = vmul.u32 256, %v4470_v20 }
  0x3f   :  { %v1289_v33 = vsub.s32 %v5153_v56, %v1225_v26  ;;  %v5265_v26 = vperm.slane %v3143_v53, 3 }
  0x41   :  { %vm1353_vm9 = vcmp.ge.s32.totalorder %v1289_v33, 256  ;;  %vm1545_vm11 = vcmp.lt.s32.totalorder %v1289_v33, 0  ;;  %v5274_v33 = vperm.slane %v3143_v53, 2 }
  0x42   :  { %4336 = vmatmul.msk.f32.gmra.mxu0 %vm97_vm0, %v26_v22  ;;  %4368 = vmatmul.msk.f32.gmra.mxu2 %vm97_vm0, %v58_v23  ;;  %v1417_v50 = vsel %vm1353_vm9, 1, %v4978_v45  ;;  %v1609_v2 = vsel %vm1545_vm11, 1, %v4978_v45 }
  0x43   :  { %4400 = vmatmul.msk.f32.gmra.mxu1 %vm97_vm0, %v26_v22  ;;  %4432 = vmatmul.msk.f32.gmra.mxu3 %vm97_vm0, %v58_v23  ;;  %v1991_v22 = vfloor.f32 %v1927_v14  ;;  %v5187_v23 = vsub.s32 %v5125_v31, %v1767_v15  ;;  %v1512_v31 = vadd.s32 %v4532_v5, %v1448_v32  ;;  %v1481_v63 = vadd.s32 %v4470_v20, %v1417_v50 }
  0x44   :  { %v5248_v15 = vsel %vm3145_vm13, 1, %v4978_v45 }
  0x45   :  { %v1895_v29 = vcvt.s32.f32 %v5187_v23  ;;  %v1673_v16 = vsub.s32 %v1481_v63, %v1609_v2  ;;  %v3149_v24 = vperm.slane %v5248_v15, 0 }
  0x47   :  { %v1959_v36 = vmul.f32 0.0625, %v1895_v29  ;;  %v3150_v29 = vperm.slane %v5254_v19, 0  ;;  %vm5367_vm13 = vcmp.eq.s32.totalorder %v3149_v24, 1 }
  0x49   :  { %v2023_v40 = vfloor.f32 %v1959_v36  ;;  %vm5386_vm14 = vcmp.eq.s32.totalorder %v3150_v29, 1 }
  0x4a   :  { %4337 = vmatmul.msk.f32.gmra.mxu0 %vm97_vm0, %v27_v27  ;;  %4369 = vmatmul.msk.f32.gmra.mxu2 %vm97_vm0, %v59_v28 }
  0x4b   :  { %4401 = vmatmul.msk.f32.gmra.mxu1 %vm97_vm0, %v27_v27  ;;  %4433 = vmatmul.msk.f32.gmra.mxu3 %vm97_vm0, %v59_v28  ;;  %v1065_v27 = vmul.f32 0.00390625, %v1001_v21  ;;  %v4594_v28 = vcvt.f32.s32 %v1991_v22  ;;  %v4658_v46 = vcvt.f32.s32 %v2023_v40  ;;  %v33_v40 = vld [vmem:[%s9267_s0 + $0x70] sm:$0xff] }
  0x4d   :  { %v2119_v35 = vmul.u32 16, %v4594_v28  ;;  %v2151_v54 = vmul.u32 16, %v4658_v46 }
  0x4f   :  { %v2183_v34 = vsub.s32 %v5167_v1, %v2119_v35  ;;  %v2215_v62 = vsub.s32 %v5187_v23, %v2151_v54  ;;  %v5276_v35 = vperm.slane %v3143_v53, 1 }
  0x51   :  { %vm2247_vm10 = vcmp.ge.s32.totalorder %v2183_v34, 16  ;;  %vm2439_vm12 = vcmp.lt.s32.totalorder %v2183_v34, 0  ;;  %vm2279_vm15 = vcmp.ge.s32.totalorder %v2215_v62, 16  ;;  %vm2471_vm1 = vcmp.lt.s32.totalorder %v2215_v62, 0 }
  0x52   :  { %4338 = vmatmul.msk.f32.gmra.mxu0 %vm97_vm0, %v28_v38  ;;  %4370 = vmatmul.msk.f32.gmra.mxu2 %vm97_vm0, %v60_v39  ;;  %v2311_v49 = vsel %vm2247_vm10, 1, %v4978_v45  ;;  %v2343_v9 = vsel %vm2279_vm15, 1, %v4978_v45  ;;  %v2535_v36 = vsel %vm2471_vm1, 1, %v4978_v45  ;;  %vm4256_vm10 = vcmask 146432  }
  0x53   :  { %4402 = vmatmul.msk.f32.gmra.mxu1 %vm97_vm0, %v28_v38  ;;  %4434 = vmatmul.msk.f32.gmra.mxu3 %vm97_vm0, %v60_v39  ;;  %v1640_v38 = vsel %vm1576_vm8, 1, %v4978_v45  ;;  %v1129_v39 = vfloor.f32 %v1065_v27  ;;  %v2375_v52 = vadd.s32 %v4594_v28, %v2311_v49  ;;  %v2407_v20 = vadd.s32 %v4658_v46, %v2343_v9 }
  0x54   :  { %v1704_v44 = vsub.s32 %v1512_v31, %v1640_v38  ;;  %v3415_v27 = vperm.slane %v5248_v15, 4  ;;  %v1737_v31 = vmul.u32 256, %v1673_v16  ;;  %v5279_v38 = vperm.slane %v3144_v61, 2  ;;  %v34_v16 = vld [vmem:[%s9267_s0 + $0x78] sm:$0xff] }
  0x55   :  { %v5210_v51 = vcvt.f32.s32 %v1129_v39  ;;  %v2599_v39 = vsub.s32 %v2407_v20, %v2535_v36  ;;  %v5299_v49 = vperm.slane %v3144_v61, 1 }
  0x56   :  { %vm5292_vm4 = vcmp.eq.s32.totalorder %v3415_v27, 1 }
  0x57   :  { %v1257_v3 = vmul.u32 256, %v5210_v51  ;;  %v2663_v50 = vmul.u32 16, %v2599_v39 }
  0x59   :  { %v1321_v21 = vsub.s32 %v5176_v13, %v1257_v3 }
  0x5a   :  { %4339 = vmatmul.msk.f32.gmra.mxu0 %vm97_vm0, %v29_v57  ;;  %4371 = vmatmul.msk.f32.gmra.mxu2 %vm97_vm0, %v61_v58 }
  0x5b   :  { %4403 = vmatmul.msk.f32.gmra.mxu1 %vm97_vm0, %v29_v57  ;;  %4435 = vmatmul.msk.f32.gmra.mxu3 %vm97_vm0, %v61_v58  ;;  %v2503_v57 = vsel %vm2439_vm12, 1, %v4978_v45  ;;  %v1768_v58 = vmul.u32 256, %v1704_v44  ;;  %v3282_v44 = vperm.slane %v5254_v19, 5  ;;  %vm1385_vm6 = vcmp.ge.s32.totalorder %v1321_v21, 256 }
  0x5c   :  { %v2567_v60 = vsub.s32 %v2375_v52, %v2503_v57  ;;  %v2983_v52 = vcvt.s32.f32 %v2599_v39  ;;  %v5303_v57 = vsub.s32 %v5153_v56, %v1737_v31  ;;  %v1449_v56 = vsel %vm1385_vm6, 1, %v4978_v45 }
  0x5d   :  { %v5240_v10 = vsub.s32 %v5147_v47, %v1768_v58  ;;  %v2184_v47 = vsub.s32 %v5193_v30, %v2120_v0  ;;  %v2727_v58 = vsub.s32 %v5187_v23, %v2663_v50  ;;  %vm1577_vm7 = vcmp.lt.s32.totalorder %v1321_v21, 0 }
  0x5e   :  { %v2631_v4 = vmul.u32 16, %v2567_v60  ;;  %v2951_v5 = vcvt.s32.f32 %v2567_v60  ;;  %v1865_v62 = vcvt.s32.f32 %v5303_v57  ;;  %vm5313_vm8 = vcmp.eq.s32.totalorder %v3282_v44, 1 }
  0x5f   :  { %v1896_v32 = vcvt.s32.f32 %v5240_v10  ;;  %vm2248_vm3 = vcmp.ge.s32.totalorder %v2184_v47, 16  ;;  %vm2440_vm5 = vcmp.lt.s32.totalorder %v2184_v47, 0  ;;  %v2791_v0 = vcvt.s32.f32 %v2727_v58 }
  0x60   :  { %v2695_v12 = vsub.s32 %v5167_v1, %v2631_v4  ;;  %v3015_v14 = vadd.f32 0.5, %v2951_v5  ;;  %v2312_v34 = vsel %vm2248_vm3, 1, %v4978_v45  ;;  %v2504_v53 = vsel %vm2440_vm5, 1, %v4978_v45 }
  0x61   :  { %v2376_v46 = vadd.s32 %v4596_v55, %v2312_v34  ;;  %v1960_v54 = vmul.f32 0.0625, %v1896_v32  ;;  %v3416_v55 = vperm.slane %v5254_v19, 4  ;;  %v1929_v4 = vmul.f32 0.0625, %v1865_v62 }
  0x62   :  { %4340 = vmatmul.msk.f32.gmra.mxu0 %vm97_vm0, %v30_v17  ;;  %4372 = vmatmul.msk.f32.gmra.mxu2 %vm97_vm0, %v62_v18  ;;  %v2759_v1 = vcvt.s32.f32 %v2695_v12  ;;  %v5262_v22 = vmul.f32 8.0, %v3015_v14  ;;  %v1513_v5 = vadd.s32 %v5210_v51, %v1449_v56  ;;  %v2855_v9 = vadd.f32 0.5, %v2791_v0  ;;  %v35_v0 = vld [vmem:[%s9267_s0 + $0x80] sm:$0xff] }
  0x63   :  { %4404 = vmatmul.msk.f32.gmra.mxu1 %vm97_vm0, %v30_v17  ;;  %4436 = vmatmul.msk.f32.gmra.mxu3 %vm97_vm0, %v62_v18  ;;  %v3281_v17 = vperm.slane %v5248_v15, 5  ;;  %v5251_v18 = vperm.slane %v91_v59, 1  ;;  %v3047_v59 = vadd.f32 0.5, %v2983_v52  ;;  %v2568_v60 = vsub.s32 %v2376_v46, %v2504_v53 }
  0x64   :  { %v2823_v37 = vadd.f32 0.5, %v2759_v1  ;;  %v2024_v61 = vfloor.f32 %v1960_v54  ;;  %v1993_v20 = vfloor.f32 %v1929_v4  ;;  %v3288_v21 = vsel %vm5313_vm8, %v5262_v22, %v5297_v48 }
  0x65   :  { %vm5268_vm2 = vcmp.eq.s32.totalorder %v3281_v17, 1  ;;  %v2632_v2 = vmul.u32 16, %v2568_v60  ;;  %v2952_v3 = vcvt.s32.f32 %v2568_v60  ;;  %v5319_v12 = vmul.f32 8.0, %v3047_v59  ;;  %v66_v17 = vld [vmem:[%s9267_s0 + $0x178] sm:$0xff] }
  0x66   :  { %v4660_v23 = vcvt.f32.s32 %v2024_v61  ;;  %vm5332_vm9 = vcmp.eq.s32.totalorder %v3416_v55, 1  ;;  %v970_v32 = vcvt.s32.f32 %v5243_v11  ;;  %v4598_v36 = vcvt.f32.s32 %v1993_v20 }
  0x67   :  { %v2696_v14 = vsub.s32 %v5193_v30, %v2632_v2  ;;  %v3016_v47 = vadd.f32 0.5, %v2952_v3  ;;  %v5339_v39 = vadd.s32 280, %v5113_v25  ;;  %v2919_v34 = vmul.f32 8.0, %v2855_v9  ;;  %v67_v2 = vld [vmem:[%s9267_s0 + $0x180] sm:$0xff] }
  0x68   :  { %v2152_v1 = vmul.u32 16, %v4660_v23  ;;  %v3351_v44 = vsel %vm5268_vm2, %v5319_v12, %v5265_v26  ;;  %v2121_v53 = vmul.u32 16, %v4598_v36  ;;  %v3352_v62 = vsel %vm5313_vm8, %v5319_v12, %v5297_v48 }
  0x69   :  { %v2760_v30 = vcvt.s32.f32 %v2696_v14  ;;  %v1002_v59 = vcvt.s32.f32 %v5339_v39  ;;  %v5373_v61 = vsel %vm5292_vm4, %v2919_v34, %v3351_v44  ;;  %vm4064_vm3 = vcmask 351232  }
  0x6a   :  { %4341 = vmatmul.msk.f32.gmra.mxu0 %vm97_vm0, %v31_v42  ;;  %4373 = vmatmul.msk.f32.gmra.mxu2 %vm97_vm0, %v63_v43  ;;  %v2216_v31 = vsub.s32 %v5240_v10, %v2152_v1  ;;  %v2185_v15 = vsub.s32 %v5303_v57, %v2121_v53 }
  0x6b   :  { %4405 = vmatmul.msk.f32.gmra.mxu1 %vm97_vm0, %v31_v42  ;;  %4437 = vmatmul.msk.f32.gmra.mxu3 %vm97_vm0, %v63_v43  ;;  %v3287_v42 = vsel %vm5268_vm2, %v5262_v22, %v5265_v26  ;;  %v2824_v46 = vadd.f32 0.5, %v2760_v30 }
  0x6c   :  { %vm2280_vm11 = vcmp.ge.s32.totalorder %v2216_v31, 16  ;;  %vm2472_vm12 = vcmp.lt.s32.totalorder %v2216_v31, 0  ;;  %vm2249_vm15 = vcmp.ge.s32.totalorder %v2185_v15, 16  ;;  %vm2441_vm1 = vcmp.lt.s32.totalorder %v2185_v15, 0 }
  0x6d   :  { %v2344_v50 = vsel %vm2280_vm11, 1, %v4978_v45  ;;  %v2536_v52 = vsel %vm2472_vm12, 1, %v4978_v45  ;;  %v5396_v3 = vmul.f32 8.0, %v2824_v46  ;;  %v2313_v14 = vsel %vm2249_vm15, 1, %v4978_v45 }
  0x6e   :  { %v2408_v54 = vadd.s32 %v4660_v23, %v2344_v50 }
  0x70   :  { %v2600_v23 = vsub.s32 %v2408_v54, %v2536_v52 }
  0x72   :  { %4342 = vmatmul.msk.f32.gmra.mxu0 %vm97_vm0, %v32_v6  ;;  %4374 = vmatmul.msk.f32.gmra.mxu2 %vm97_vm0, %v64_v7  ;;  %v2664_v9 = vmul.u32 16, %v2600_v23  ;;  %v2984_v12 = vcvt.s32.f32 %v2600_v23 }
  0x73   :  { %4406 = vmatmul.msk.f32.gmra.mxu1 %vm97_vm0, %v32_v6  ;;  %4438 = vmatmul.msk.f32.gmra.mxu3 %vm97_vm0, %v64_v7  ;;  %v1641_v6 = vsel %vm1577_vm7, 1, %v4978_v45  ;;  %v2887_v7 = vmul.f32 8.0, %v2823_v37 }
  0x74   :  { %v1705_v51 = vsub.s32 %v1513_v5, %v1641_v6  ;;  %v5402_v6 = vmul.f32 0.00390625, %v1002_v59  ;;  %v2728_v1 = vsub.s32 %v5240_v10, %v2664_v9  ;;  %v3048_v20 = vadd.f32 0.5, %v2984_v12  ;;  %v68_v59 = vld [vmem:[%s9267_s0 + $0x188] sm:$0xff] }
  0x75   :  { %v5345_v22 = vsel %vm5292_vm4, %v2887_v7, %v3287_v42  ;;  %v5357_v42 = vsel %vm5332_vm9, %v2887_v7, %v3288_v21  ;;  %v5418_v21 = vsel %vm5332_vm9, %v2919_v34, %v3352_v62 }
  0x76   :  { %v1769_v37 = vmul.u32 256, %v1705_v51  ;;  %v1130_v44 = vfloor.f32 %v5402_v6 }
  0x78   :  { %v5362_v55 = vsub.s32 %v5176_v13, %v1769_v37  ;;  %v3112_v37 = vmul.f32 8.0, %v3048_v20 }
  0x7a   :  { %4343 = vmatmul.msk.f32.gmra.mxu0 %vm97_vm0, %v33_v40  ;;  %4375 = vmatmul.msk.f32.gmra.mxu2 %vm97_vm0, %v65_v41  ;;  %v1897_v4 = vcvt.s32.f32 %v5362_v55  ;;  %v3354_v15 = vsel %vm5313_vm8, %v3112_v37, %v5297_v48 }
  0x7b   :  { %4407 = vmatmul.msk.f32.gmra.mxu1 %vm97_vm0, %v33_v40  ;;  %4439 = vmatmul.msk.f32.gmra.mxu3 %vm97_vm0, %v65_v41  ;;  %v5347_v40 = vmul.f32 8.0, %v3016_v47  ;;  %v1034_v41 = vmul.f32 0.00390625, %v970_v32  ;;  %v2505_v47 = vsel %vm2441_vm1, 1, %v4978_v45 }
  0x7c   :  { %v1961_v51 = vmul.f32 0.0625, %v1897_v4 }
  0x7d   :  { %v1098_v58 = vfloor.f32 %v1034_v41  ;;  %v3289_v13 = vsel %vm5268_vm2, %v5347_v40, %v5265_v26  ;;  %v3290_v10 = vsel %vm5313_vm8, %v5347_v40, %v5297_v48  ;;  %v36_v40 = vld [vmem:[%s9267_s0 + $0x88] sm:$0xff] }
  0x7e   :  { %v5423_v30 = vsel %vm5292_vm4, %v5396_v3, %v3289_v13  ;;  %v2025_v53 = vfloor.f32 %v1961_v51  ;;  %v3353_v13 = vsel %vm5268_vm2, %v3112_v37, %v5265_v26 }
  0x7f   :  { %v5399_v5 = vcvt.f32.s32 %v1098_v58 }
  0x80   :  { %v5475_v51 = vcvt.f32.s32 %v2025_v53 }
  0x81   :  { %v1226_v41 = vmul.u32 256, %v5399_v5 }
  0x82   :  { %4344 = vmatmul.msk.f32.gmra.mxu0 %vm97_vm0, %v34_v16  ;;  %4376 = vmatmul.msk.f32.gmra.mxu2 %vm97_vm0, %v66_v17 }
  0x83   :  { %4408 = vmatmul.msk.f32.gmra.mxu1 %vm97_vm0, %v34_v16  ;;  %4440 = vmatmul.msk.f32.gmra.mxu3 %vm97_vm0, %v66_v17  ;;  %v2377_v17 = vadd.s32 %v4598_v36, %v2313_v14  ;;  %v2792_v36 = vcvt.s32.f32 %v2728_v1 }
  0x85   :  { %v2569_v32 = vsub.s32 %v2377_v17, %v2505_v47  ;;  %v2856_v62 = vadd.f32 0.5, %v2792_v36  ;;  %v5463_v17 = vsel %vm5332_vm9, %v5396_v3, %v3290_v10  ;;  %v5486_v36 = vcvt.f32.s32 %v1130_v44  ;;  %v37_v44 = vld [vmem:[%s9267_s0 + $0x90] sm:$0xff] }
  0x87   :  { %v307_v24 = vpop.f32.mrf.mxu0  ;;  %v2633_v50 = vmul.u32 16, %v2569_v32  ;;  %v2953_v52 = vcvt.s32.f32 %v2569_v32  ;;  %v2920_v12 = vmul.f32 8.0, %v2856_v62 }
  0x88   :  { %v308_v19 = vadd.f32 %v307_v24, %v5236_v8  ;;  %v516_v29 = vpop.f32.mrf.mxu1 }
  0x89   :  { %v517_v7 = vadd.f32 %v516_v29, %v5251_v18  ;;  %v2697_v4 = vsub.s32 %v5303_v57, %v2633_v50  ;;  %v3017_v20 = vadd.f32 0.5, %v2953_v52  ;;  %v5480_v32 = vsel %vm5292_vm4, %v2920_v12, %v3353_v13 }
  0x8a   :  { %4722 = vtanh.f32 %v308_v19  ;;  %v4192_v16 = vmul.f32 2.0, %v308_v19  ;;  %4345 = vmatmul.msk.f32.gmra.mxu0 %vm97_vm0, %v35_v0  ;;  %4377 = vmatmul.msk.f32.gmra.mxu2 %vm97_vm0, %v67_v2 }
  0x8b   :  { %4724 = vtanh.f32 %v517_v7  ;;  %4409 = vmatmul.msk.f32.gmra.mxu1 %vm97_vm0, %v35_v0  ;;  %4441 = vmatmul.msk.f32.gmra.mxu3 %vm97_vm0, %v67_v2  ;;  %v2761_v1 = vcvt.s32.f32 %v2697_v4  ;;  %v5489_v53 = vmul.f32 8.0, %v3017_v20 }
  0x8c   :  { %4257 = vst.msk [vmem:[%s9270_s5] sm:$0xff] %vm4256_vm10, %v4192_v16 }
  0x8d   :  { %v403_v31 = vpop.f32.mrf.mxu2  ;;  %v2825_v52 = vadd.f32 0.5, %v2761_v1 }
  0x8e   :  { %v404_v34 = vadd.f32 %v403_v31, %v5236_v8  ;;  %v612_v46 = vpop.f32.mrf.mxu3  ;;  %v5484_v31 = vsel %vm5332_vm9, %v2920_v12, %v3354_v15  ;;  %v2153_v15 = vmul.u32 16, %v5475_v51 }
  0x8f   :  { %v613_v54 = vadd.f32 %v612_v46, %v5251_v18  ;;  %v310_v58 = vpop.f32.mrf.mxu0  ;;  %v2889_v1 = vmul.f32 8.0, %v2825_v52 }
  0x90   :  { %v4723_v24 = vpop.eup %4722  ;;  %4726 = vtanh.f32 %v404_v34  ;;  %v4224_v0 = vmul.f32 2.0, %v404_v34  ;;  %v311_v2 = vadd.f32 %v310_v58, %v5236_v8  ;;  %v519_v23 = vpop.f32.mrf.mxu1 }
  0x91   :  { %v4725_v29 = vpop.eup %4724  ;;  %v3153_v6 = vsel %vm5367_vm13, %v308_v19, %v4723_v24  ;;  %4728 = vtanh.f32 %v613_v54  ;;  %v520_v9 = vadd.f32 %v519_v23, %v5251_v18 }
  0x92   :  { %v3549_v14 = vmul.f32 %v5274_v33, %v3153_v6  ;;  %v3154_v16 = vsel %vm5386_vm14, %v517_v7, %v4725_v29  ;;  %4289 = vst.msk [vmem:[%s9270_s5 + $0x100] sm:$0xff] %vm4256_vm10, %v4224_v0  ;;  %4730 = vtanh.f32 %v311_v2  ;;  %v4193_v57 = vmul.f32 2.0, %v311_v2  ;;  %4346 = vmatmul.msk.f32.gmra.mxu0 %vm97_vm0, %v36_v40  ;;  %4378 = vmatmul.msk.f32.gmra.mxu2 %vm97_vm0, %v68_v59 }
  0x93   :  { %v3550_v19 = vmul.f32 %v5279_v38, %v3154_v16  ;;  %4732 = vtanh.f32 %v520_v9  ;;  %4410 = vmatmul.msk.f32.gmra.mxu1 %vm97_vm0, %v36_v40  ;;  %4442 = vmatmul.msk.f32.gmra.mxu3 %vm97_vm0, %v68_v59  ;;  %v5468_v7 = vsub.s32 %v5243_v11, %v1226_v41 }
  0x94   :  { %v3679_v47 = vadd.f32 %v5276_v35, %v3549_v14  ;;  %4258 = vst.msk [vmem:[%s9270_s5 + $0x8] sm:$0xff] %vm4256_vm10, %v4193_v57 }
  0x95   :  { %v3680_v3 = vadd.f32 %v5299_v49, %v3550_v19  ;;  %v406_v10 = vpop.f32.mrf.mxu2  ;;  %vm1354_vm5 = vcmp.ge.s32.totalorder %v5468_v7, 256  ;;  %vm1546_vm6 = vcmp.lt.s32.totalorder %v5468_v7, 0 }
  0x96   :  { %v4727_v37 = vpop.eup %4726  ;;  %v3807_v41 = vmul.f32 %v3679_v47, %v3153_v6  ;;  %v407_v46 = vadd.f32 %v406_v10, %v5236_v8  ;;  %v615_v50 = vpop.f32.mrf.mxu3 }
  0x97   :  { %v4729_v58 = vpop.eup %4728  ;;  %v3808_v40 = vmul.f32 %v3680_v3, %v3154_v16  ;;  %v3217_v59 = vsel %vm5367_vm13, %v404_v34, %v4727_v37  ;;  %v5494_v62 = vadd.f32 %v615_v50, %v5251_v18  ;;  %v313_v13 = vpop.f32.mrf.mxu0  ;;  %v69_v34 = vld [vmem:[%s9267_s0 + $0x190] sm:$0xff]  ;;  %v3291_v3 = vsel %vm5268_vm2, %v5489_v53, %v5265_v26 }
  0x98   :  { %v4731_v24 = vpop.eup %4730  ;;  %v3935_v0 = vadd.f32 %v3807_v41, %v5345_v22  ;;  %v3613_v23 = vmul.f32 %v5274_v33, %v3217_v59  ;;  %v3218_v4 = vsel %vm5386_vm14, %v613_v54, %v4729_v58  ;;  %4734 = vtanh.f32 %v407_v46  ;;  %v522_v22 = vpop.f32.mrf.mxu1 }
  0x99   :  { %v4733_v29 = vpop.eup %4732  ;;  %v3936_v6 = vadd.f32 %v3808_v40, %v5357_v42  ;;  %v3614_v12 = vmul.f32 %v5279_v38, %v3218_v4  ;;  %v3155_v14 = vsel %vm5367_vm13, %v311_v2, %v4731_v24  ;;  %v4225_v16 = vmul.f32 2.0, %v407_v46 }
  0x9a   :  { %4063 = vst [vmem:[%s9271_s4] sm:$0xff] %v3935_v0  ;;  %v3743_v54 = vadd.f32 %v5276_v35, %v3613_v23  ;;  %v3551_v57 = vmul.f32 %v5274_v33, %v3155_v14  ;;  %v3156_v19 = vsel %vm5386_vm14, %v520_v9, %v4733_v29  ;;  %4736 = vtanh.f32 %v5494_v62  ;;  %4347 = vmatmul.msk.f32.gmra.mxu0 %vm97_vm0, %v37_v44 }
  0x9b   :  { %4065 = vst.msk [vmem:[%s9271_s4 + $0x8] sm:$0xff] %vm4064_vm3, %v3936_v6  ;;  %v3744_v42 = vadd.f32 %v5299_v49, %v3614_v12  ;;  %v3552_v2 = vmul.f32 %v5279_v38, %v3156_v19  ;;  %v314_v47 = vadd.f32 %v313_v13, %v5236_v8  ;;  %4379 = vmatmul.msk.f32.gmra.mxu2 %vm97_vm0, %v69_v34  ;;  %v70_v12 = vld [vmem:[%s9267_s0 + $0x198] sm:$0xff] }
  0x9c   :  { %v3871_v20 = vmul.f32 %v3743_v54, %v3217_v59  ;;  %v3681_v9 = vadd.f32 %v5276_v35, %v3551_v57  ;;  %4290 = vst.msk [vmem:[%s9270_s5 + $0x108] sm:$0xff] %vm4256_vm10, %v4225_v16  ;;  %v523_v10 = vadd.f32 %v522_v22, %v5251_v18  ;;  %v5543_v50 = vsel %vm5292_vm4, %v2889_v1, %v3291_v3 }
  0x9d   :  { %v3872_v37 = vmul.f32 %v3744_v42, %v3218_v4  ;;  %v3682_v41 = vadd.f32 %v5299_v49, %v3552_v2  ;;  %4738 = vtanh.f32 %v314_v47  ;;  %4411 = vmatmul.msk.f32.gmra.mxu1 %vm97_vm0, %v37_v44  ;;  %4443 = vmatmul.msk.f32.gmra.mxu3 %vm97_vm0, %v69_v34  ;;  %v409_v52 = vpop.f32.mrf.mxu2  ;;  %v4194_v13 = vmul.f32 2.0, %v314_v47  ;;  %v38_v34 = vld [vmem:[%s9267_s0 + $0x98] sm:$0xff] }
  0x9e   :  { %v4735_v58 = vpop.eup %4734  ;;  %v3999_v40 = vadd.f32 %v3871_v20, %v5373_v61  ;;  %v3809_v59 = vmul.f32 %v3681_v9, %v3155_v14  ;;  %4740 = vtanh.f32 %v523_v10  ;;  %v618_v24 = vpop.f32.mrf.mxu3  ;;  %v3292_v44 = vsel %vm5313_vm8, %v5489_v53, %v5297_v48 }
  0x9f   :  { %v4000_v0 = vadd.f32 %v3872_v37, %v5418_v21  ;;  %v3810_v23 = vmul.f32 %v3682_v41, %v3156_v19  ;;  %v3219_v4 = vsel %vm5367_vm13, %v407_v46, %v4735_v58  ;;  %v5565_v46 = vsel %vm5332_vm9, %v2889_v1, %v3292_v44  ;;  %v316_v53 = vpop.f32.mrf.mxu0  ;;  %4259 = vst.msk [vmem:[%s9270_s5 + $0x10] sm:$0xff] %vm4256_vm10, %v4194_v13 }
  0xa0   :  { %v4737_v61 = vpop.eup %4736  ;;  %4128 = vst [vmem:[%s9271_s4 + $0x200] sm:$0xff] %v3999_v40  ;;  %v3937_v21 = vadd.f32 %v3809_v59, %v5423_v30  ;;  %v3615_v29 = vmul.f32 %v5274_v33, %v3219_v4  ;;  %v410_v6 = vadd.f32 %v409_v52, %v5236_v8  ;;  %v2217_v16 = vsub.s32 %v5362_v55, %v2153_v15 }
  0xa1   :  { %4129 = vst.msk [vmem:[%s9271_s4 + $0x208] sm:$0xff] %vm4064_vm3, %v4000_v0  ;;  %v3938_v30 = vadd.f32 %v3810_v23, %v5463_v17  ;;  %v3220_v14 = vsel %vm5386_vm14, %v5494_v62, %v4737_v61  ;;  %v619_v22 = vadd.f32 %v618_v24, %v5251_v18  ;;  %v317_v62 = vadd.f32 %v316_v53, %v5236_v8 }
  0xa2   :  { %4066 = vst [vmem:[%s9271_s4 + $0x10] sm:$0xff] %v3937_v21  ;;  %v3745_v54 = vadd.f32 %v5276_v35, %v3615_v29  ;;  %v3616_v57 = vmul.f32 %v5279_v38, %v3220_v14  ;;  %4742 = vtanh.f32 %v410_v6  ;;  %v4226_v19 = vmul.f32 2.0, %v410_v6  ;;  %4348 = vmatmul.msk.f32.gmra.mxu0 %vm97_vm0, %v38_v34  ;;  %v525_v21 = vpop.f32.mrf.mxu1 }
  0xa3   :  { %v4739_v17 = vpop.eup %4738  ;;  %4067 = vst.msk [vmem:[%s9271_s4 + $0x18] sm:$0xff] %vm4064_vm3, %v3938_v30  ;;  %vm2281_vm7 = vcmp.ge.s32.totalorder %v2217_v16, 16  ;;  %vm2473_vm11 = vcmp.lt.s32.totalorder %v2217_v16, 0  ;;  %4744 = vtanh.f32 %v619_v22  ;;  %4380 = vmatmul.msk.f32.gmra.mxu2 %vm97_vm0, %v70_v12  ;;  %v1418_v40 = vsel %vm1354_vm5, 1, %v4978_v45 }
  0xa4   :  { %v4741_v15 = vpop.eup %4740  ;;  %v3873_v42 = vmul.f32 %v3745_v54, %v3219_v4  ;;  %v3746_v2 = vadd.f32 %v5299_v49, %v3616_v57  ;;  %v3157_v1 = vsel %vm5367_vm13, %v314_v47, %v4739_v17  ;;  %v2345_v20 = vsel %vm2281_vm7, 1, %v4978_v45  ;;  %4291 = vst.msk [vmem:[%s9270_s5 + $0x110] sm:$0xff] %vm4256_vm10, %v4226_v19 }
  0xa5   :  { %v3553_v9 = vmul.f32 %v5274_v33, %v3157_v1  ;;  %v3158_v3 = vsel %vm5386_vm14, %v523_v10, %v4741_v15  ;;  %v2409_v37 = vadd.s32 %v5475_v51, %v2345_v20  ;;  %v2537_v41 = vsel %vm2473_vm11, 1, %v4978_v45  ;;  %4412 = vmatmul.msk.f32.gmra.mxu1 %vm97_vm0, %v38_v34  ;;  %4444 = vmatmul.msk.f32.gmra.mxu3 %vm97_vm0, %v70_v12 }
  0xa6   :  { %v4001_v47 = vadd.f32 %v3873_v42, %v5480_v32  ;;  %v3874_v52 = vmul.f32 %v3746_v2, %v3220_v14  ;;  %v3554_v58 = vmul.f32 %v5279_v38, %v3158_v3  ;;  %4746 = vtanh.f32 %v317_v62  ;;  %v412_v42 = vpop.f32.mrf.mxu2 }
  0xa7   :  { %v3683_v10 = vadd.f32 %v5276_v35, %v3553_v9  ;;  %v2601_v51 = vsub.s32 %v2409_v37, %v2537_v41  ;;  %v1610_v59 = vsel %vm1546_vm6, 1, %v4978_v45  ;;  %v1482_v0 = vadd.s32 %v5399_v5, %v1418_v40  ;;  %v319_v20 = vpop.f32.mrf.mxu0 }
  0xa8   :  { %v4743_v13 = vpop.eup %4742  ;;  %4130 = vst [vmem:[%s9271_s4 + $0x210] sm:$0xff] %v4001_v47  ;;  %v4002_v32 = vadd.f32 %v3874_v52, %v5484_v31  ;;  %v3684_v24 = vadd.f32 %v5299_v49, %v3554_v58  ;;  %v4195_v23 = vmul.f32 2.0, %v317_v62  ;;  %v5661_v9 = vadd.s32 32, %v5113_v25 }
  0xa9   :  { %v4745_v4 = vpop.eup %4744  ;;  %v3811_v44 = vmul.f32 %v3683_v10, %v3157_v1  ;;  %v2665_v34 = vmul.u32 16, %v2601_v51  ;;  %v2985_v61 = vcvt.s32.f32 %v2601_v51  ;;  %v3221_v7 = vsel %vm5367_vm13, %v410_v6, %v4743_v13  ;;  %v621_v1 = vpop.f32.mrf.mxu3 }
  0xaa   :  { %4131 = vst.msk [vmem:[%s9271_s4 + $0x218] sm:$0xff] %vm4064_vm3, %v4002_v32  ;;  %v3812_v29 = vmul.f32 %v3684_v24, %v3158_v3  ;;  %v3617_v31 = vmul.f32 %v5274_v33, %v3221_v7  ;;  %v3222_v5 = vsel %vm5386_vm14, %v619_v22, %v4745_v4  ;;  %v1674_v53 = vsub.s32 %v1482_v0, %v1610_v59 }
  0xab   :  { %v3939_v12 = vadd.f32 %v3811_v44, %v5543_v50  ;;  %v2729_v30 = vsub.s32 %v5362_v55, %v2665_v34  ;;  %v3049_v14 = vadd.f32 0.5, %v2985_v61  ;;  %v3618_v6 = vmul.f32 %v5279_v38, %v3222_v5  ;;  %4260 = vst.msk [vmem:[%s9270_s5 + $0x18] sm:$0xff] %vm4256_vm10, %v4195_v23 }
  0xac   :  { %v4747_v16 = vpop.eup %4746  ;;  %v3940_v54 = vadd.f32 %v3812_v29, %v5565_v46  ;;  %v3747_v57 = vadd.f32 %v5276_v35, %v3617_v31  ;;  %v1738_v19 = vmul.u32 256, %v1674_v53  ;;  %v526_v22 = vadd.f32 %v525_v21, %v5251_v18 }
  0xad   :  { %4068 = vst [vmem:[%s9271_s4 + $0x20] sm:$0xff] %v3939_v12  ;;  %v2793_v55 = vcvt.s32.f32 %v2729_v30  ;;  %v3113_v50 = vmul.f32 8.0, %v3049_v14  ;;  %v3748_v17 = vadd.f32 %v5299_v49, %v3618_v6  ;;  %v3159_v15 = vsel %vm5367_vm13, %v317_v62, %v4747_v16  ;;  %v528_v6 = vpop.f32.mrf.mxu1 }
  0xae   :  { %4069 = vst.msk [vmem:[%s9271_s4 + $0x28] sm:$0xff] %vm4064_vm3, %v3940_v54  ;;  %v5657_v46 = vsub.s32 %v5243_v11, %v1738_v19  ;;  %v3555_v2 = vmul.f32 %v5274_v33, %v3159_v15  ;;  %4748 = vtanh.f32 %v526_v22  ;;  %v3875_v37 = vmul.f32 %v3747_v57, %v3221_v7 }
  0xaf   :  { %v2857_v3 = vadd.f32 0.5, %v2793_v55  ;;  %v3355_v62 = vsel %vm5268_vm2, %v3113_v50, %v5265_v26  ;;  %v3356_v41 = vsel %vm5313_vm8, %v3113_v50, %v5297_v48  ;;  %v3876_v11 = vmul.f32 %v3748_v17, %v3222_v5 }
  0xb0   :  { %v1866_v47 = vcvt.s32.f32 %v5657_v46  ;;  %v413_v52 = vadd.f32 %v412_v42, %v5236_v8  ;;  %v1258_v58 = vmul.u32 256, %v5486_v36  ;;  %v3685_v51 = vadd.f32 %v5276_v35, %v3555_v2 }
  0xb1   :  { %v2921_v10 = vmul.f32 8.0, %v2857_v3  ;;  %v622_v40 = vadd.f32 %v621_v1, %v5251_v18  ;;  %v5675_v59 = vadd.f32 %v319_v20, %v5236_v8  ;;  %v971_v24 = vcvt.s32.f32 %v5661_v9  ;;  %v39_v3 = vld [vmem:[%s9267_s0 + $0xa0] sm:$0xff] }
  0xb2   :  { %v1930_v13 = vmul.f32 0.0625, %v1866_v47  ;;  %4750 = vtanh.f32 %v413_v52  ;;  %v1322_v32 = vsub.s32 %v5339_v39, %v1258_v58  ;;  %v4227_v4 = vmul.f32 2.0, %v413_v52  ;;  %4349 = vmatmul.msk.f32.gmra.mxu0 %vm97_vm0, %v39_v3  ;;  %4413 = vmatmul.msk.f32.gmra.mxu1 %vm97_vm0, %v39_v3 }
  0xb3   :  { %v3487_v0 = vsel %vm5292_vm4, %v2921_v10, %v3355_v62  ;;  %v3488_v23 = vsel %vm5332_vm9, %v2921_v10, %v3356_v41  ;;  %4752 = vtanh.f32 %v622_v40  ;;  %v5700_v30 = vmul.f32 %v3685_v51, %v3159_v15  ;;  %v71_v62 = vld [vmem:[%s9267_s0 + $0x1a0] sm:$0xff] }
  0xb4   :  { %v4749_v44 = vpop.eup %4748  ;;  %v4003_v34 = vadd.f32 %v3875_v37, %v3487_v0  ;;  %v4004_v61 = vadd.f32 %v3876_v11, %v3488_v23  ;;  %v1994_v7 = vfloor.f32 %v1930_v13  ;;  %vm1386_vm12 = vcmp.ge.s32.totalorder %v1322_v32, 256  ;;  %4292 = vst.msk [vmem:[%s9270_s5 + $0x118] sm:$0xff] %vm4256_vm10, %v4227_v4  ;;  %4381 = vmatmul.msk.f32.gmra.mxu2 %vm97_vm0, %v71_v62  ;;  %4445 = vmatmul.msk.f32.gmra.mxu3 %vm97_vm0, %v71_v62 }
  0xb5   :  { %v3160_v21 = vsel %vm5386_vm14, %v526_v22, %v4749_v44  ;;  %v1450_v29 = vsel %vm1386_vm12, 1, %v4978_v45  ;;  %vm1578_vm15 = vcmp.lt.s32.totalorder %v1322_v32, 0  ;;  %v1035_v14 = vmul.f32 0.00390625, %v971_v24 }
  0xb6   :  { %4132 = vst [vmem:[%s9271_s4 + $0x220] sm:$0xff] %v4003_v34  ;;  %v4600_v31 = vcvt.f32.s32 %v1994_v7  ;;  %v3556_v5 = vmul.f32 %v5279_v38, %v3160_v21  ;;  %v1514_v53 = vadd.s32 %v5486_v36, %v1450_v29  ;;  %v1642_v12 = vsel %vm1578_vm15, 1, %v4978_v45 }
  0xb7   :  { %4133 = vst.msk [vmem:[%s9271_s4 + $0x228] sm:$0xff] %vm4064_vm3, %v4004_v61  ;;  %v5703_v16 = vadd.s32 288, %v5113_v25  ;;  %4754 = vtanh.f32 %v5675_v59  ;;  %v529_v36 = vadd.f32 %v528_v6, %v5251_v18  ;;  %v1099_v50 = vfloor.f32 %v1035_v14 }
  0xb8   :  { %v4751_v54 = vpop.eup %4750  ;;  %v2122_v57 = vmul.u32 16, %v4600_v31  ;;  %v1706_v19 = vsub.s32 %v1514_v53, %v1642_v12  ;;  %v5711_v15 = vadd.s32 40, %v5113_v25  ;;  %v3686_v2 = vadd.f32 %v5299_v49, %v3556_v5 }
  0xb9   :  { %v4753_v22 = vpop.eup %4752  ;;  %v3223_v55 = vsel %vm5367_vm13, %v413_v52, %v4751_v54  ;;  %v1003_v17 = vcvt.s32.f32 %v5703_v16  ;;  %v4474_v41 = vcvt.f32.s32 %v1099_v50  ;;  %4756 = vtanh.f32 %v529_v36 }
  0xba   :  { %v2186_v42 = vsub.s32 %v5657_v46, %v2122_v57  ;;  %v1770_v1 = vmul.u32 256, %v1706_v19  ;;  %v3619_v20 = vmul.f32 %v5274_v33, %v3223_v55  ;;  %v3224_v37 = vsel %vm5386_vm14, %v622_v40, %v4753_v22 }
  0xbb   :  { %v1067_v11 = vmul.f32 0.00390625, %v1003_v17  ;;  %v5732_v52 = vadd.s32 296, %v5113_v25  ;;  %v3620_v51 = vmul.f32 %v5279_v38, %v3224_v37  ;;  %v1227_v40 = vmul.u32 256, %v4474_v41 }
  0xbc   :  { %vm2250_vm1 = vcmp.ge.s32.totalorder %v2186_v42, 16  ;;  %vm2442_vm5 = vcmp.lt.s32.totalorder %v2186_v42, 0  ;;  %v5727_v47 = vsub.s32 %v5339_v39, %v1770_v1  ;;  %v415_v39 = vpop.f32.mrf.mxu2  ;;  %v972_v23 = vcvt.s32.f32 %v5711_v15 }
  0xbd   :  { %v2314_v58 = vsel %vm2250_vm1, 1, %v4978_v45  ;;  %v2506_v10 = vsel %vm2442_vm5, 1, %v4978_v45  ;;  %v4755_v13 = vpop.eup %4754  ;;  %v1131_v0 = vfloor.f32 %v1067_v11  ;;  %v5739_v4 = vmul.f32 %v3686_v2, %v3160_v21 }
  0xbe   :  { %v2378_v32 = vadd.s32 %v4600_v31, %v2314_v58  ;;  %v1898_v24 = vcvt.s32.f32 %v5727_v47  ;;  %v3749_v44 = vadd.f32 %v5276_v35, %v3619_v20  ;;  %v3750_v34 = vadd.f32 %v5299_v49, %v3620_v51 }
  0xbf   :  { %v1291_v61 = vsub.s32 %v5661_v9, %v1227_v40  ;;  %v4196_v5 = vmul.f32 2.0, %v5675_v59  ;;  %v416_v31 = vadd.f32 %v415_v39, %v5236_v8  ;;  %v4757_v53 = vpop.eup %4756  ;;  %v5749_v21 = vsel %vm5367_vm13, %v5675_v59, %v4755_v13 }
  0xc0   :  { %v2570_v7 = vsub.s32 %v2378_v32, %v2506_v10  ;;  %v1962_v29 = vmul.f32 0.0625, %v1898_v24  ;;  %v4538_v12 = vcvt.f32.s32 %v1131_v0  ;;  %v5756_v19 = vmul.f32 %v3749_v44, %v3223_v55 }
  0xc1   :  { %vm1355_vm6 = vcmp.ge.s32.totalorder %v1291_v61, 256  ;;  %vm1547_vm7 = vcmp.lt.s32.totalorder %v1291_v61, 0  ;;  %4261 = vst.msk [vmem:[%s9270_s5 + $0x20] sm:$0xff] %vm4256_vm10, %v4196_v5  ;;  %v3557_v59 = vmul.f32 %v5274_v33, %v5749_v21  ;;  %v5764_v1 = vsel %vm5386_vm14, %v529_v36, %v4757_v53 }
  0xc2   :  { %v2634_v14 = vmul.u32 16, %v2570_v7  ;;  %v2954_v6 = vcvt.s32.f32 %v2570_v7  ;;  %v2026_v54 = vfloor.f32 %v1962_v29  ;;  %v1419_v57 = vsel %vm1355_vm6, 1, %v4978_v45  ;;  %v624_v29 = vpop.f32.mrf.mxu3 }
  0xc3   :  { %v1483_v22 = vadd.s32 %v4474_v41, %v1419_v57  ;;  %v1611_v50 = vsel %vm1547_vm7, 1, %v4978_v45  ;;  %4758 = vtanh.f32 %v416_v31  ;;  %v1259_v3 = vmul.u32 256, %v4538_v12 }
  0xc4   :  { %v2698_v17 = vsub.s32 %v5657_v46, %v2634_v14  ;;  %v3018_v42 = vadd.f32 0.5, %v2954_v6  ;;  %v4664_v2 = vcvt.f32.s32 %v2026_v54  ;;  %v1036_v62 = vmul.f32 0.00390625, %v972_v23  ;;  %v322_v54 = vpop.f32.mrf.mxu0 }
  0xc5   :  { %v1675_v20 = vsub.s32 %v1483_v22, %v1611_v50  ;;  %v5766_v58 = vmul.f32 %v3750_v34, %v3224_v37  ;;  %v3558_v51 = vmul.f32 %v5279_v38, %v5764_v1  ;;  %v1323_v46 = vsub.s32 %v5703_v16, %v1259_v3 }
  0xc6   :  { %v2762_v55 = vcvt.s32.f32 %v2698_v17  ;;  %v3082_v11 = vmul.f32 8.0, %v3018_v42  ;;  %v2154_v41 = vmul.u32 16, %v4664_v2  ;;  %v4228_v40 = vmul.f32 2.0, %v416_v31 }
  0xc7   :  { %v1739_v10 = vmul.u32 256, %v1675_v20  ;;  %v3687_v24 = vadd.f32 %v5276_v35, %v3557_v59  ;;  %vm1387_vm11 = vcmp.ge.s32.totalorder %v1323_v46, 256  ;;  %vm1579_vm12 = vcmp.lt.s32.totalorder %v1323_v46, 0 }
  0xc8   :  { %v2826_v13 = vadd.f32 0.5, %v2762_v55  ;;  %v3293_v36 = vsel %vm5268_vm2, %v3082_v11, %v5265_v26  ;;  %v2218_v32 = vsub.s32 %v5727_v47, %v2154_v41  ;;  %v3294_v37 = vsel %vm5313_vm8, %v3082_v11, %v5297_v48  ;;  %4293 = vst.msk [vmem:[%s9270_s5 + $0x120] sm:$0xff] %vm4256_vm10, %v4228_v40  ;;  %v531_v41 = vpop.f32.mrf.mxu1 }
  0xc9   :  { %v5780_v39 = vsub.s32 %v5661_v9, %v1739_v10  ;;  %v1451_v23 = vsel %vm1387_vm11, 1, %v4978_v45  ;;  %v4759_v44 = vpop.eup %4758  ;;  %v1643_v6 = vsel %vm1579_vm12, 1, %v4978_v45  ;;  %v625_v20 = vadd.f32 %v624_v29, %v5251_v18 }
  0xca   :  { %v2890_v0 = vmul.f32 8.0, %v2826_v13  ;;  %vm2282_vm15 = vcmp.ge.s32.totalorder %v2218_v32, 16  ;;  %vm2474_vm1 = vcmp.lt.s32.totalorder %v2218_v32, 0  ;;  %v1515_v7 = vadd.s32 %v4538_v12, %v1451_v23 }
  0xcb   :  { %v2346_v34 = vsel %vm2282_vm15, 1, %v4978_v45  ;;  %v2538_v61 = vsel %vm2474_vm1, 1, %v4978_v45  ;;  %v1867_v9 = vcvt.s32.f32 %v5780_v39  ;;  %v3688_v12 = vadd.f32 %v5299_v49, %v3558_v51 }
  0xcc   :  { %v3425_v5 = vsel %vm5292_vm4, %v2890_v0, %v3293_v36  ;;  %v3426_v53 = vsel %vm5332_vm9, %v2890_v0, %v3294_v37  ;;  %v2410_v14 = vadd.s32 %v4664_v2, %v2346_v34  ;;  %v1707_v59 = vsub.s32 %v1515_v7, %v1643_v6 }
  0xcd   :  { %v3941_v57 = vadd.f32 %v5700_v30, %v3425_v5  ;;  %v3942_v22 = vadd.f32 %v5739_v4, %v3426_v53  ;;  %v1931_v50 = vmul.f32 0.0625, %v1867_v9  ;;  %v3225_v42 = vsel %vm5367_vm13, %v416_v31, %v4759_v44 }
  0xce   :  { %v2602_v17 = vsub.s32 %v2410_v14, %v2538_v61  ;;  %v1771_v3 = vmul.u32 256, %v1707_v59  ;;  %v5805_v30 = vadd.f32 %v322_v54, %v5236_v8  ;;  %v1100_v4 = vfloor.f32 %v1036_v62 }
  0xcf   :  { %4070 = vst [vmem:[%s9271_s4 + $0x30] sm:$0xff] %v3941_v57  ;;  %v1995_v2 = vfloor.f32 %v1931_v50  ;;  %v3621_v31 = vmul.f32 %v5274_v33, %v3225_v42  ;;  %4760 = vtanh.f32 %v625_v20  ;;  %v5813_v51 = vmul.f32 %v3687_v24, %v5749_v21 }
  0xd0   :  { %4071 = vst.msk [vmem:[%s9271_s4 + $0x38] sm:$0xff] %vm4064_vm3, %v3942_v22  ;;  %v2666_v55 = vmul.u32 16, %v2602_v17  ;;  %v2986_v11 = vcvt.s32.f32 %v2602_v17  ;;  %v5816_v46 = vsub.s32 %v5703_v16, %v1771_v3  ;;  %v1004_v62 = vcvt.s32.f32 %v5732_v52  ;;  %v40_v16 = vld [vmem:[%s9267_s0 + $0xa8] sm:$0xff] }
  0xd1   :  { %v4602_v10 = vcvt.f32.s32 %v1995_v2  ;;  %v4476_v36 = vcvt.f32.s32 %v1100_v4  ;;  %v5821_v32 = vadd.f32 %v531_v41, %v5251_v18  ;;  %v5824_v0 = vmul.f32 %v3688_v12, %v5764_v1  ;;  %4350 = vmatmul.msk.f32.gmra.mxu0 %vm97_vm0, %v40_v16  ;;  %4414 = vmatmul.msk.f32.gmra.mxu1 %vm97_vm0, %v40_v16 }
  0xd2   :  { %v2730_v40 = vsub.s32 %v5727_v47, %v2666_v55  ;;  %v3050_v13 = vadd.f32 0.5, %v2986_v11  ;;  %v1899_v23 = vcvt.s32.f32 %v5816_v46  ;;  %4762 = vtanh.f32 %v5805_v30  ;;  %v72_v47 = vld [vmem:[%s9267_s0 + $0x1a8] sm:$0xff] }
  0xd3   :  { %v2123_v37 = vmul.u32 16, %v4602_v10  ;;  %v3751_v44 = vadd.f32 %v5276_v35, %v3621_v31  ;;  %v1228_v34 = vmul.u32 256, %v4476_v36  ;;  %4382 = vmatmul.msk.f32.gmra.mxu2 %vm97_vm0, %v72_v47  ;;  %4764 = vtanh.f32 %v5821_v32  ;;  %4446 = vmatmul.msk.f32.gmra.mxu3 %vm97_vm0, %v72_v47 }
  0xd4   :  { %v2794_v21 = vcvt.s32.f32 %v2730_v40  ;;  %v3114_v24 = vmul.f32 8.0, %v3050_v13  ;;  %v1963_v61 = vmul.f32 0.0625, %v1899_v23  ;;  %v1068_v9 = vmul.f32 0.00390625, %v1004_v62  ;;  %v418_v40 = vpop.f32.mrf.mxu2 }
  0xd5   :  { %v2187_v1 = vsub.s32 %v5780_v39, %v2123_v37  ;;  %v4761_v7 = vpop.eup %4760  ;;  %v1292_v14 = vsub.s32 %v5711_v15, %v1228_v34  ;;  %v5857_v55 = vmul.f32 %v3751_v44, %v3225_v42  ;;  %v419_v44 = vadd.f32 %v418_v40, %v5236_v8 }
  0xd6   :  { %v2858_v29 = vadd.f32 0.5, %v2794_v21  ;;  %v3357_v5 = vsel %vm5268_vm2, %v3114_v24, %v5265_v26  ;;  %v3358_v53 = vsel %vm5313_vm8, %v3114_v24, %v5297_v48  ;;  %v2027_v6 = vfloor.f32 %v1963_v61 }
  0xd7   :  { %vm2251_vm5 = vcmp.ge.s32.totalorder %v2187_v1, 16  ;;  %vm2443_vm6 = vcmp.lt.s32.totalorder %v2187_v1, 0  ;;  %v3226_v54 = vsel %vm5386_vm14, %v625_v20, %v4761_v7  ;;  %vm1356_vm7 = vcmp.ge.s32.totalorder %v1292_v14, 256 }
  0xd8   :  { %v2922_v57 = vmul.f32 8.0, %v2858_v29  ;;  %v2315_v22 = vsel %vm2251_vm5, 1, %v4978_v45  ;;  %v2507_v50 = vsel %vm2443_vm6, 1, %v4978_v45  ;;  %v3622_v59 = vmul.f32 %v5279_v38, %v3226_v54  ;;  %v4763_v17 = vpop.eup %4762 }
  0xd9   :  { %v2379_v12 = vadd.s32 %v4602_v10, %v2315_v22  ;;  %v4666_v2 = vcvt.f32.s32 %v2027_v6  ;;  %vm1548_vm11 = vcmp.lt.s32.totalorder %v1292_v14, 0  ;;  %v1420_v20 = vsel %vm1356_vm7, 1, %v4978_v45  ;;  %v4765_v11 = vpop.eup %4764 }
  0xda   :  { %v3489_v3 = vsel %vm5292_vm4, %v2922_v57, %v3357_v5  ;;  %v3490_v4 = vsel %vm5332_vm9, %v2922_v57, %v3358_v53  ;;  %v1484_v13 = vadd.s32 %v4476_v36, %v1420_v20  ;;  %v1612_v37 = vsel %vm1548_vm11, 1, %v4978_v45 }
  0xdb   :  { %v4005_v31 = vadd.f32 %v5756_v19, %v3489_v3  ;;  %v4006_v41 = vadd.f32 %v5766_v58, %v3490_v4  ;;  %v2571_v62 = vsub.s32 %v2379_v12, %v2507_v50  ;;  %v2155_v10 = vmul.u32 16, %v4666_v2  ;;  %v325_v12 = vpop.f32.mrf.mxu0 }
  0xdc   :  { %v5866_v23 = vsel %vm5367_vm13, %v5805_v30, %v4763_v17  ;;  %v1132_v42 = vfloor.f32 %v1068_v9  ;;  %v3752_v47 = vadd.f32 %v5299_v49, %v3622_v59  ;;  %v1676_v36 = vsub.s32 %v1484_v13, %v1612_v37 }
  0xdd   :  { %4134 = vst [vmem:[%s9271_s4 + $0x230] sm:$0xff] %v4005_v31  ;;  %v2635_v16 = vmul.u32 16, %v2571_v62  ;;  %v2955_v19 = vcvt.s32.f32 %v2571_v62  ;;  %v2219_v58 = vsub.s32 %v5816_v46, %v2155_v10  ;;  %v3559_v21 = vmul.f32 %v5274_v33, %v5866_v23 }
  0xde   :  { %4135 = vst.msk [vmem:[%s9271_s4 + $0x238] sm:$0xff] %vm4064_vm3, %v4006_v41  ;;  %v4197_v24 = vmul.f32 2.0, %v5805_v30  ;;  %v1740_v7 = vmul.u32 256, %v1676_v36  ;;  %v5889_v29 = vadd.s32 48, %v5113_v25  ;;  %v5899_v6 = vsel %vm5386_vm14, %v5821_v32, %v4765_v11 }
  0xdf   :  { %v2699_v34 = vsub.s32 %v5780_v39, %v2635_v16  ;;  %v3019_v1 = vadd.f32 0.5, %v2955_v19  ;;  %vm2283_vm12 = vcmp.ge.s32.totalorder %v2219_v58, 16  ;;  %vm2475_vm15 = vcmp.lt.s32.totalorder %v2219_v58, 0 }
  0xe0   :  { %v2347_v61 = vsel %vm2283_vm12, 1, %v4978_v45  ;;  %v2539_v9 = vsel %vm2475_vm15, 1, %v4978_v45  ;;  %4262 = vst.msk [vmem:[%s9270_s5 + $0x28] sm:$0xff] %vm4256_vm10, %v4197_v24  ;;  %v5891_v39 = vmul.f32 %v3752_v47, %v3226_v54  ;;  %v5894_v14 = vsub.s32 %v5711_v15, %v1740_v7  ;;  %v627_v54 = vpop.f32.mrf.mxu3 }
  0xe1   :  { %v2763_v30 = vcvt.s32.f32 %v2699_v34  ;;  %v3083_v5 = vmul.f32 8.0, %v3019_v1  ;;  %v2411_v53 = vadd.s32 %v4666_v2, %v2347_v61  ;;  %4766 = vtanh.f32 %v419_v44 }
  0xe2   :  { %v4540_v57 = vcvt.f32.s32 %v1132_v42  ;;  %v5905_v17 = vadd.f32 %v5276_v35, %v3559_v21  ;;  %v1868_v32 = vcvt.s32.f32 %v5894_v14  ;;  %v4229_v3 = vmul.f32 2.0, %v419_v44 }
  0xe3   :  { %v2827_v22 = vadd.f32 0.5, %v2763_v30  ;;  %v3295_v50 = vsel %vm5268_vm2, %v3083_v5, %v5265_v26  ;;  %v2603_v59 = vsub.s32 %v2411_v53, %v2539_v9  ;;  %v3296_v15 = vsel %vm5313_vm8, %v3083_v5, %v5297_v48 }
  0xe4   :  { %v1260_v2 = vmul.u32 256, %v4540_v57  ;;  %v3560_v31 = vmul.f32 %v5279_v38, %v5899_v6  ;;  %v1932_v41 = vmul.f32 0.0625, %v1868_v32  ;;  %4294 = vst.msk [vmem:[%s9270_s5 + $0x128] sm:$0xff] %vm4256_vm10, %v4229_v3  ;;  %v628_v10 = vadd.f32 %v627_v54, %v5251_v18 }
  0xe5   :  { %v2891_v4 = vmul.f32 8.0, %v2827_v22  ;;  %v2667_v20 = vmul.u32 16, %v2603_v59  ;;  %v2987_v11 = vcvt.s32.f32 %v2603_v59  ;;  %v5920_v40 = vadd.f32 %v325_v12, %v5236_v8 }
  0xe6   :  { %v1324_v62 = vsub.s32 %v5732_v52, %v1260_v2  ;;  %v1996_v36 = vfloor.f32 %v1932_v41  ;;  %4768 = vtanh.f32 %v628_v10  ;;  %v3690_v22 = vadd.f32 %v5299_v49, %v3560_v31 }
  0xe7   :  { %v3427_v13 = vsel %vm5292_vm4, %v2891_v4, %v3295_v50  ;;  %v3428_v37 = vsel %vm5332_vm9, %v2891_v4, %v3296_v15  ;;  %v2731_v42 = vsub.s32 %v5816_v46, %v2667_v20  ;;  %v3051_v16 = vadd.f32 0.5, %v2987_v11  ;;  %v4767_v19 = vpop.eup %4766  ;;  %v534_v4 = vpop.f32.mrf.mxu1 }
  0xe8   :  { %v3943_v58 = vadd.f32 %v5813_v51, %v3427_v13  ;;  %v3944_v47 = vadd.f32 %v5824_v0, %v3428_v37  ;;  %vm1388_vm1 = vcmp.ge.s32.totalorder %v1324_v62, 256  ;;  %vm1580_vm5 = vcmp.lt.s32.totalorder %v1324_v62, 0 }
  0xe9   :  { %v2795_v21 = vcvt.s32.f32 %v2731_v42  ;;  %v3115_v24 = vmul.f32 8.0, %v3051_v16  ;;  %v1452_v34 = vsel %vm1388_vm1, 1, %v4978_v45  ;;  %v4604_v1 = vcvt.f32.s32 %v1996_v36 }
  0xea   :  { %4072 = vst [vmem:[%s9271_s4 + $0x40] sm:$0xff] %v3943_v58  ;;  %v1516_v61 = vadd.s32 %v4540_v57, %v1452_v34  ;;  %v1644_v46 = vsel %vm1580_vm5, 1, %v4978_v45  ;;  %v3227_v51 = vsel %vm5367_vm13, %v419_v44, %v4767_v19  ;;  %v973_v44 = vcvt.s32.f32 %v5889_v29  ;;  %v73_v19 = vld [vmem:[%s9267_s0 + $0x1b0] sm:$0xff] }
  0xeb   :  { %4073 = vst.msk [vmem:[%s9271_s4 + $0x48] sm:$0xff] %vm4064_vm3, %v3944_v47  ;;  %v2859_v0 = vadd.f32 0.5, %v2795_v21  ;;  %v3359_v9 = vsel %vm5268_vm2, %v3115_v24, %v5265_v26  ;;  %v3360_v7 = vsel %vm5313_vm8, %v3115_v24, %v5297_v48  ;;  %v3623_v30 = vmul.f32 %v5274_v33, %v3227_v51  ;;  %4383 = vmatmul.msk.f32.gmra.mxu2 %vm97_vm0, %v73_v19 }
  0xec   :  { %v2124_v5 = vmul.u32 16, %v4604_v1  ;;  %v1708_v53 = vsub.s32 %v1516_v61, %v1644_v46  ;;  %v5951_v59 = vadd.s32 304, %v5113_v25  ;;  %v1037_v15 = vmul.f32 0.00390625, %v973_v44  ;;  %v4769_v42 = vpop.eup %4768  ;;  %4447 = vmatmul.msk.f32.gmra.mxu3 %vm97_vm0, %v73_v19  ;;  %v421_v44 = vpop.f32.mrf.mxu2 }
  0xed   :  { %v2923_v57 = vmul.f32 8.0, %v2859_v0  ;;  %v3753_v50 = vadd.f32 %v5276_v35, %v3623_v30  ;;  %v5955_v32 = vadd.s32 56, %v5113_v25  ;;  %4770 = vtanh.f32 %v5920_v40 }
  0xee   :  { %v2188_v54 = vsub.s32 %v5894_v14, %v2124_v5  ;;  %v1772_v12 = vmul.u32 256, %v1708_v53  ;;  %v1005_v20 = vcvt.s32.f32 %v5951_v59  ;;  %v1101_v37 = vfloor.f32 %v1037_v15 }
  0xef   :  { %v3491_v2 = vsel %vm5292_vm4, %v2923_v57, %v3359_v9  ;;  %v3492_v3 = vsel %vm5332_vm9, %v2923_v57, %v3360_v7  ;;  %v3228_v36 = vsel %vm5386_vm14, %v628_v10, %v4769_v42  ;;  %v5991_v24 = vadd.s32 312, %v5113_v25 }
  0xf0   :  { %v4007_v11 = vadd.f32 %v5857_v55, %v3491_v2  ;;  %v4008_v31 = vadd.f32 %v5891_v39, %v3492_v3  ;;  %vm2252_vm6 = vcmp.ge.s32.totalorder %v2188_v54, 16  ;;  %vm2444_vm7 = vcmp.lt.s32.totalorder %v2188_v54, 0  ;;  %v41_v39 = vld [vmem:[%s9267_s0 + $0xb0] sm:$0xff] }
  0xf1   :  { %v2316_v41 = vsel %vm2252_vm6, 1, %v4978_v45  ;;  %v2508_v62 = vsel %vm2444_vm7, 1, %v4978_v45  ;;  %v5968_v13 = vsub.s32 %v5732_v52, %v1772_v12  ;;  %v535_v55 = vadd.f32 %v534_v4, %v5251_v18  ;;  %4351 = vmatmul.msk.f32.gmra.mxu0 %vm97_vm0, %v41_v39  ;;  %4415 = vmatmul.msk.f32.gmra.mxu1 %vm97_vm0, %v41_v39 }
  0xf2   :  { %4136 = vst [vmem:[%s9271_s4 + $0x240] sm:$0xff] %v4007_v11  ;;  %v2380_v16 = vadd.s32 %v4604_v1, %v2316_v41  ;;  %v1069_v58 = vmul.f32 0.00390625, %v1005_v20  ;;  %v974_v52 = vcvt.s32.f32 %v5955_v32  ;;  %v4478_v21 = vcvt.f32.s32 %v1101_v37 }
  0xf3   :  { %4137 = vst.msk [vmem:[%s9271_s4 + $0x248] sm:$0xff] %vm4064_vm3, %v4008_v31  ;;  %v1900_v47 = vcvt.s32.f32 %v5968_v13  ;;  %v3624_v1 = vmul.f32 %v5279_v38, %v3228_v36  ;;  %4772 = vtanh.f32 %v535_v55  ;;  %v4771_v46 = vpop.eup %4770  ;;  %v3817_v10 = vmul.f32 %v5905_v17, %v5866_v23 }
  0xf4   :  { %v2572_v34 = vsub.s32 %v2380_v16, %v2508_v62  ;;  %v1133_v61 = vfloor.f32 %v1069_v58  ;;  %v3818_v0 = vmul.f32 %v3690_v22, %v5899_v6  ;;  %v1229_v7 = vmul.u32 256, %v4478_v21 }
  0xf5   :  { %v1964_v9 = vmul.f32 0.0625, %v1900_v47  ;;  %v5999_v53 = vmul.f32 %v3753_v50, %v3227_v51  ;;  %v1038_v57 = vmul.f32 0.00390625, %v974_v52  ;;  %v3754_v12 = vadd.f32 %v5299_v49, %v3624_v1 }
  0xf6   :  { %v2636_v30 = vmul.u32 16, %v2572_v34  ;;  %v2956_v5 = vcvt.s32.f32 %v2572_v34  ;;  %v1293_v15 = vsub.s32 %v5889_v29, %v1229_v7  ;;  %v1006_v2 = vcvt.s32.f32 %v5991_v24 }
  0xf7   :  { %v2028_v54 = vfloor.f32 %v1964_v9  ;;  %v4198_v6 = vmul.f32 2.0, %v5920_v40  ;;  %v4542_v17 = vcvt.f32.s32 %v1133_v61  ;;  %v422_v51 = vadd.f32 %v421_v44, %v5236_v8  ;;  %v630_v61 = vpop.f32.mrf.mxu3 }
  0xf8   :  { %v2700_v3 = vsub.s32 %v5894_v14, %v2636_v30  ;;  %v3020_v23 = vadd.f32 0.5, %v2956_v5  ;;  %vm1357_vm11 = vcmp.ge.s32.totalorder %v1293_v15, 256  ;;  %vm1549_vm12 = vcmp.lt.s32.totalorder %v1293_v15, 0 }
  0xf9   :  { %v4668_v22 = vcvt.f32.s32 %v2028_v54  ;;  %v4773_v50 = vpop.eup %4772  ;;  %v1421_v11 = vsel %vm1357_vm11, 1, %v4978_v45  ;;  %v1613_v31 = vsel %vm1549_vm12, 1, %v4978_v45  ;;  %4263 = vst.msk [vmem:[%s9270_s5 + $0x30] sm:$0xff] %vm4256_vm10, %v4198_v6  ;;  %v6016_v62 = vsel %vm5367_vm13, %v5920_v40, %v4771_v46  ;;  %v328_v46 = vpop.f32.mrf.mxu0 }
  0xfa   :  { %v2764_v4 = vcvt.s32.f32 %v2700_v3  ;;  %v3084_v20 = vmul.f32 8.0, %v3020_v23  ;;  %v1485_v41 = vadd.s32 %v4478_v21, %v1421_v11  ;;  %v1102_v37 = vfloor.f32 %v1038_v57 }
  0xfb   :  { %v2156_v14 = vmul.u32 16, %v4668_v22  ;;  %v6021_v39 = vmul.f32 %v3754_v12, %v3228_v36  ;;  %v6025_v19 = vsel %vm5386_vm14, %v535_v55, %v4773_v50  ;;  %4774 = vtanh.f32 %v422_v51 }
  0xfc   :  { %v2828_v42 = vadd.f32 0.5, %v2764_v4  ;;  %v3297_v16 = vsel %vm5268_vm2, %v3084_v20, %v5265_v26  ;;  %v3298_v58 = vsel %vm5313_vm8, %v3084_v20, %v5297_v48  ;;  %v1677_v40 = vsub.s32 %v1485_v41, %v1613_v31  ;;  %v537_v41 = vpop.f32.mrf.mxu1 }
  0xfd   :  { %v2220_v52 = vsub.s32 %v5968_v13, %v2156_v14  ;;  %v3561_v21 = vmul.f32 %v5274_v33, %v6016_v62  ;;  %v1261_v34 = vmul.u32 256, %v4542_v17  ;;  %v4230_v1 = vmul.f32 2.0, %v422_v51 }
  0xfe   :  { %v2892_v47 = vmul.f32 8.0, %v2828_v42  ;;  %v1741_v36 = vmul.u32 256, %v1677_v40  ;;  %v3562_v55 = vmul.f32 %v5279_v38, %v6025_v19  ;;  %v631_v23 = vadd.f32 %v630_v61, %v5251_v18 }
  0xff   :  { %vm2284_vm15 = vcmp.ge.s32.totalorder %v2220_v52, 16  ;;  %vm2476_vm1 = vcmp.lt.s32.totalorder %v2220_v52, 0  ;;  %4295 = vst.msk [vmem:[%s9270_s5 + $0x130] sm:$0xff] %vm4256_vm10, %v4230_v1  ;;  %v3691_v15 = vadd.f32 %v5276_v35, %v3561_v21  ;;  %v1325_v3 = vsub.s32 %v5951_v59, %v1261_v34 }
 0x100   :  { %v3429_v9 = vsel %vm5292_vm4, %v2892_v47, %v3297_v16  ;;  %v3430_v7 = vsel %vm5332_vm9, %v2892_v47, %v3298_v58  ;;  %v2348_v30 = vsel %vm2284_vm15, 1, %v4978_v45  ;;  %v2540_v5 = vsel %vm2476_vm1, 1, %v4978_v45  ;;  %v42_v47 = vld [vmem:[%s9267_s0 + $0xb8] sm:$0xff] }
 0x101   :  { %v3945_v44 = vadd.f32 %v3817_v10, %v3429_v9  ;;  %v3946_v57 = vadd.f32 %v3818_v0, %v3430_v7  ;;  %v2412_v54 = vadd.s32 %v4668_v22, %v2348_v30  ;;  %v6046_v12 = vsub.s32 %v5889_v29, %v1741_v36  ;;  %v4775_v50 = vpop.eup %4774  ;;  %4352 = vmatmul.msk.f32.gmra.mxu0 %vm97_vm0, %v42_v47 }
 0x102   :  { %v6052_v6 = vadd.f32 %v328_v46, %v5236_v8  ;;  %v6059_v29 = vadd.f32 %v5299_v49, %v3562_v55  ;;  %v4480_v22 = vcvt.f32.s32 %v1102_v37  ;;  %vm1389_vm5 = vcmp.ge.s32.totalorder %v1325_v3, 256  ;;  %4416 = vmatmul.msk.f32.gmra.mxu1 %vm97_vm0, %v42_v47 }
 0x103   :  { %4074 = vst [vmem:[%s9271_s4 + $0x50] sm:$0xff] %v3945_v44  ;;  %v2604_v10 = vsub.s32 %v2412_v54, %v2540_v5  ;;  %v1869_v0 = vcvt.s32.f32 %v6046_v12  ;;  %vm1581_vm6 = vcmp.lt.s32.totalorder %v1325_v3, 0  ;;  %4776 = vtanh.f32 %v631_v23 }
 0x104   :  { %4075 = vst.msk [vmem:[%s9271_s4 + $0x58] sm:$0xff] %vm4064_vm3, %v3946_v57  ;;  %v1070_v4 = vmul.f32 0.00390625, %v1006_v2  ;;  %v1453_v14 = vsel %vm1389_vm5, 1, %v4978_v45  ;;  %v1645_v16 = vsel %vm1581_vm6, 1, %v4978_v45  ;;  %v6069_v37 = vsel %vm5367_vm13, %v422_v51, %v4775_v50 }
 0x105   :  { %v2668_v20 = vmul.u32 16, %v2604_v10  ;;  %v2988_v11 = vcvt.s32.f32 %v2604_v10  ;;  %v1933_v31 = vmul.f32 0.0625, %v1869_v0  ;;  %v1517_v42 = vadd.s32 %v4542_v17, %v1453_v14  ;;  %v74_v17 = vld [vmem:[%s9267_s0 + $0x1b8] sm:$0xff] }
 0x106   :  { %4778 = vtanh.f32 %v6052_v6  ;;  %v3625_v2 = vmul.f32 %v5274_v33, %v6069_v37  ;;  %v1230_v51 = vmul.u32 256, %v4480_v22  ;;  %v538_v34 = vadd.f32 %v537_v41, %v5251_v18  ;;  %4384 = vmatmul.msk.f32.gmra.mxu2 %vm97_vm0, %v74_v17  ;;  %4448 = vmatmul.msk.f32.gmra.mxu3 %vm97_vm0, %v74_v17  ;;  %v424_v17 = vpop.f32.mrf.mxu2 }
 0x107   :  { %v2732_v58 = vsub.s32 %v5968_v13, %v2668_v20  ;;  %v3052_v52 = vadd.f32 0.5, %v2988_v11  ;;  %v1997_v40 = vfloor.f32 %v1933_v31  ;;  %v1709_v21 = vsub.s32 %v1517_v42, %v1645_v16 }
 0x108   :  { %v1134_v13 = vfloor.f32 %v1070_v4  ;;  %v6085_v61 = vmul.f32 %v3691_v15, %v6016_v62  ;;  %v3755_v7 = vadd.f32 %v5276_v35, %v3625_v2  ;;  %v1294_v30 = vsub.s32 %v5955_v32, %v1230_v51 }
 0x109   :  { %v2796_v1 = vcvt.s32.f32 %v2732_v58  ;;  %v3116_v36 = vmul.f32 8.0, %v3052_v52  ;;  %v4606_v55 = vcvt.f32.s32 %v1997_v40  ;;  %v4777_v46 = vpop.eup %4776  ;;  %v1773_v9 = vmul.u32 256, %v1709_v21 }
 0x10a   :  { %4780 = vtanh.f32 %v538_v34  ;;  %v6094_v54 = vcvt.f32.s32 %v1134_v13  ;;  %v3230_v50 = vsel %vm5386_vm14, %v631_v23, %v4777_v46  ;;  %vm1358_vm7 = vcmp.ge.s32.totalorder %v1294_v30, 256 }
 0x10b   :  { %v2860_v5 = vadd.f32 0.5, %v2796_v1  ;;  %v3361_v44 = vsel %vm5268_vm2, %v3116_v36, %v5265_v26  ;;  %v2125_v57 = vmul.u32 16, %v4606_v55  ;;  %v3362_v15 = vsel %vm5313_vm8, %v3116_v36, %v5297_v48 }
 0x10c   :  { %v4779_v62 = vpop.eup %4778  ;;  %v6100_v3 = vsub.s32 %v5951_v59, %v1773_v9  ;;  %v3626_v4 = vmul.f32 %v5279_v38, %v3230_v50  ;;  %v1422_v20 = vsel %vm1358_vm7, 1, %v4978_v45  ;;  %vm1550_vm11 = vcmp.lt.s32.totalorder %v1294_v30, 0 }
 0x10d   :  { %v2924_v10 = vmul.f32 8.0, %v2860_v5  ;;  %v2189_v0 = vsub.s32 %v6046_v12, %v2125_v57  ;;  %v1486_v31 = vadd.s32 %v4480_v22, %v1422_v20  ;;  %v6111_v59 = vsel %vm5367_vm13, %v6052_v6, %v4779_v62 }
 0x10e   :  { %v1901_v11 = vcvt.s32.f32 %v6100_v3  ;;  %v3756_v2 = vadd.f32 %v5299_v49, %v3626_v4  ;;  %v1614_v47 = vsel %vm1550_vm11, 1, %v4978_v45  ;;  %v4199_v21 = vmul.f32 2.0, %v6052_v6 }
 0x10f   :  { %v3493_v23 = vsel %vm5292_vm4, %v2924_v10, %v3361_v44  ;;  %v3494_v14 = vsel %vm5332_vm9, %v2924_v10, %v3362_v15  ;;  %vm2253_vm12 = vcmp.ge.s32.totalorder %v2189_v0, 16  ;;  %vm2445_vm15 = vcmp.lt.s32.totalorder %v2189_v0, 0  ;;  %v633_v0 = vpop.f32.mrf.mxu3 }
 0x110   :  { %v4781_v41 = vpop.eup %4780  ;;  %v4009_v42 = vadd.f32 %v5999_v53, %v3493_v23  ;;  %v4010_v16 = vadd.f32 %v6021_v39, %v3494_v14  ;;  %v2317_v22 = vsel %vm2253_vm12, 1, %v4978_v45  ;;  %v2509_v58 = vsel %vm2445_vm15, 1, %v4978_v45  ;;  %4264 = vst.msk [vmem:[%s9270_s5 + $0x38] sm:$0xff] %vm4256_vm10, %v4199_v21 }
 0x111   :  { %v2381_v52 = vadd.s32 %v4606_v55, %v2317_v22  ;;  %v1965_v40 = vmul.f32 0.0625, %v1901_v11  ;;  %v6128_v53 = vmul.f32 %v6059_v29, %v6025_v19  ;;  %v1678_v39 = vsub.s32 %v1486_v31, %v1614_v47 }
 0x112   :  { %4138 = vst [vmem:[%s9271_s4 + $0x250] sm:$0xff] %v4009_v42  ;;  %v6132_v51 = vadd.s32 64, %v5113_v25  ;;  %v3563_v36 = vmul.f32 %v5274_v33, %v6111_v59  ;;  %v3168_v19 = vsel %vm5386_vm14, %v538_v34, %v4781_v41  ;;  %v6143_v29 = vmul.f32 %v3755_v7, %v6069_v37 }
 0x113   :  { %4139 = vst.msk [vmem:[%s9271_s4 + $0x258] sm:$0xff] %vm4064_vm3, %v4010_v16  ;;  %v2573_v13 = vsub.s32 %v2381_v52, %v2509_v58  ;;  %v2029_v1 = vfloor.f32 %v1965_v40  ;;  %v1742_v6 = vmul.u32 256, %v1678_v39  ;;  %v425_v55 = vadd.f32 %v424_v17, %v5236_v8 }
 0x114   :  { %v1262_v46 = vmul.u32 256, %v6094_v54  ;;  %v6151_v44 = vmul.f32 %v3756_v2, %v3230_v50  ;;  %v3564_v37 = vmul.f32 %v5279_v38, %v3168_v19  ;;  %v3693_v10 = vadd.f32 %v5276_v35, %v3563_v36 }
 0x115   :  { %v2637_v9 = vmul.u32 16, %v2573_v13  ;;  %v2957_v30 = vcvt.s32.f32 %v2573_v13  ;;  %v4670_v5 = vcvt.f32.s32 %v2029_v1  ;;  %v6154_v34 = vsub.s32 %v5955_v32, %v1742_v6 }
 0x116   :  { %4782 = vtanh.f32 %v425_v55  ;;  %v1326_v7 = vsub.s32 %v5991_v24, %v1262_v46  ;;  %v4231_v50 = vmul.f32 2.0, %v425_v55  ;;  %v634_v41 = vadd.f32 %v633_v0, %v5251_v18 }
 0x117   :  { %v2701_v57 = vsub.s32 %v6046_v12, %v2637_v9  ;;  %v3021_v62 = vadd.f32 0.5, %v2957_v30  ;;  %v2157_v15 = vmul.u32 16, %v4670_v5  ;;  %v1870_v4 = vcvt.s32.f32 %v6154_v34  ;;  %v331_v30 = vpop.f32.mrf.mxu0 }
 0x118   :  { %vm1390_vm1 = vcmp.ge.s32.totalorder %v1326_v7, 256  ;;  %vm1582_vm5 = vcmp.lt.s32.totalorder %v1326_v7, 0  ;;  %4296 = vst.msk [vmem:[%s9270_s5 + $0x138] sm:$0xff] %vm4256_vm10, %v4231_v50  ;;  %v3694_v39 = vadd.f32 %v5299_v49, %v3564_v37  ;;  %4784 = vtanh.f32 %v634_v41 }
 0x119   :  { %v2765_v20 = vcvt.s32.f32 %v2701_v57  ;;  %v3085_v32 = vmul.f32 8.0, %v3021_v62  ;;  %v2221_v11 = vsub.s32 %v6100_v3, %v2157_v15  ;;  %v1454_v31 = vsel %vm1390_vm1, 1, %v4978_v45 }
 0x11a   :  { %v1934_v23 = vmul.f32 0.0625, %v1870_v4  ;;  %v1518_v14 = vadd.s32 %v6094_v54, %v1454_v31  ;;  %v1646_v12 = vsel %vm1582_vm5, 1, %v4978_v45  ;;  %v6188_v9 = vmul.f32 %v3693_v10, %v6111_v59 }
 0x11b   :  { %v2829_v42 = vadd.f32 0.5, %v2765_v20  ;;  %v3299_v16 = vsel %vm5268_vm2, %v3085_v32, %v5265_v26  ;;  %v3300_v22 = vsel %vm5313_vm8, %v3085_v32, %v5297_v48  ;;  %vm2285_vm6 = vcmp.ge.s32.totalorder %v2221_v11, 16 }
 0x11c   :  { %v4783_v54 = vpop.eup %4782  ;;  %v2349_v58 = vsel %vm2285_vm6, 1, %v4978_v45  ;;  %vm2477_vm7 = vcmp.lt.s32.totalorder %v2221_v11, 0  ;;  %v1998_v52 = vfloor.f32 %v1934_v23  ;;  %v1710_v40 = vsub.s32 %v1518_v14, %v1646_v12 }
 0x11d   :  { %v2893_v2 = vmul.f32 8.0, %v2829_v42  ;;  %v2413_v47 = vadd.s32 %v4670_v5, %v2349_v58  ;;  %v2541_v17 = vsel %vm2477_vm7, 1, %v4978_v45  ;;  %v6181_v1 = vsel %vm5367_vm13, %v425_v55, %v4783_v54  ;;  %v540_v54 = vpop.f32.mrf.mxu1 }
 0x11e   :  { %v4608_v21 = vcvt.f32.s32 %v1998_v52  ;;  %v1774_v13 = vmul.u32 256, %v1710_v40  ;;  %v6195_v15 = vmul.f32 %v3694_v39, %v3168_v19  ;;  %v3627_v0 = vmul.f32 %v5274_v33, %v6181_v1  ;;  %v4785_v20 = vpop.eup %4784 }
 0x11f   :  { %v3431_v36 = vsel %vm5292_vm4, %v2893_v2, %v3299_v16  ;;  %v3432_v6 = vsel %vm5332_vm9, %v2893_v2, %v3300_v22  ;;  %v2605_v46 = vsub.s32 %v2413_v47, %v2541_v17  ;;  %v6214_v4 = vadd.s32 320, %v5113_v25 }
 0x120   :  { %v3947_v5 = vadd.f32 %v6085_v61, %v3431_v36  ;;  %v3948_v37 = vadd.f32 %v6128_v53, %v3432_v6  ;;  %v2126_v7 = vmul.u32 16, %v4608_v21  ;;  %v6193_v55 = vsub.s32 %v5991_v24, %v1774_v13  ;;  %v43_v13 = vld [vmem:[%s9267_s0 + $0xc0] sm:$0xff] }
 0x121   :  { %v2669_v57 = vmul.u32 16, %v2605_v46  ;;  %v2989_v62 = vcvt.s32.f32 %v2605_v46  ;;  %v6205_v53 = vadd.f32 %v331_v30, %v5236_v8  ;;  %v975_v24 = vcvt.s32.f32 %v6132_v51  ;;  %v75_v36 = vld [vmem:[%s9267_s0 + $0x1c0] sm:$0xff]  ;;  %4353 = vmatmul.msk.f32.gmra.mxu0 %vm97_vm0, %v43_v13  ;;  %4417 = vmatmul.msk.f32.gmra.mxu1 %vm97_vm0, %v43_v13 }
 0x122   :  { %4076 = vst [vmem:[%s9271_s4 + $0x60] sm:$0xff] %v3947_v5  ;;  %v2190_v59 = vsub.s32 %v6154_v34, %v2126_v7  ;;  %v1902_v61 = vcvt.s32.f32 %v6193_v55  ;;  %v6217_v50 = vadd.s32 72, %v5113_v25  ;;  %v6223_v16 = vsel %vm5386_vm14, %v634_v41, %v4785_v20  ;;  %4385 = vmatmul.msk.f32.gmra.mxu2 %vm97_vm0, %v75_v36  ;;  %4449 = vmatmul.msk.f32.gmra.mxu3 %vm97_vm0, %v75_v36 }
 0x123   :  { %4077 = vst.msk [vmem:[%s9271_s4 + $0x68] sm:$0xff] %vm4064_vm3, %v3948_v37  ;;  %v2733_v19 = vsub.s32 %v6100_v3, %v2669_v57  ;;  %v3053_v10 = vadd.f32 0.5, %v2989_v62  ;;  %v1039_v11 = vmul.f32 0.00390625, %v975_v24  ;;  %4786 = vtanh.f32 %v6205_v53 }
 0x124   :  { %vm2254_vm11 = vcmp.ge.s32.totalorder %v2190_v59, 16  ;;  %vm2446_vm12 = vcmp.lt.s32.totalorder %v2190_v59, 0  ;;  %v1966_v32 = vmul.f32 0.0625, %v1902_v61  ;;  %v541_v39 = vadd.f32 %v540_v54, %v5251_v18 }
 0x125   :  { %v2797_v31 = vcvt.s32.f32 %v2733_v19  ;;  %v3117_v23 = vmul.f32 8.0, %v3053_v10  ;;  %v2318_v14 = vsel %vm2254_vm11, 1, %v4978_v45  ;;  %v2510_v12 = vsel %vm2446_vm12, 1, %v4978_v45 }
 0x126   :  { %v2382_v42 = vadd.s32 %v4608_v21, %v2318_v14  ;;  %v2030_v3 = vfloor.f32 %v1966_v32  ;;  %v1103_v22 = vfloor.f32 %v1039_v11  ;;  %v3628_v21 = vmul.f32 %v5279_v38, %v6223_v16 }
 0x127   :  { %v2861_v58 = vadd.f32 0.5, %v2797_v31  ;;  %v3363_v52 = vsel %vm5268_vm2, %v3117_v23, %v5265_v26  ;;  %v3364_v40 = vsel %vm5313_vm8, %v3117_v23, %v5297_v48  ;;  %v1007_v6 = vcvt.s32.f32 %v6214_v4  ;;  %v427_v31 = vpop.f32.mrf.mxu2 }
 0x128   :  { %v2574_v2 = vsub.s32 %v2382_v42, %v2510_v12  ;;  %v4672_v47 = vcvt.f32.s32 %v2030_v3  ;;  %v4482_v17 = vcvt.f32.s32 %v1103_v22  ;;  %v976_v46 = vcvt.s32.f32 %v6217_v50 }
 0x129   :  { %v2925_v41 = vmul.f32 8.0, %v2861_v58  ;;  %v3757_v59 = vadd.f32 %v5276_v35, %v3627_v0  ;;  %4788 = vtanh.f32 %v541_v39  ;;  %v4787_v20 = vpop.eup %4786  ;;  %v6257_v11 = vadd.f32 %v5299_v49, %v3628_v21 }
 0x12a   :  { %v2638_v30 = vmul.u32 16, %v2574_v2  ;;  %v2958_v5 = vcvt.s32.f32 %v2574_v2  ;;  %v2158_v37 = vmul.u32 16, %v4672_v47  ;;  %v1231_v7 = vmul.u32 256, %v4482_v17 }
 0x12b   :  { %v3495_v57 = vsel %vm5292_vm4, %v2925_v41, %v3363_v52  ;;  %v3496_v62 = vsel %vm5332_vm9, %v2925_v41, %v3364_v40  ;;  %v1071_v23 = vmul.f32 0.00390625, %v1007_v6  ;;  %v3169_v13 = vsel %vm5367_vm13, %v6205_v53, %v4787_v20 }
 0x12c   :  { %v4011_v61 = vadd.f32 %v6143_v29, %v3495_v57  ;;  %v4012_v24 = vadd.f32 %v6151_v44, %v3496_v62  ;;  %v2702_v19 = vsub.s32 %v6154_v34, %v2638_v30  ;;  %v3022_v10 = vadd.f32 0.5, %v2958_v5 }
 0x12d   :  { %v2222_v32 = vsub.s32 %v6193_v55, %v2158_v37  ;;  %v1295_v0 = vsub.s32 %v6132_v51, %v1231_v7  ;;  %v6264_v44 = vadd.f32 %v427_v31, %v5236_v8  ;;  %v6266_v34 = vmul.f32 0.00390625, %v976_v46 }
 0x12e   :  { %4140 = vst [vmem:[%s9271_s4 + $0x260] sm:$0xff] %v4011_v61  ;;  %v2766_v29 = vcvt.s32.f32 %v2702_v19  ;;  %v3086_v14 = vmul.f32 8.0, %v3022_v10  ;;  %v4200_v36 = vmul.f32 2.0, %v6205_v53  ;;  %v3565_v46 = vmul.f32 %v5274_v33, %v3169_v13  ;;  %v636_v53 = vpop.f32.mrf.mxu3 }
 0x12f   :  { %4141 = vst.msk [vmem:[%s9271_s4 + $0x268] sm:$0xff] %vm4064_vm3, %v4012_v24  ;;  %vm2286_vm15 = vcmp.ge.s32.totalorder %v2222_v32, 16  ;;  %vm2478_vm1 = vcmp.lt.s32.totalorder %v2222_v32, 0  ;;  %vm1359_vm5 = vcmp.ge.s32.totalorder %v1295_v0, 256  ;;  %vm1551_vm6 = vcmp.lt.s32.totalorder %v1295_v0, 0  ;;  %v4789_v54 = vpop.eup %4788  ;;  %v334_v0 = vpop.f32.mrf.mxu0 }
 0x130   :  { %v2830_v12 = vadd.f32 0.5, %v2766_v29  ;;  %v3301_v42 = vsel %vm5268_vm2, %v3086_v14, %v5265_v26  ;;  %v3302_v3 = vsel %vm5313_vm8, %v3086_v14, %v5297_v48  ;;  %v2350_v22 = vsel %vm2286_vm15, 1, %v4978_v45  ;;  %4265 = vst.msk [vmem:[%s9270_s5 + $0x40] sm:$0xff] %vm4256_vm10, %v4200_v36 }
 0x131   :  { %v2414_v58 = vadd.s32 %v4672_v47, %v2350_v22  ;;  %v2542_v52 = vsel %vm2478_vm1, 1, %v4978_v45  ;;  %v1423_v40 = vsel %vm1359_vm5, 1, %v4978_v45  ;;  %v1615_v2 = vsel %vm1551_vm6, 1, %v4978_v45 }
 0x132   :  { %v2894_v41 = vmul.f32 8.0, %v2830_v12  ;;  %v1487_v21 = vadd.s32 %v4482_v17, %v1423_v40  ;;  %v6289_v47 = vsel %vm5386_vm14, %v541_v39, %v4789_v54  ;;  %v6292_v30 = vadd.s32 328, %v5113_v25 }
 0x133   :  { %v2606_v6 = vsub.s32 %v2414_v58, %v2542_v52  ;;  %4790 = vtanh.f32 %v6264_v44  ;;  %v3695_v24 = vadd.f32 %v5276_v35, %v3565_v46  ;;  %v3566_v19 = vmul.f32 %v5279_v38, %v6289_v47 }
 0x134   :  { %v3433_v5 = vsel %vm5292_vm4, %v2894_v41, %v3301_v42  ;;  %v3434_v17 = vsel %vm5332_vm9, %v2894_v41, %v3302_v3  ;;  %v1679_v37 = vsub.s32 %v1487_v21, %v1615_v2  ;;  %v1135_v10 = vfloor.f32 %v1071_v23 }
 0x135   :  { %v3949_v39 = vadd.f32 %v6188_v9, %v3433_v5  ;;  %v3950_v7 = vadd.f32 %v6195_v15, %v3434_v17  ;;  %v2670_v57 = vmul.u32 16, %v2606_v6  ;;  %v2990_v62 = vcvt.s32.f32 %v2606_v6  ;;  %v543_v6 = vpop.f32.mrf.mxu1 }
 0x136   :  { %v1743_v61 = vmul.u32 256, %v1679_v37  ;;  %v4232_v9 = vmul.f32 2.0, %v6264_v44  ;;  %v637_v15 = vadd.f32 %v636_v53, %v5251_v18  ;;  %v3885_v31 = vmul.f32 %v3757_v59, %v6181_v1 }
 0x137   :  { %4078 = vst [vmem:[%s9271_s4 + $0x70] sm:$0xff] %v3949_v39  ;;  %v2734_v20 = vsub.s32 %v6193_v55, %v2670_v57  ;;  %v3054_v32 = vadd.f32 0.5, %v2990_v62  ;;  %v4546_v29 = vcvt.f32.s32 %v1135_v10  ;;  %v6327_v55 = vadd.f32 %v334_v0, %v5236_v8 }
 0x138   :  { %4079 = vst.msk [vmem:[%s9271_s4 + $0x78] sm:$0xff] %vm4064_vm3, %v3950_v7  ;;  %v6320_v23 = vsub.s32 %v6132_v51, %v1743_v61  ;;  %4792 = vtanh.f32 %v637_v15  ;;  %v1104_v1 = vfloor.f32 %v6266_v34  ;;  %v1008_v51 = vcvt.s32.f32 %v6292_v30  ;;  %v76_v61 = vld [vmem:[%s9267_s0 + $0x1c8] sm:$0xff] }
 0x139   :  { %v2798_v14 = vcvt.s32.f32 %v2734_v20  ;;  %v3118_v12 = vmul.f32 8.0, %v3054_v32  ;;  %4297 = vst.msk [vmem:[%s9270_s5 + $0x140] sm:$0xff] %vm4256_vm10, %v4232_v9  ;;  %v4791_v42 = vpop.eup %4790  ;;  %v1263_v22 = vmul.u32 256, %v4546_v29  ;;  %v3886_v54 = vmul.f32 %v6257_v11, %v6223_v16  ;;  %4386 = vmatmul.msk.f32.gmra.mxu2 %vm97_vm0, %v76_v61  ;;  %4450 = vmatmul.msk.f32.gmra.mxu3 %vm97_vm0, %v76_v61 }
 0x13a   :  { %v1871_v3 = vcvt.s32.f32 %v6320_v23  ;;  %v6334_v58 = vmul.f32 %v3695_v24, %v3169_v13  ;;  %v3696_v52 = vadd.f32 %v5299_v49, %v3566_v19  ;;  %4794 = vtanh.f32 %v6327_v55 }
 0x13b   :  { %v2862_v59 = vadd.f32 0.5, %v2798_v14  ;;  %v3365_v40 = vsel %vm5268_vm2, %v3118_v12, %v5265_v26  ;;  %v3366_v2 = vsel %vm5313_vm8, %v3118_v12, %v5297_v48  ;;  %v1327_v34 = vsub.s32 %v6214_v4, %v1263_v22 }
 0x13c   :  { %v1935_v41 = vmul.f32 0.0625, %v1871_v3  ;;  %v4484_v36 = vcvt.f32.s32 %v1104_v1  ;;  %v1072_v16 = vmul.f32 0.00390625, %v1008_v51  ;;  %v6348_v13 = vsel %vm5367_vm13, %v6264_v44, %v4791_v42  ;;  %v44_v44 = vld [vmem:[%s9267_s0 + $0xc8] sm:$0xff]  ;;  %v430_v51 = vpop.f32.mrf.mxu2 }
 0x13d   :  { %v2926_v21 = vmul.f32 8.0, %v2862_v59  ;;  %vm1391_vm7 = vcmp.ge.s32.totalorder %v1327_v34, 256  ;;  %vm1583_vm11 = vcmp.lt.s32.totalorder %v1327_v34, 0  ;;  %v3629_v24 = vmul.f32 %v5274_v33, %v6348_v13  ;;  %4354 = vmatmul.msk.f32.gmra.mxu0 %vm97_vm0, %v44_v44  ;;  %4418 = vmatmul.msk.f32.gmra.mxu1 %vm97_vm0, %v44_v44 }
 0x13e   :  { %v1999_v11 = vfloor.f32 %v1935_v41  ;;  %v4793_v46 = vpop.eup %4792  ;;  %v1455_v37 = vsel %vm1391_vm7, 1, %v4978_v45  ;;  %v1647_v53 = vsel %vm1583_vm11, 1, %v4978_v45  ;;  %v1232_v10 = vmul.u32 256, %v4484_v36 }
 0x13f   :  { %v3497_v5 = vsel %vm5292_vm4, %v2926_v21, %v3365_v40  ;;  %v3498_v17 = vsel %vm5332_vm9, %v2926_v21, %v3366_v2  ;;  %v1519_v62 = vadd.s32 %v4546_v29, %v1455_v37  ;;  %v3234_v19 = vsel %vm5386_vm14, %v637_v15, %v4793_v46 }
 0x140   :  { %v4013_v39 = vadd.f32 %v3885_v31, %v3497_v5  ;;  %v4014_v7 = vadd.f32 %v3886_v54, %v3498_v17  ;;  %v4610_v57 = vcvt.f32.s32 %v1999_v11  ;;  %v544_v20 = vadd.f32 %v543_v6, %v5251_v18  ;;  %v4795_v31 = vpop.eup %4794 }
 0x141   :  { %v1711_v9 = vsub.s32 %v1519_v62, %v1647_v53  ;;  %v1136_v0 = vfloor.f32 %v1072_v16  ;;  %v6375_v15 = vadd.s32 80, %v5113_v25  ;;  %v6382_v29 = vmul.f32 %v3696_v52, %v6289_v47 }
 0x142   :  { %4142 = vst [vmem:[%s9271_s4 + $0x270] sm:$0xff] %v4013_v39  ;;  %v2127_v32 = vmul.u32 16, %v4610_v57  ;;  %v1296_v14 = vsub.s32 %v6217_v50, %v1232_v10  ;;  %4796 = vtanh.f32 %v544_v20  ;;  %v6386_v12 = vadd.s32 336, %v5113_v25 }
 0x143   :  { %4143 = vst.msk [vmem:[%s9271_s4 + $0x278] sm:$0xff] %vm4064_vm3, %v4014_v7  ;;  %v1775_v3 = vmul.u32 256, %v1711_v9  ;;  %v3759_v22 = vadd.f32 %v5276_v35, %v3629_v24  ;;  %v3630_v1 = vmul.f32 %v5279_v38, %v3234_v19  ;;  %v431_v59 = vadd.f32 %v430_v51, %v5236_v8  ;;  %v337_v51 = vpop.f32.mrf.mxu0 }
 0x144   :  { %v2191_v42 = vsub.s32 %v6320_v23, %v2127_v32  ;;  %vm1360_vm12 = vcmp.ge.s32.totalorder %v1296_v14, 256  ;;  %vm1552_vm15 = vcmp.lt.s32.totalorder %v1296_v14, 0  ;;  %v4548_v47 = vcvt.f32.s32 %v1136_v0 }
 0x145   :  { %v6393_v54 = vsub.s32 %v6214_v4, %v1775_v3  ;;  %v977_v52 = vcvt.s32.f32 %v6375_v15  ;;  %v1424_v41 = vsel %vm1360_vm12, 1, %v4978_v45  ;;  %v1616_v34 = vsel %vm1552_vm15, 1, %v4978_v45 }
 0x146   :  { %vm2255_vm1 = vcmp.ge.s32.totalorder %v2191_v42, 16  ;;  %vm2447_vm5 = vcmp.lt.s32.totalorder %v2191_v42, 0  ;;  %v1488_v11 = vadd.s32 %v4484_v36, %v1424_v41  ;;  %v6404_v6 = vsel %vm5367_vm13, %v6327_v55, %v4795_v31 }
 0x147   :  { %v2319_v40 = vsel %vm2255_vm1, 1, %v4978_v45  ;;  %v2511_v2 = vsel %vm2447_vm5, 1, %v4978_v45  ;;  %v1903_v16 = vcvt.s32.f32 %v6393_v54  ;;  %v3760_v46 = vadd.f32 %v5299_v49, %v3630_v1 }
 0x148   :  { %v2383_v21 = vadd.s32 %v4610_v57, %v2319_v40  ;;  %v4797_v4 = vpop.eup %4796  ;;  %v4201_v5 = vmul.f32 2.0, %v6327_v55  ;;  %4798 = vtanh.f32 %v431_v59  ;;  %v1264_v17 = vmul.u32 256, %v4548_v47 }
 0x149   :  { %v1967_v53 = vmul.f32 0.0625, %v1903_v16  ;;  %v1680_v39 = vsub.s32 %v1488_v11, %v1616_v34  ;;  %v6410_v7 = vsel %vm5386_vm14, %v544_v20, %v4797_v4  ;;  %v6413_v36 = vmul.f32 %v3759_v22, %v6348_v13  ;;  %v639_v20 = vpop.f32.mrf.mxu3 }
 0x14a   :  { %v2575_v37 = vsub.s32 %v2383_v21, %v2511_v2  ;;  %v3567_v57 = vmul.f32 %v5274_v33, %v6404_v6  ;;  %4266 = vst.msk [vmem:[%s9270_s5 + $0x48] sm:$0xff] %vm4256_vm10, %v4201_v5  ;;  %v1328_v55 = vsub.s32 %v6292_v30, %v1264_v17  ;;  %v4233_v62 = vmul.f32 2.0, %v431_v59 }
 0x14b   :  { %v2031_v24 = vfloor.f32 %v1967_v53  ;;  %v1744_v10 = vmul.u32 256, %v1680_v39  ;;  %v6422_v32 = vmul.f32 %v3760_v46, %v3234_v19  ;;  %v3568_v13 = vmul.f32 %v5279_v38, %v6410_v7 }
 0x14c   :  { %v2639_v44 = vmul.u32 16, %v2575_v37  ;;  %v2959_v61 = vcvt.s32.f32 %v2575_v37  ;;  %vm1392_vm6 = vcmp.ge.s32.totalorder %v1328_v55, 256  ;;  %vm1584_vm7 = vcmp.lt.s32.totalorder %v1328_v55, 0  ;;  %4298 = vst.msk [vmem:[%s9270_s5 + $0x148] sm:$0xff] %vm4256_vm10, %v4233_v62 }
 0x14d   :  { %v4674_v31 = vcvt.f32.s32 %v2031_v24  ;;  %v6432_v14 = vsub.s32 %v6217_v50, %v1744_v10  ;;  %v3697_v19 = vadd.f32 %v5276_v35, %v3567_v57  ;;  %v1456_v3 = vsel %vm1392_vm6, 1, %v4978_v45 }
 0x14e   :  { %v2703_v9 = vsub.s32 %v6320_v23, %v2639_v44  ;;  %v3023_v0 = vadd.f32 0.5, %v2959_v61  ;;  %v4799_v42 = vpop.eup %4798  ;;  %v1648_v22 = vsel %vm1584_vm7, 1, %v4978_v45  ;;  %v640_v1 = vadd.f32 %v639_v20, %v5251_v18 }
 0x14f   :  { %v2159_v41 = vmul.u32 16, %v4674_v31  ;;  %v1872_v23 = vcvt.s32.f32 %v6432_v14  ;;  %v3698_v34 = vadd.f32 %v5299_v49, %v3568_v13  ;;  %v1520_v21 = vadd.s32 %v4548_v47, %v1456_v3 }
 0x150   :  { %v2767_v40 = vcvt.s32.f32 %v2703_v9  ;;  %v3087_v2 = vmul.f32 8.0, %v3023_v0  ;;  %v3235_v50 = vsel %vm5367_vm13, %v431_v59, %v4799_v42  ;;  %4800 = vtanh.f32 %v640_v1 }
 0x151   :  { %v2223_v4 = vsub.s32 %v6393_v54, %v2159_v41  ;;  %v6447_v46 = vadd.f32 %v337_v51, %v5236_v8  ;;  %v1936_v17 = vmul.f32 0.0625, %v1872_v23  ;;  %v1712_v47 = vsub.s32 %v1520_v21, %v1648_v22  ;;  %v546_v51 = vpop.f32.mrf.mxu1 }
 0x152   :  { %v2831_v16 = vadd.f32 0.5, %v2767_v40  ;;  %v3303_v11 = vsel %vm5268_vm2, %v3087_v2, %v5265_v26  ;;  %v3304_v5 = vsel %vm5313_vm8, %v3087_v2, %v5297_v48  ;;  %v3631_v37 = vmul.f32 %v5274_v33, %v3235_v50 }
 0x153   :  { %vm2287_vm11 = vcmp.ge.s32.totalorder %v2223_v4, 16  ;;  %vm2479_vm12 = vcmp.lt.s32.totalorder %v2223_v4, 0  ;;  %v1041_v53 = vmul.f32 0.00390625, %v977_v52  ;;  %v2000_v55 = vfloor.f32 %v1936_v17  ;;  %v77_v4 = vld [vmem:[%s9267_s0 + $0x1d0] sm:$0xff] }
 0x154   :  { %v2895_v59 = vmul.f32 8.0, %v2831_v16  ;;  %v2351_v39 = vsel %vm2287_vm11, 1, %v4978_v45  ;;  %v2543_v57 = vsel %vm2479_vm12, 1, %v4978_v45  ;;  %v1776_v62 = vmul.u32 256, %v1712_v47  ;;  %4387 = vmatmul.msk.f32.gmra.mxu2 %vm97_vm0, %v77_v4  ;;  %4451 = vmatmul.msk.f32.gmra.mxu3 %vm97_vm0, %v77_v4  ;;  %v433_v4 = vpop.f32.mrf.mxu2 }
 0x155   :  { %v2415_v24 = vadd.s32 %v4674_v31, %v2351_v39  ;;  %v3761_v10 = vadd.f32 %v5276_v35, %v3631_v37  ;;  %v4612_v9 = vcvt.f32.s32 %v2000_v55  ;;  %v6466_v3 = vmul.f32 %v3697_v19, %v6404_v6 }
 0x156   :  { %v3435_v44 = vsel %vm5292_vm4, %v2895_v59, %v3303_v11  ;;  %v3436_v61 = vsel %vm5332_vm9, %v2895_v59, %v3304_v5  ;;  %v4801_v20 = vpop.eup %4800  ;;  %v6463_v0 = vsub.s32 %v6292_v30, %v1776_v62  ;;  %v1105_v31 = vfloor.f32 %v1041_v53  ;;  %v45_v11 = vld [vmem:[%s9267_s0 + $0xd0] sm:$0xff] }
 0x157   :  { %v3951_v13 = vadd.f32 %v6334_v58, %v3435_v44  ;;  %v3952_v52 = vadd.f32 %v6382_v29, %v3436_v61  ;;  %v2607_v42 = vsub.s32 %v2415_v24, %v2543_v57  ;;  %v6470_v22 = vsel %vm5386_vm14, %v640_v1, %v4801_v20  ;;  %4355 = vmatmul.msk.f32.gmra.mxu0 %vm97_vm0, %v45_v11 }
 0x158   :  { %v2128_v58 = vmul.u32 16, %v4612_v9  ;;  %v6476_v29 = vmul.f32 %v3698_v34, %v6410_v7  ;;  %v1904_v30 = vcvt.s32.f32 %v6463_v0  ;;  %4802 = vtanh.f32 %v6447_v46  ;;  %4419 = vmatmul.msk.f32.gmra.mxu1 %vm97_vm0, %v45_v11 }
 0x159   :  { %4080 = vst [vmem:[%s9271_s4 + $0x80] sm:$0xff] %v3951_v13  ;;  %v2671_v6 = vmul.u32 16, %v2607_v42  ;;  %v2991_v19 = vcvt.s32.f32 %v2607_v42  ;;  %v4486_v1 = vcvt.f32.s32 %v1105_v31  ;;  %v547_v40 = vadd.f32 %v546_v51, %v5251_v18 }
 0x15a   :  { %4081 = vst.msk [vmem:[%s9271_s4 + $0x88] sm:$0xff] %vm4064_vm3, %v3952_v52  ;;  %v2192_v2 = vsub.s32 %v6432_v14, %v2128_v58  ;;  %v1968_v41 = vmul.f32 0.0625, %v1904_v30  ;;  %v6486_v7 = vmul.f32 %v3761_v10, %v3235_v50  ;;  %v3632_v23 = vmul.f32 %v5279_v38, %v6470_v22 }
 0x15b   :  { %v2735_v34 = vsub.s32 %v6393_v54, %v2671_v6  ;;  %v3055_v21 = vadd.f32 0.5, %v2991_v19  ;;  %v1233_v16 = vmul.u32 256, %v4486_v1  ;;  %v1009_v5 = vcvt.s32.f32 %v6386_v12 }
 0x15c   :  { %vm2256_vm15 = vcmp.ge.s32.totalorder %v2192_v2, 16  ;;  %vm2448_vm1 = vcmp.lt.s32.totalorder %v2192_v2, 0  ;;  %v2032_v50 = vfloor.f32 %v1968_v41  ;;  %4804 = vtanh.f32 %v547_v40 }
 0x15d   :  { %v2799_v54 = vcvt.s32.f32 %v2735_v34  ;;  %v3119_v17 = vmul.f32 8.0, %v3055_v21  ;;  %v2320_v47 = vsel %vm2256_vm15, 1, %v4978_v45  ;;  %v2512_v37 = vsel %vm2448_vm1, 1, %v4978_v45 }
 0x15e   :  { %v4803_v59 = vpop.eup %4802  ;;  %v2384_v53 = vadd.s32 %v4612_v9, %v2320_v47  ;;  %v4676_v39 = vcvt.f32.s32 %v2032_v50  ;;  %v3762_v57 = vadd.f32 %v5299_v49, %v3632_v23  ;;  %v1297_v55 = vsub.s32 %v6375_v15, %v1233_v16 }
 0x15f   :  { %v2863_v62 = vadd.f32 0.5, %v2799_v54  ;;  %v3367_v44 = vsel %vm5268_vm2, %v3119_v17, %v5265_v26  ;;  %v3368_v61 = vsel %vm5313_vm8, %v3119_v17, %v5297_v48  ;;  %v1073_v24 = vmul.f32 0.00390625, %v1009_v5 }
 0x160   :  { %v2576_v10 = vsub.s32 %v2384_v53, %v2512_v37  ;;  %v2160_v20 = vmul.u32 16, %v4676_v39  ;;  %vm1361_vm5 = vcmp.ge.s32.totalorder %v1297_v55, 256  ;;  %vm1553_vm6 = vcmp.lt.s32.totalorder %v1297_v55, 0 }
 0x161   :  { %v2927_v13 = vmul.f32 8.0, %v2863_v62  ;;  %v1425_v52 = vsel %vm1361_vm5, 1, %v4978_v45  ;;  %v1617_v9 = vsel %vm1553_vm6, 1, %v4978_v45  ;;  %v4202_v42 = vmul.f32 2.0, %v6447_v46  ;;  %v642_v62 = vpop.f32.mrf.mxu3 }
 0x162   :  { %v4805_v31 = vpop.eup %4804  ;;  %v2640_v58 = vmul.u32 16, %v2576_v10  ;;  %v2960_v30 = vcvt.s32.f32 %v2576_v10  ;;  %v2224_v51 = vsub.s32 %v6463_v0, %v2160_v20  ;;  %v1489_v6 = vadd.s32 %v4486_v1, %v1425_v52 }
 0x163   :  { %v3499_v19 = vsel %vm5292_vm4, %v2927_v13, %v3367_v44  ;;  %v3500_v2 = vsel %vm5332_vm9, %v2927_v13, %v3368_v61  ;;  %v6523_v41 = vsel %vm5367_vm13, %v6447_v46, %v4803_v59  ;;  %4267 = vst.msk [vmem:[%s9270_s5 + $0x50] sm:$0xff] %vm4256_vm10, %v4202_v42  ;;  %v1137_v23 = vfloor.f32 %v1073_v24 }
 0x164   :  { %v4015_v34 = vadd.f32 %v6413_v36, %v3499_v19  ;;  %v4016_v1 = vadd.f32 %v6422_v32, %v3500_v2  ;;  %v2704_v21 = vsub.s32 %v6432_v14, %v2640_v58  ;;  %v3024_v16 = vadd.f32 0.5, %v2960_v30  ;;  %v340_v58 = vpop.f32.mrf.mxu0 }
 0x165   :  { %vm2288_vm7 = vcmp.ge.s32.totalorder %v2224_v51, 16  ;;  %vm2480_vm11 = vcmp.lt.s32.totalorder %v2224_v51, 0  ;;  %v1681_v11 = vsub.s32 %v1489_v6, %v1617_v9  ;;  %v6534_v46 = vsel %vm5386_vm14, %v547_v40, %v4805_v31 }
 0x166   :  { %4144 = vst [vmem:[%s9271_s4 + $0x280] sm:$0xff] %v4015_v34  ;;  %v2768_v5 = vcvt.s32.f32 %v2704_v21  ;;  %v3088_v50 = vmul.f32 8.0, %v3024_v16  ;;  %v2352_v36 = vsel %vm2288_vm7, 1, %v4978_v45  ;;  %v2544_v32 = vsel %vm2480_vm11, 1, %v4978_v45 }
 0x167   :  { %4145 = vst.msk [vmem:[%s9271_s4 + $0x288] sm:$0xff] %vm4064_vm3, %v4016_v1  ;;  %v2416_v14 = vadd.s32 %v4676_v39, %v2352_v36  ;;  %v6546_v40 = vmul.f32 %v3762_v57, %v6470_v22  ;;  %v1745_v54 = vmul.u32 256, %v1681_v11  ;;  %v3569_v17 = vmul.f32 %v5274_v33, %v6523_v41 }
 0x168   :  { %v2832_v47 = vadd.f32 0.5, %v2768_v5  ;;  %v3570_v37 = vmul.f32 %v5279_v38, %v6534_v46  ;;  %v434_v59 = vadd.f32 %v433_v4, %v5236_v8  ;;  %v6554_v53 = vadd.s32 88, %v5113_v25 }
 0x169   :  { %v3305_v39 = vsel %vm5268_vm2, %v3088_v50, %v5265_v26  ;;  %v3306_v22 = vsel %vm5313_vm8, %v3088_v50, %v5297_v48  ;;  %v2608_v57 = vsub.s32 %v2416_v14, %v2544_v32  ;;  %v6563_v55 = vsub.s32 %v6375_v15, %v1745_v54 }
 0x16a   :  { %v2896_v44 = vmul.f32 8.0, %v2832_v47  ;;  %4806 = vtanh.f32 %v434_v59  ;;  %v4550_v61 = vcvt.f32.s32 %v1137_v23  ;;  %v4234_v24 = vmul.f32 2.0, %v434_v59 }
 0x16b   :  { %v2672_v10 = vmul.u32 16, %v2608_v57  ;;  %v2992_v20 = vcvt.s32.f32 %v2608_v57  ;;  %v1873_v13 = vcvt.s32.f32 %v6563_v55  ;;  %v6567_v52 = vadd.f32 %v5276_v35, %v3569_v17 }
 0x16c   :  { %v3437_v9 = vsel %vm5292_vm4, %v2896_v44, %v3305_v39  ;;  %v3438_v42 = vsel %vm5332_vm9, %v2896_v44, %v3306_v22  ;;  %v1265_v15 = vmul.u32 256, %v4550_v61  ;;  %4299 = vst.msk [vmem:[%s9270_s5 + $0x150] sm:$0xff] %vm4256_vm10, %v4234_v24  ;;  %v643_v31 = vadd.f32 %v642_v62, %v5251_v18 }
 0x16d   :  { %v3953_v30 = vadd.f32 %v6466_v3, %v3437_v9  ;;  %v3954_v51 = vadd.f32 %v6476_v29, %v3438_v42  ;;  %v2736_v6 = vsub.s32 %v6463_v0, %v2672_v10  ;;  %v3056_v19 = vadd.f32 0.5, %v2992_v20  ;;  %v549_v20 = vpop.f32.mrf.mxu1 }
 0x16e   :  { %v1937_v2 = vmul.f32 0.0625, %v1873_v13  ;;  %v6582_v23 = vadd.f32 %v5299_v49, %v3570_v37  ;;  %v1329_v34 = vsub.s32 %v6386_v12, %v1265_v15  ;;  %4808 = vtanh.f32 %v643_v31 }
 0x16f   :  { %4082 = vst [vmem:[%s9271_s4 + $0x90] sm:$0xff] %v3953_v30  ;;  %v2800_v1 = vcvt.s32.f32 %v2736_v6  ;;  %v3120_v21 = vmul.f32 8.0, %v3056_v19  ;;  %v6589_v3 = vadd.f32 %v340_v58, %v5236_v8  ;;  %v978_v29 = vcvt.s32.f32 %v6554_v53 }
 0x170   :  { %v4807_v0 = vpop.eup %4806  ;;  %4083 = vst.msk [vmem:[%s9271_s4 + $0x98] sm:$0xff] %vm4064_vm3, %v3954_v51  ;;  %v2001_v16 = vfloor.f32 %v1937_v2  ;;  %vm1393_vm12 = vcmp.ge.s32.totalorder %v1329_v34, 256  ;;  %vm1585_vm15 = vcmp.lt.s32.totalorder %v1329_v34, 0  ;;  %v6597_v11 = vadd.s32 344, %v5113_v25 }
 0x171   :  { %v2864_v4 = vadd.f32 0.5, %v2800_v1  ;;  %v3369_v5 = vsel %vm5268_vm2, %v3120_v21, %v5265_v26  ;;  %v3370_v50 = vsel %vm5313_vm8, %v3120_v21, %v5297_v48  ;;  %v1457_v36 = vsel %vm1393_vm12, 1, %v4978_v45 }
 0x172   :  { %v4614_v32 = vcvt.f32.s32 %v2001_v16  ;;  %v1521_v14 = vadd.s32 %v4550_v61, %v1457_v36  ;;  %v1649_v54 = vsel %vm1585_vm15, 1, %v4978_v45  ;;  %v3237_v17 = vsel %vm5367_vm13, %v434_v59, %v4807_v0 }
 0x173   :  { %v2928_v47 = vmul.f32 8.0, %v2864_v4  ;;  %v3633_v37 = vmul.f32 %v5274_v33, %v3237_v17  ;;  %4810 = vtanh.f32 %v6589_v3  ;;  %v1042_v39 = vmul.f32 0.00390625, %v978_v29 }
 0x174   :  { %v4809_v22 = vpop.eup %4808  ;;  %v2129_v57 = vmul.u32 16, %v4614_v32  ;;  %v1713_v62 = vsub.s32 %v1521_v14, %v1649_v54  ;;  %v1010_v44 = vcvt.s32.f32 %v6597_v11  ;;  %v6613_v24 = vadd.s32 96, %v5113_v25 }
 0x175   :  { %v3501_v61 = vsel %vm5292_vm4, %v2928_v47, %v3369_v5  ;;  %v3502_v59 = vsel %vm5332_vm9, %v2928_v47, %v3370_v50  ;;  %v3238_v10 = vsel %vm5386_vm14, %v643_v31, %v4809_v22  ;;  %v6622_v13 = vadd.s32 352, %v5113_v25  ;;  %v78_v31 = vld [vmem:[%s9267_s0 + $0x1d8] sm:$0xff] }
 0x176   :  { %v4017_v9 = vadd.f32 %v6486_v7, %v3501_v61  ;;  %v4018_v42 = vadd.f32 %v6546_v40, %v3502_v59  ;;  %v2193_v15 = vsub.s32 %v6563_v55, %v2129_v57  ;;  %v1777_v58 = vmul.u32 256, %v1713_v62  ;;  %v46_v40 = vld [vmem:[%s9267_s0 + $0xd8] sm:$0xff]  ;;  %4388 = vmatmul.msk.f32.gmra.mxu2 %vm97_vm0, %v78_v31  ;;  %4452 = vmatmul.msk.f32.gmra.mxu3 %vm97_vm0, %v78_v31 }
 0x177   :  { %v3763_v30 = vadd.f32 %v5276_v35, %v3633_v37  ;;  %v3634_v51 = vmul.f32 %v5279_v38, %v3238_v10  ;;  %v1106_v6 = vfloor.f32 %v1042_v39  ;;  %v550_v19 = vadd.f32 %v549_v20, %v5251_v18  ;;  %4356 = vmatmul.msk.f32.gmra.mxu0 %vm97_vm0, %v46_v40  ;;  %4420 = vmatmul.msk.f32.gmra.mxu1 %vm97_vm0, %v46_v40  ;;  %v436_v37 = vpop.f32.mrf.mxu2 }
 0x178   :  { %4146 = vst [vmem:[%s9271_s4 + $0x290] sm:$0xff] %v4017_v9  ;;  %vm2257_vm1 = vcmp.ge.s32.totalorder %v2193_v15, 16  ;;  %vm2449_vm5 = vcmp.lt.s32.totalorder %v2193_v15, 0  ;;  %v6634_v7 = vsub.s32 %v6386_v12, %v1777_v58  ;;  %v1074_v2 = vmul.f32 0.00390625, %v1010_v44 }
 0x179   :  { %v4811_v34 = vpop.eup %4810  ;;  %4147 = vst.msk [vmem:[%s9271_s4 + $0x298] sm:$0xff] %vm4064_vm3, %v4018_v42  ;;  %v2321_v1 = vsel %vm2257_vm1, 1, %v4978_v45  ;;  %v2513_v12 = vsel %vm2449_vm5, 1, %v4978_v45  ;;  %v3764_v21 = vadd.f32 %v5299_v49, %v3634_v51  ;;  %v4488_v29 = vcvt.f32.s32 %v1106_v6 }
 0x17a   :  { %v2385_v0 = vadd.s32 %v4614_v32, %v2321_v1  ;;  %v1905_v16 = vcvt.s32.f32 %v6634_v7  ;;  %4812 = vtanh.f32 %v550_v19  ;;  %v3827_v4 = vmul.f32 %v6567_v52, %v6523_v41 }
 0x17b   :  { %v3828_v5 = vmul.f32 %v6582_v23, %v6534_v46  ;;  %v1234_v50 = vmul.u32 256, %v4488_v29  ;;  %v1138_v36 = vfloor.f32 %v1074_v2  ;;  %v6658_v47 = vmul.f32 %v3763_v30, %v3237_v17 }
 0x17c   :  { %v2577_v14 = vsub.s32 %v2385_v0, %v2513_v12  ;;  %v1969_v54 = vmul.f32 0.0625, %v1905_v16  ;;  %v6660_v32 = vmul.f32 %v3764_v21, %v3238_v10  ;;  %v437_v22 = vadd.f32 %v436_v37, %v5236_v8 }
 0x17d   :  { %v1298_v39 = vsub.s32 %v6554_v53, %v1234_v50  ;;  %v979_v57 = vcvt.s32.f32 %v6613_v24  ;;  %v1011_v41 = vcvt.s32.f32 %v6622_v13  ;;  %v4203_v23 = vmul.f32 2.0, %v6589_v3 }
 0x17e   :  { %v2641_v52 = vmul.u32 16, %v2577_v14  ;;  %v2961_v62 = vcvt.s32.f32 %v2577_v14  ;;  %v2033_v46 = vfloor.f32 %v1969_v54  ;;  %v4552_v17 = vcvt.f32.s32 %v1138_v36 }
 0x17f   :  { %vm1362_vm6 = vcmp.ge.s32.totalorder %v1298_v39, 256  ;;  %vm1554_vm7 = vcmp.lt.s32.totalorder %v1298_v39, 0  ;;  %v6668_v44 = vadd.s32 104, %v5113_v25  ;;  %4268 = vst.msk [vmem:[%s9270_s5 + $0x58] sm:$0xff] %vm4256_vm10, %v4203_v23  ;;  %v6680_v58 = vsel %vm5367_vm13, %v6589_v3, %v4811_v34  ;;  %v645_v3 = vpop.f32.mrf.mxu3 }
 0x180   :  { %v4813_v61 = vpop.eup %4812  ;;  %v2705_v59 = vsub.s32 %v6563_v55, %v2641_v52  ;;  %v3025_v10 = vadd.f32 0.5, %v2961_v62  ;;  %v4678_v20 = vcvt.f32.s32 %v2033_v46  ;;  %v1426_v9 = vsel %vm1362_vm6, 1, %v4978_v45 }
 0x181   :  { %v1490_v42 = vadd.s32 %v4488_v29, %v1426_v9  ;;  %v1618_v15 = vsel %vm1554_vm7, 1, %v4978_v45  ;;  %4814 = vtanh.f32 %v437_v22  ;;  %v1043_v6 = vmul.f32 0.00390625, %v979_v57  ;;  %v343_v9 = vpop.f32.mrf.mxu0 }
 0x182   :  { %v2769_v30 = vcvt.s32.f32 %v2705_v59  ;;  %v3089_v55 = vmul.f32 8.0, %v3025_v10  ;;  %v2161_v51 = vmul.u32 16, %v4678_v20  ;;  %v6684_v31 = vsel %vm5386_vm14, %v550_v19, %v4813_v61 }
 0x183   :  { %v1682_v40 = vsub.s32 %v1490_v42, %v1618_v15  ;;  %v1266_v2 = vmul.u32 256, %v4552_v17  ;;  %v4235_v1 = vmul.f32 2.0, %v437_v22  ;;  %v3571_v29 = vmul.f32 %v5274_v33, %v6680_v58 }
 0x184   :  { %v2833_v12 = vadd.f32 0.5, %v2769_v30  ;;  %v2225_v21 = vsub.s32 %v6634_v7, %v2161_v51  ;;  %v6689_v34 = vmul.f32 0.00390625, %v1011_v41  ;;  %v3307_v0 = vsel %vm5268_vm2, %v3089_v55, %v5265_v26 }
 0x185   :  { %v3308_v19 = vsel %vm5313_vm8, %v3089_v55, %v5297_v48  ;;  %v1746_v16 = vmul.u32 256, %v1682_v40  ;;  %v1330_v50 = vsub.s32 %v6597_v11, %v1266_v2  ;;  %4300 = vst.msk [vmem:[%s9270_s5 + $0x158] sm:$0xff] %vm4256_vm10, %v4235_v1  ;;  %v3572_v14 = vmul.f32 %v5279_v38, %v6684_v31 }
 0x186   :  { %v2897_v36 = vmul.f32 8.0, %v2833_v12  ;;  %vm2289_vm11 = vcmp.ge.s32.totalorder %v2225_v21, 16  ;;  %vm2481_vm12 = vcmp.lt.s32.totalorder %v2225_v21, 0  ;;  %v6710_v41 = vadd.f32 %v645_v3, %v5251_v18  ;;  %v552_v3 = vpop.f32.mrf.mxu1 }
 0x187   :  { %v4815_v54 = vpop.eup %4814  ;;  %v2353_v37 = vsel %vm2289_vm11, 1, %v4978_v45  ;;  %v2545_v39 = vsel %vm2481_vm12, 1, %v4978_v45  ;;  %v6707_v57 = vsub.s32 %v6554_v53, %v1746_v16  ;;  %vm1394_vm15 = vcmp.ge.s32.totalorder %v1330_v50, 256 }
 0x188   :  { %v3439_v52 = vsel %vm5292_vm4, %v2897_v36, %v3307_v0  ;;  %v3440_v62 = vsel %vm5332_vm9, %v2897_v36, %v3308_v19  ;;  %v2417_v46 = vadd.s32 %v4678_v20, %v2353_v37  ;;  %v1458_v10 = vsel %vm1394_vm15, 1, %v4978_v45 }
 0x189   :  { %v3955_v23 = vadd.f32 %v3827_v4, %v3439_v52  ;;  %v3956_v61 = vadd.f32 %v3828_v5, %v3440_v62  ;;  %v1874_v59 = vcvt.s32.f32 %v6707_v57  ;;  %v1522_v42 = vadd.s32 %v4552_v17, %v1458_v10  ;;  %v47_v52 = vld [vmem:[%s9267_s0 + $0xe0] sm:$0xff] }
 0x18a   :  { %v2609_v53 = vsub.s32 %v2417_v46, %v2545_v39  ;;  %vm1586_vm1 = vcmp.lt.s32.totalorder %v1330_v50, 0  ;;  %v6720_v15 = vsel %vm5367_vm13, %v437_v22, %v4815_v54  ;;  %v3701_v4 = vadd.f32 %v5276_v35, %v3571_v29  ;;  %v79_v62 = vld [vmem:[%s9267_s0 + $0x1e0] sm:$0xff]  ;;  %4357 = vmatmul.msk.f32.gmra.mxu0 %vm97_vm0, %v47_v52  ;;  %4421 = vmatmul.msk.f32.gmra.mxu1 %vm97_vm0, %v47_v52 }
 0x18b   :  { %4084 = vst [vmem:[%s9271_s4 + $0xa0] sm:$0xff] %v3955_v23  ;;  %v1938_v20 = vmul.f32 0.0625, %v1874_v59  ;;  %v1650_v5 = vsel %vm1586_vm1, 1, %v4978_v45  ;;  %4816 = vtanh.f32 %v6710_v41  ;;  %v6733_v55 = vadd.f32 %v343_v9, %v5236_v8  ;;  %4389 = vmatmul.msk.f32.gmra.mxu2 %vm97_vm0, %v79_v62  ;;  %4453 = vmatmul.msk.f32.gmra.mxu3 %vm97_vm0, %v79_v62 }
 0x18c   :  { %4085 = vst.msk [vmem:[%s9271_s4 + $0xa8] sm:$0xff] %vm4064_vm3, %v3956_v61  ;;  %v2673_v17 = vmul.u32 16, %v2609_v53  ;;  %v2993_v30 = vcvt.s32.f32 %v2609_v53  ;;  %v1714_v22 = vsub.s32 %v1522_v42, %v1650_v5  ;;  %v3702_v40 = vadd.f32 %v5299_v49, %v3572_v14 }
 0x18d   :  { %v2002_v51 = vfloor.f32 %v1938_v20  ;;  %v3635_v2 = vmul.f32 %v5274_v33, %v6720_v15  ;;  %v1107_v1 = vfloor.f32 %v1043_v6  ;;  %v1139_v0 = vfloor.f32 %v6689_v34 }
 0x18e   :  { %v2737_v12 = vsub.s32 %v6634_v7, %v2673_v17  ;;  %v3057_v21 = vadd.f32 0.5, %v2993_v30  ;;  %v1778_v29 = vmul.u32 256, %v1714_v22  ;;  %4818 = vtanh.f32 %v6733_v55 }
 0x18f   :  { %v4616_v19 = vcvt.f32.s32 %v2002_v51  ;;  %v4490_v16 = vcvt.f32.s32 %v1107_v1  ;;  %v553_v50 = vadd.f32 %v552_v3, %v5251_v18  ;;  %v6743_v14 = vmul.f32 %v3701_v4, %v6680_v58 }
 0x190   :  { %v2801_v36 = vcvt.s32.f32 %v2737_v12  ;;  %v3121_v54 = vmul.f32 8.0, %v3057_v21  ;;  %v6746_v6 = vsub.s32 %v6597_v11, %v1778_v29  ;;  %v6749_v39 = vmul.f32 %v3702_v40, %v6684_v31  ;;  %v439_v12 = vpop.f32.mrf.mxu2 }
 0x191   :  { %v4817_v7 = vpop.eup %4816  ;;  %v2130_v37 = vmul.u32 16, %v4616_v19  ;;  %v1235_v34 = vmul.u32 256, %v4490_v16  ;;  %4820 = vtanh.f32 %v553_v50  ;;  %v3765_v31 = vadd.f32 %v5276_v35, %v3635_v2 }
 0x192   :  { %v2865_v58 = vadd.f32 0.5, %v2801_v36  ;;  %v3371_v11 = vsel %vm5268_vm2, %v3121_v54, %v5265_v26  ;;  %v1906_v46 = vcvt.s32.f32 %v6746_v6  ;;  %v3372_v23 = vsel %vm5313_vm8, %v3121_v54, %v5297_v48 }
 0x193   :  { %v2194_v61 = vsub.s32 %v6707_v57, %v2130_v37  ;;  %v1299_v59 = vsub.s32 %v6613_v24, %v1235_v34  ;;  %v6771_v10 = vcvt.f32.s32 %v1139_v0  ;;  %v6776_v42 = vsel %vm5386_vm14, %v6710_v41, %v4817_v7 }
 0x194   :  { %v2929_v9 = vmul.f32 8.0, %v2865_v58  ;;  %v1970_v53 = vmul.f32 0.0625, %v1906_v46  ;;  %v980_v20 = vcvt.s32.f32 %v6668_v44  ;;  %v4819_v4 = vpop.eup %4818  ;;  %v4204_v7 = vmul.f32 2.0, %v6733_v55 }
 0x195   :  { %vm2258_vm5 = vcmp.ge.s32.totalorder %v2194_v61, 16  ;;  %vm2450_vm6 = vcmp.lt.s32.totalorder %v2194_v61, 0  ;;  %vm1363_vm7 = vcmp.ge.s32.totalorder %v1299_v59, 256  ;;  %vm1555_vm11 = vcmp.lt.s32.totalorder %v1299_v59, 0 }
 0x196   :  { %v3503_v5 = vsel %vm5292_vm4, %v2929_v9, %v3371_v11  ;;  %v3504_v17 = vsel %vm5332_vm9, %v2929_v9, %v3372_v23  ;;  %v2322_v30 = vsel %vm2258_vm5, 1, %v4978_v45  ;;  %v2514_v22 = vsel %vm2450_vm6, 1, %v4978_v45  ;;  %4269 = vst.msk [vmem:[%s9270_s5 + $0x60] sm:$0xff] %vm4256_vm10, %v4204_v7 }
 0x197   :  { %v4821_v51 = vpop.eup %4820  ;;  %v4019_v41 = vadd.f32 %v6658_v47, %v3503_v5  ;;  %v4020_v40 = vadd.f32 %v6660_v32, %v3504_v17  ;;  %v2386_v2 = vadd.s32 %v4616_v19, %v2322_v30  ;;  %v2034_v1 = vfloor.f32 %v1970_v53 }
 0x198   :  { %v1427_v21 = vsel %vm1363_vm7, 1, %v4978_v45  ;;  %v1619_v29 = vsel %vm1555_vm11, 1, %v4978_v45  ;;  %v6792_v3 = vsel %vm5367_vm13, %v6733_v55, %v4819_v4  ;;  %v1267_v0 = vmul.u32 256, %v6771_v10 }
 0x199   :  { %4148 = vst [vmem:[%s9271_s4 + $0x2a0] sm:$0xff] %v4019_v41  ;;  %v2578_v47 = vsub.s32 %v2386_v2, %v2514_v22  ;;  %v4680_v32 = vcvt.f32.s32 %v2034_v1  ;;  %v3636_v19 = vmul.f32 %v5279_v38, %v6776_v42  ;;  %v1491_v36 = vadd.s32 %v4490_v16, %v1427_v21  ;;  %v648_v41 = vpop.f32.mrf.mxu3 }
 0x19a   :  { %4149 = vst.msk [vmem:[%s9271_s4 + $0x2a8] sm:$0xff] %vm4064_vm3, %v4020_v40  ;;  %v3573_v54 = vmul.f32 %v5274_v33, %v6792_v3  ;;  %v6809_v37 = vsel %vm5386_vm14, %v553_v50, %v4821_v51  ;;  %v440_v34 = vadd.f32 %v439_v12, %v5236_v8  ;;  %v6813_v11 = vmul.f32 %v3765_v31, %v6720_v15  ;;  %v346_v40 = vpop.f32.mrf.mxu0 }
 0x19b   :  { %v2642_v52 = vmul.u32 16, %v2578_v47  ;;  %v2962_v62 = vcvt.s32.f32 %v2578_v47  ;;  %v2162_v58 = vmul.u32 16, %v4680_v32  ;;  %v1683_v16 = vsub.s32 %v1491_v36, %v1619_v29 }
 0x19c   :  { %v3574_v55 = vmul.f32 %v5279_v38, %v6809_v37  ;;  %4822 = vtanh.f32 %v440_v34  ;;  %v1331_v50 = vsub.s32 %v6622_v13, %v1267_v0  ;;  %v3766_v15 = vadd.f32 %v5299_v49, %v3636_v19 }
 0x19d   :  { %v2706_v46 = vsub.s32 %v6707_v57, %v2642_v52  ;;  %v3026_v23 = vadd.f32 0.5, %v2962_v62  ;;  %v2226_v61 = vsub.s32 %v6746_v6, %v2162_v58  ;;  %v1747_v59 = vmul.u32 256, %v1683_v16 }
 0x19e   :  { %v3703_v31 = vadd.f32 %v5276_v35, %v3573_v54  ;;  %vm1395_vm12 = vcmp.ge.s32.totalorder %v1331_v50, 256  ;;  %v1044_v9 = vmul.f32 0.00390625, %v980_v20  ;;  %vm1587_vm5 = vcmp.lt.s32.totalorder %v1331_v50, 0 }
 0x19f   :  { %v2770_v53 = vcvt.s32.f32 %v2706_v46  ;;  %v3090_v4 = vmul.f32 8.0, %v3026_v23  ;;  %vm2290_vm15 = vcmp.ge.s32.totalorder %v2226_v61, 16  ;;  %vm2482_vm1 = vcmp.lt.s32.totalorder %v2226_v61, 0 }
 0x1a0   :  { %v2354_v5 = vsel %vm2290_vm15, 1, %v4978_v45  ;;  %v2546_v17 = vsel %vm2482_vm1, 1, %v4978_v45  ;;  %v6829_v57 = vsub.s32 %v6613_v24, %v1747_v59  ;;  %v3704_v20 = vadd.f32 %v5299_v49, %v3574_v55 }
 0x1a1   :  { %v2834_v30 = vadd.f32 0.5, %v2770_v53  ;;  %v3309_v22 = vsel %vm5268_vm2, %v3090_v4, %v5265_v26  ;;  %v2418_v51 = vadd.s32 %v4680_v32, %v2354_v5  ;;  %v3310_v1 = vsel %vm5313_vm8, %v3090_v4, %v5297_v48  ;;  %v555_v5 = vpop.f32.mrf.mxu1 }
 0x1a2   :  { %v4823_v2 = vpop.eup %4822  ;;  %v1875_v12 = vcvt.s32.f32 %v6829_v57  ;;  %v1459_v24 = vsel %vm1395_vm12, 1, %v4978_v45  ;;  %v4236_v21 = vmul.f32 2.0, %v440_v34  ;;  %v1651_v32 = vsel %vm1587_vm5, 1, %v4978_v45 }
 0x1a3   :  { %v2898_v29 = vmul.f32 8.0, %v2834_v30  ;;  %v2610_v0 = vsub.s32 %v2418_v51, %v2546_v17  ;;  %v1523_v47 = vadd.s32 %v6771_v10, %v1459_v24  ;;  %v6845_v36 = vsel %vm5367_vm13, %v440_v34, %v4823_v2 }
 0x1a4   :  { %v1939_v19 = vmul.f32 0.0625, %v1875_v12  ;;  %4301 = vst.msk [vmem:[%s9270_s5 + $0x160] sm:$0xff] %vm4256_vm10, %v4236_v21  ;;  %v649_v54 = vadd.f32 %v648_v41, %v5251_v18  ;;  %v6853_v7 = vadd.f32 %v346_v40, %v5236_v8  ;;  %v3637_v61 = vmul.f32 %v5274_v33, %v6845_v36 }
 0x1a5   :  { %v3441_v10 = vsel %vm5292_vm4, %v2898_v29, %v3309_v22  ;;  %v3442_v52 = vsel %vm5332_vm9, %v2898_v29, %v3310_v1  ;;  %v2674_v62 = vmul.u32 16, %v2610_v0  ;;  %v2994_v58 = vcvt.s32.f32 %v2610_v0 }
 0x1a6   :  { %v3957_v34 = vadd.f32 %v6743_v14, %v3441_v10  ;;  %v3958_v16 = vadd.f32 %v6749_v39, %v3442_v52  ;;  %v2003_v55 = vfloor.f32 %v1939_v19  ;;  %v1715_v50 = vsub.s32 %v1523_v47, %v1651_v32 }
 0x1a7   :  { %v2738_v46 = vsub.s32 %v6746_v6, %v2674_v62  ;;  %v3058_v23 = vadd.f32 0.5, %v2994_v58  ;;  %4824 = vtanh.f32 %v649_v54  ;;  %v3894_v59 = vmul.f32 %v3766_v15, %v6776_v42 }
 0x1a8   :  { %4086 = vst [vmem:[%s9271_s4 + $0xb0] sm:$0xff] %v3957_v34  ;;  %v4618_v53 = vcvt.f32.s32 %v2003_v55  ;;  %v1779_v4 = vmul.u32 256, %v1715_v50  ;;  %v1108_v14 = vfloor.f32 %v1044_v9  ;;  %4826 = vtanh.f32 %v6853_v7 }
 0x1a9   :  { %4087 = vst.msk [vmem:[%s9271_s4 + $0xb8] sm:$0xff] %vm4064_vm3, %v3958_v16  ;;  %v2802_v6 = vcvt.s32.f32 %v2738_v46  ;;  %v3122_v39 = vmul.f32 8.0, %v3058_v23  ;;  %v6874_v17 = vadd.s32 360, %v5113_v25  ;;  %v6880_v15 = vadd.f32 %v555_v5, %v5251_v18 }
 0x1aa   :  { %v2131_v30 = vmul.u32 16, %v4618_v53  ;;  %v6877_v22 = vsub.s32 %v6622_v13, %v1779_v4  ;;  %v4492_v42 = vcvt.f32.s32 %v1108_v14  ;;  %v6883_v51 = vmul.f32 %v3703_v31, %v6792_v3  ;;  %v48_v3 = vld [vmem:[%s9267_s0 + $0xe8] sm:$0xff] }
 0x1ab   :  { %v2866_v9 = vadd.f32 0.5, %v2802_v6  ;;  %v6886_v41 = vmul.f32 %v3704_v20, %v6809_v37  ;;  %v3767_v40 = vadd.f32 %v5276_v35, %v3637_v61  ;;  %v3373_v2 = vsel %vm5268_vm2, %v3122_v39, %v5265_v26  ;;  %v80_v37 = vld [vmem:[%s9267_s0 + $0x1e8] sm:$0xff]  ;;  %4358 = vmatmul.msk.f32.gmra.mxu0 %vm97_vm0, %v48_v3  ;;  %4422 = vmatmul.msk.f32.gmra.mxu1 %vm97_vm0, %v48_v3 }
 0x1ac   :  { %v3374_v13 = vsel %vm5313_vm8, %v3122_v39, %v5297_v48  ;;  %v2195_v1 = vsub.s32 %v6829_v57, %v2131_v30  ;;  %v1907_v12 = vcvt.s32.f32 %v6877_v22  ;;  %v1236_v24 = vmul.u32 256, %v4492_v42  ;;  %4390 = vmatmul.msk.f32.gmra.mxu2 %vm97_vm0, %v80_v37  ;;  %4454 = vmatmul.msk.f32.gmra.mxu3 %vm97_vm0, %v80_v37 }
 0x1ad   :  { %v4825_v31 = vpop.eup %4824  ;;  %v2930_v20 = vmul.f32 8.0, %v2866_v9  ;;  %4828 = vtanh.f32 %v6880_v15  ;;  %v1012_v21 = vcvt.s32.f32 %v6874_v17  ;;  %v6919_v16 = vmul.f32 %v3767_v40, %v6845_v36 }
 0x1ae   :  { %vm2259_vm6 = vcmp.ge.s32.totalorder %v2195_v1, 16  ;;  %vm2451_vm7 = vcmp.lt.s32.totalorder %v2195_v1, 0  ;;  %v1971_v29 = vmul.f32 0.0625, %v1907_v12  ;;  %v3242_v0 = vsel %vm5386_vm14, %v649_v54, %v4825_v31  ;;  %v4827_v47 = vpop.eup %4826 }
 0x1af   :  { %v3505_v32 = vsel %vm5292_vm4, %v2930_v20, %v3373_v2  ;;  %v3506_v19 = vsel %vm5332_vm9, %v2930_v20, %v3374_v13  ;;  %v2323_v10 = vsel %vm2259_vm6, 1, %v4978_v45  ;;  %v2515_v52 = vsel %vm2451_vm7, 1, %v4978_v45 }
 0x1b0   :  { %v4021_v62 = vadd.f32 %v6813_v11, %v3505_v32  ;;  %v4022_v58 = vadd.f32 %v3894_v59, %v3506_v19  ;;  %v2387_v34 = vadd.s32 %v4618_v53, %v2323_v10  ;;  %v2035_v54 = vfloor.f32 %v1971_v29  ;;  %v442_v11 = vpop.f32.mrf.mxu2  ;;  %v651_v32 = vpop.f32.mrf.mxu3 }
 0x1b1   :  { %v3638_v55 = vmul.f32 %v5279_v38, %v3242_v0  ;;  %v1300_v50 = vsub.s32 %v6668_v44, %v1236_v24  ;;  %v1076_v46 = vmul.f32 0.00390625, %v1012_v21  ;;  %v4205_v4 = vmul.f32 2.0, %v6853_v7 }
 0x1b2   :  { %4150 = vst [vmem:[%s9271_s4 + $0x2b0] sm:$0xff] %v4021_v62  ;;  %v2579_v23 = vsub.s32 %v2387_v34, %v2515_v52  ;;  %v4682_v61 = vcvt.f32.s32 %v2035_v54  ;;  %v6928_v59 = vadd.s32 112, %v5113_v25  ;;  %v6938_v14 = vsel %vm5367_vm13, %v6853_v7, %v4827_v47 }
 0x1b3   :  { %v4829_v53 = vpop.eup %4828  ;;  %4151 = vst.msk [vmem:[%s9271_s4 + $0x2b8] sm:$0xff] %vm4064_vm3, %v4022_v58  ;;  %v3768_v36 = vadd.f32 %v5299_v49, %v3638_v55  ;;  %vm1364_vm11 = vcmp.ge.s32.totalorder %v1300_v50, 256  ;;  %vm1556_vm12 = vcmp.lt.s32.totalorder %v1300_v50, 0  ;;  %v6947_v2 = vadd.f32 %v442_v11, %v5236_v8 }
 0x1b4   :  { %v2643_v6 = vmul.u32 16, %v2579_v23  ;;  %v2963_v39 = vcvt.s32.f32 %v2579_v23  ;;  %v2163_v5 = vmul.u32 16, %v4682_v61  ;;  %v1428_v30 = vsel %vm1364_vm11, 1, %v4978_v45  ;;  %4270 = vst.msk [vmem:[%s9270_s5 + $0x68] sm:$0xff] %vm4256_vm10, %v4205_v4 }
 0x1b5   :  { %v1492_v9 = vadd.s32 %v4492_v42, %v1428_v30  ;;  %v1620_v40 = vsel %vm1556_vm12, 1, %v4978_v45  ;;  %v6950_v13 = vadd.s32 368, %v5113_v25  ;;  %v1140_v3 = vfloor.f32 %v1076_v46 }
 0x1b6   :  { %v2707_v7 = vsub.s32 %v6829_v57, %v2643_v6  ;;  %v3027_v1 = vadd.f32 0.5, %v2963_v39  ;;  %v2227_v12 = vsub.s32 %v6877_v22, %v2163_v5  ;;  %v6954_v37 = vmul.f32 %v3768_v36, %v3242_v0  ;;  %v349_v39 = vpop.f32.mrf.mxu0 }
 0x1b7   :  { %v1684_v31 = vsub.s32 %v1492_v9, %v1620_v40  ;;  %v3575_v42 = vmul.f32 %v5274_v33, %v6938_v14  ;;  %v981_v20 = vcvt.s32.f32 %v6928_v59  ;;  %v6964_v0 = vsel %vm5386_vm14, %v6880_v15, %v4829_v53 }
 0x1b8   :  { %v2771_v24 = vcvt.s32.f32 %v2707_v7  ;;  %v3091_v21 = vmul.f32 8.0, %v3027_v1  ;;  %vm2291_vm15 = vcmp.ge.s32.totalorder %v2227_v12, 16  ;;  %vm2483_vm1 = vcmp.lt.s32.totalorder %v2227_v12, 0 }
 0x1b9   :  { %v2355_v29 = vsel %vm2291_vm15, 1, %v4978_v45  ;;  %v2547_v57 = vsel %vm2483_vm1, 1, %v4978_v45  ;;  %v1748_v47 = vmul.u32 256, %v1684_v31  ;;  %4830 = vtanh.f32 %v6947_v2 }
 0x1ba   :  { %v2835_v19 = vadd.f32 0.5, %v2771_v24  ;;  %v3311_v10 = vsel %vm5268_vm2, %v3091_v21, %v5265_v26  ;;  %v2419_v52 = vadd.s32 %v4682_v61, %v2355_v29  ;;  %v3312_v62 = vsel %vm5313_vm8, %v3091_v21, %v5297_v48 }
 0x1bb   :  { %v6974_v58 = vsub.s32 %v6668_v44, %v1748_v47  ;;  %v4556_v34 = vcvt.f32.s32 %v1140_v3  ;;  %v4237_v15 = vmul.f32 2.0, %v6947_v2  ;;  %v3705_v50 = vadd.f32 %v5276_v35, %v3575_v42  ;;  %v558_v47 = vpop.f32.mrf.mxu1 }
 0x1bc   :  { %v2899_v54 = vmul.f32 8.0, %v2835_v19  ;;  %v2611_v55 = vsub.s32 %v2419_v52, %v2547_v57  ;;  %v652_v46 = vadd.f32 %v651_v32, %v5251_v18  ;;  %v3576_v61 = vmul.f32 %v5279_v38, %v6964_v0 }
 0x1bd   :  { %v1876_v23 = vcvt.s32.f32 %v6974_v58  ;;  %v1268_v4 = vmul.u32 256, %v4556_v34  ;;  %4302 = vst.msk [vmem:[%s9270_s5 + $0x168] sm:$0xff] %vm4256_vm10, %v4237_v15  ;;  %v1045_v44 = vmul.f32 0.00390625, %v981_v20 }
 0x1be   :  { %v3443_v11 = vsel %vm5292_vm4, %v2899_v54, %v3311_v10  ;;  %v3444_v53 = vsel %vm5332_vm9, %v2899_v54, %v3312_v62  ;;  %v2675_v36 = vmul.u32 16, %v2611_v55  ;;  %v2995_v6 = vcvt.s32.f32 %v2611_v55  ;;  %v81_v55 = vld [vmem:[%s9267_s0 + $0x1f0] sm:$0xff] }
 0x1bf   :  { %v3959_v5 = vadd.f32 %v6883_v51, %v3443_v11  ;;  %v3960_v30 = vadd.f32 %v6886_v41, %v3444_v53  ;;  %v1940_v9 = vmul.f32 0.0625, %v1876_v23  ;;  %v1332_v40 = vsub.s32 %v6874_v17, %v1268_v4  ;;  %v4831_v7 = vpop.eup %4830  ;;  %4391 = vmatmul.msk.f32.gmra.mxu2 %vm97_vm0, %v81_v55  ;;  %4455 = vmatmul.msk.f32.gmra.mxu3 %vm97_vm0, %v81_v55 }
 0x1c0   :  { %v2739_v1 = vsub.s32 %v6877_v22, %v2675_v36  ;;  %v3059_v12 = vadd.f32 0.5, %v2995_v6  ;;  %4832 = vtanh.f32 %v652_v46  ;;  %v1109_v3 = vfloor.f32 %v1045_v44 }
 0x1c1   :  { %4088 = vst [vmem:[%s9271_s4 + $0xc0] sm:$0xff] %v3959_v5  ;;  %v2004_v31 = vfloor.f32 %v1940_v9  ;;  %vm1396_vm5 = vcmp.ge.s32.totalorder %v1332_v40, 256  ;;  %vm1588_vm6 = vcmp.lt.s32.totalorder %v1332_v40, 0  ;;  %v6998_v51 = vadd.f32 %v349_v39, %v5236_v8 }
 0x1c2   :  { %4089 = vst.msk [vmem:[%s9271_s4 + $0xc8] sm:$0xff] %vm4064_vm3, %v3960_v30  ;;  %v2803_v41 = vcvt.s32.f32 %v2739_v1  ;;  %v3123_v22 = vmul.f32 8.0, %v3059_v12  ;;  %v1460_v42 = vsel %vm1396_vm5, 1, %v4978_v45  ;;  %v1652_v20 = vsel %vm1588_vm6, 1, %v4978_v45 }
 0x1c3   :  { %v4620_v24 = vcvt.f32.s32 %v2004_v31  ;;  %v1524_v21 = vadd.s32 %v4556_v34, %v1460_v42  ;;  %v3243_v29 = vsel %vm5367_vm13, %v6947_v2, %v4831_v7  ;;  %v4494_v57 = vcvt.f32.s32 %v1109_v3  ;;  %v49_v2 = vld [vmem:[%s9267_s0 + $0xf0] sm:$0xff] }
 0x1c4   :  { %v2867_v32 = vadd.f32 0.5, %v2803_v41  ;;  %v3375_v19 = vsel %vm5268_vm2, %v3123_v22, %v5265_v26  ;;  %v7013_v10 = vmul.f32 %v3705_v50, %v6938_v14  ;;  %v3639_v52 = vmul.f32 %v5274_v33, %v3243_v29  ;;  %4359 = vmatmul.msk.f32.gmra.mxu0 %vm97_vm0, %v49_v2  ;;  %4423 = vmatmul.msk.f32.gmra.mxu1 %vm97_vm0, %v49_v2 }
 0x1c5   :  { %v3376_v62 = vsel %vm5313_vm8, %v3123_v22, %v5297_v48  ;;  %v2132_v34 = vmul.u32 16, %v4620_v24  ;;  %v1716_v15 = vsub.s32 %v1524_v21, %v1652_v20  ;;  %v1237_v54 = vmul.u32 256, %v4494_v57 }
 0x1c6   :  { %v4833_v23 = vpop.eup %4832  ;;  %v2931_v14 = vmul.f32 8.0, %v2867_v32  ;;  %v3706_v50 = vadd.f32 %v5299_v49, %v3576_v61  ;;  %4834 = vtanh.f32 %v6998_v51  ;;  %v7028_v4 = vadd.f32 %v558_v47, %v5251_v18 }
 0x1c7   :  { %v2196_v44 = vsub.s32 %v6974_v58, %v2132_v34  ;;  %v1780_v11 = vmul.u32 256, %v1716_v15  ;;  %v3769_v53 = vadd.f32 %v5276_v35, %v3639_v52  ;;  %v1301_v36 = vsub.s32 %v6928_v59, %v1237_v54 }
 0x1c8   :  { %v3507_v61 = vsel %vm5292_vm4, %v2931_v14, %v3375_v19  ;;  %v3508_v6 = vsel %vm5332_vm9, %v2931_v14, %v3376_v62  ;;  %v7043_v39 = vsel %vm5386_vm14, %v652_v46, %v4833_v23  ;;  %v1013_v5 = vcvt.s32.f32 %v6950_v13  ;;  %v654_v14 = vpop.f32.mrf.mxu3 }
 0x1c9   :  { %v4023_v30 = vadd.f32 %v6919_v16, %v3507_v61  ;;  %v4024_v9 = vadd.f32 %v6954_v37, %v3508_v6  ;;  %vm2260_vm7 = vcmp.ge.s32.totalorder %v2196_v44, 16  ;;  %vm2452_vm11 = vcmp.lt.s32.totalorder %v2196_v44, 0  ;;  %v445_v37 = vpop.f32.mrf.mxu2 }
 0x1ca   :  { %v2324_v40 = vsel %vm2260_vm7, 1, %v4978_v45  ;;  %v2516_v7 = vsel %vm2452_vm11, 1, %v4978_v45  ;;  %v7051_v1 = vsub.s32 %v6874_v17, %v1780_v11  ;;  %v7054_v12 = vadd.s32 120, %v5113_v25 }
 0x1cb   :  { %4152 = vst [vmem:[%s9271_s4 + $0x2c0] sm:$0xff] %v4023_v30  ;;  %v2388_v46 = vadd.s32 %v4620_v24, %v2324_v40  ;;  %vm1365_vm12 = vcmp.ge.s32.totalorder %v1301_v36, 256  ;;  %vm1557_vm15 = vcmp.lt.s32.totalorder %v1301_v36, 0  ;;  %v4206_v16 = vmul.f32 2.0, %v6998_v51 }
 0x1cc   :  { %v4835_v3 = vpop.eup %4834  ;;  %4153 = vst.msk [vmem:[%s9271_s4 + $0x2c8] sm:$0xff] %vm4064_vm3, %v4024_v9  ;;  %v1908_v17 = vcvt.s32.f32 %v7051_v1  ;;  %v3640_v31 = vmul.f32 %v5279_v38, %v7043_v39  ;;  %v1429_v41 = vsel %vm1365_vm12, 1, %v4978_v45  ;;  %v1621_v22 = vsel %vm1557_vm15, 1, %v4978_v45 }
 0x1cd   :  { %v2580_v42 = vsub.s32 %v2388_v46, %v2516_v7  ;;  %v3834_v20 = vmul.f32 %v3706_v50, %v6964_v0  ;;  %v1493_v24 = vadd.s32 %v4494_v57, %v1429_v41  ;;  %4271 = vst.msk [vmem:[%s9270_s5 + $0x70] sm:$0xff] %vm4256_vm10, %v4206_v16  ;;  %4836 = vtanh.f32 %v7028_v4  ;;  %v352_v7 = vpop.f32.mrf.mxu0 }
 0x1ce   :  { %v1972_v21 = vmul.f32 0.0625, %v1908_v17  ;;  %v7075_v47 = vmul.f32 %v3769_v53, %v3243_v29  ;;  %v446_v32 = vadd.f32 %v445_v37, %v5236_v8  ;;  %v1077_v19 = vmul.f32 0.00390625, %v1013_v5 }
 0x1cf   :  { %v2644_v52 = vmul.u32 16, %v2580_v42  ;;  %v2964_v62 = vcvt.s32.f32 %v2580_v42  ;;  %v1685_v34 = vsub.s32 %v1493_v24, %v1621_v22  ;;  %v982_v15 = vcvt.s32.f32 %v7054_v12 }
 0x1d0   :  { %v2036_v0 = vfloor.f32 %v1972_v21  ;;  %v7080_v57 = vadd.f32 %v5299_v49, %v3640_v31  ;;  %v7085_v54 = vsel %vm5367_vm13, %v6998_v51, %v4835_v3  ;;  %v1141_v2 = vfloor.f32 %v1077_v19 }
 0x1d1   :  { %v2708_v29 = vsub.s32 %v6974_v58, %v2644_v52  ;;  %v3028_v55 = vadd.f32 0.5, %v2964_v62  ;;  %v1749_v23 = vmul.u32 256, %v1685_v34  ;;  %v1046_v50 = vmul.f32 0.00390625, %v982_v15 }
 0x1d2   :  { %v4684_v44 = vcvt.f32.s32 %v2036_v0  ;;  %4838 = vtanh.f32 %v446_v32  ;;  %v4558_v11 = vcvt.f32.s32 %v1141_v2  ;;  %v655_v53 = vadd.f32 %v654_v14, %v5251_v18 }
 0x1d3   :  { %v4837_v36 = vpop.eup %4836  ;;  %v2772_v61 = vcvt.s32.f32 %v2708_v29  ;;  %v3092_v6 = vmul.f32 8.0, %v3028_v55  ;;  %v7090_v5 = vsub.s32 %v6928_v59, %v1749_v23  ;;  %v1110_v51 = vfloor.f32 %v1046_v50 }
 0x1d4   :  { %v2164_v30 = vmul.u32 16, %v4684_v44  ;;  %v7095_v58 = vsel %vm5386_vm14, %v7028_v4, %v4837_v36  ;;  %v1269_v9 = vmul.u32 256, %v4558_v11  ;;  %v4238_v40 = vmul.f32 2.0, %v446_v32 }
 0x1d5   :  { %v2836_v46 = vadd.f32 0.5, %v2772_v61  ;;  %v3313_v16 = vsel %vm5268_vm2, %v3092_v6, %v5265_v26  ;;  %v1877_v37 = vcvt.s32.f32 %v7090_v5  ;;  %v3577_v59 = vmul.f32 %v5274_v33, %v7085_v54 }
 0x1d6   :  { %v3314_v3 = vsel %vm5313_vm8, %v3092_v6, %v5297_v48  ;;  %v2228_v4 = vsub.s32 %v7051_v1, %v2164_v30  ;;  %v1333_v17 = vsub.s32 %v6950_v13, %v1269_v9  ;;  %4303 = vst.msk [vmem:[%s9270_s5 + $0x170] sm:$0xff] %vm4256_vm10, %v4238_v40  ;;  %4840 = vtanh.f32 %v655_v53  ;;  %v561_v40 = vpop.f32.mrf.mxu1 }
 0x1d7   :  { %v2900_v31 = vmul.f32 8.0, %v2836_v46  ;;  %v1941_v41 = vmul.f32 0.0625, %v1877_v37  ;;  %v3578_v22 = vmul.f32 %v5279_v38, %v7095_v58  ;;  %v7115_v42 = vadd.f32 %v352_v7, %v5236_v8  ;;  %v50_v7 = vld [vmem:[%s9267_s0 + $0xf8] sm:$0xff] }
 0x1d8   :  { %v4839_v24 = vpop.eup %4838  ;;  %vm2292_vm1 = vcmp.ge.s32.totalorder %v2228_v4, 16  ;;  %vm2484_vm5 = vcmp.lt.s32.totalorder %v2228_v4, 0  ;;  %vm1397_vm6 = vcmp.ge.s32.totalorder %v1333_v17, 256  ;;  %v7117_v21 = vcvt.f32.s32 %v1110_v51  ;;  %v82_v46 = vld [vmem:[%s9267_s0 + $0x1f8] sm:$0xff]  ;;  %4360 = vmatmul.msk.f32.gmra.mxu0 %vm97_vm0, %v50_v7  ;;  %4424 = vmatmul.msk.f32.gmra.mxu1 %vm97_vm0, %v50_v7 }
 0x1d9   :  { %v3445_v19 = vsel %vm5292_vm4, %v2900_v31, %v3313_v16  ;;  %v3446_v52 = vsel %vm5332_vm9, %v2900_v31, %v3314_v3  ;;  %v2356_v62 = vsel %vm2292_vm1, 1, %v4978_v45  ;;  %v2548_v34 = vsel %vm2484_vm5, 1, %v4978_v45  ;;  %4392 = vmatmul.msk.f32.gmra.mxu2 %vm97_vm0, %v82_v46  ;;  %4456 = vmatmul.msk.f32.gmra.mxu3 %vm97_vm0, %v82_v46 }
 0x1da   :  { %v3961_v15 = vadd.f32 %v7013_v10, %v3445_v19  ;;  %v3962_v0 = vadd.f32 %v3834_v20, %v3446_v52  ;;  %v2420_v2 = vadd.s32 %v4684_v44, %v2356_v62  ;;  %v2005_v29 = vfloor.f32 %v1941_v41 }
 0x1db   :  { %v3707_v55 = vadd.f32 %v5276_v35, %v3577_v59  ;;  %v1461_v23 = vsel %vm1397_vm6, 1, %v4978_v45  ;;  %vm1589_vm7 = vcmp.lt.s32.totalorder %v1333_v17, 0  ;;  %v7130_v14 = vsel %vm5367_vm13, %v446_v32, %v4839_v24 }
 0x1dc   :  { %v4841_v50 = vpop.eup %4840  ;;  %4090 = vst [vmem:[%s9271_s4 + $0xd0] sm:$0xff] %v3961_v15  ;;  %v2612_v36 = vsub.s32 %v2420_v2, %v2548_v34  ;;  %v4622_v61 = vcvt.f32.s32 %v2005_v29  ;;  %v1525_v10 = vadd.s32 %v4558_v11, %v1461_v23  ;;  %v1653_v20 = vsel %vm1589_vm7, 1, %v4978_v45 }
 0x1dd   :  { %4091 = vst.msk [vmem:[%s9271_s4 + $0xd8] sm:$0xff] %vm4064_vm3, %v3962_v0  ;;  %v3708_v44 = vadd.f32 %v5299_v49, %v3578_v22  ;;  %v7143_v32 = vsel %vm5386_vm14, %v655_v53, %v4841_v50  ;;  %4842 = vtanh.f32 %v7115_v42  ;;  %v1238_v6 = vmul.u32 256, %v7117_v21 }
 0x1de   :  { %v2676_v51 = vmul.u32 16, %v2612_v36  ;;  %v2996_v30 = vcvt.s32.f32 %v2612_v36  ;;  %v2133_v11 = vmul.u32 16, %v4622_v61  ;;  %v1717_v9 = vsub.s32 %v1525_v10, %v1653_v20 }
 0x1df   :  { %v3898_v53 = vmul.f32 %v7080_v57, %v7043_v39  ;;  %v3641_v16 = vmul.f32 %v5274_v33, %v7130_v14  ;;  %v3642_v37 = vmul.f32 %v5279_v38, %v7143_v32  ;;  %v1302_v59 = vsub.s32 %v7054_v12, %v1238_v6 }
 0x1e0   :  { %v2740_v3 = vsub.s32 %v7051_v1, %v2676_v51  ;;  %v3060_v4 = vadd.f32 0.5, %v2996_v30  ;;  %v2197_v17 = vsub.s32 %v7090_v5, %v2133_v11  ;;  %v1781_v31 = vmul.u32 256, %v1717_v9 }
 0x1e1   :  { %v7166_v39 = vmul.f32 %v3707_v55, %v7085_v54  ;;  %v7169_v57 = vmul.f32 %v3708_v44, %v7095_v58  ;;  %vm1366_vm11 = vcmp.ge.s32.totalorder %v1302_v59, 256  ;;  %v562_v41 = vadd.f32 %v561_v40, %v5251_v18 }
 0x1e2   :  { %v2804_v1 = vcvt.s32.f32 %v2740_v3  ;;  %v3124_v22 = vmul.f32 8.0, %v3060_v4  ;;  %vm2261_vm12 = vcmp.ge.s32.totalorder %v2197_v17, 16  ;;  %vm2453_vm15 = vcmp.lt.s32.totalorder %v2197_v17, 0 }
 0x1e3   :  { %v4843_v24 = vpop.eup %4842  ;;  %v2325_v19 = vsel %vm2261_vm12, 1, %v4978_v45  ;;  %v2517_v52 = vsel %vm2453_vm15, 1, %v4978_v45  ;;  %v7176_v54 = vsub.s32 %v6950_v13, %v1781_v31  ;;  %vm1558_vm1 = vcmp.lt.s32.totalorder %v1302_v59, 0 }
 0x1e4   :  { %v2868_v58 = vadd.f32 0.5, %v2804_v1  ;;  %v2389_v62 = vadd.s32 %v4622_v61, %v2325_v19  ;;  %v3771_v34 = vadd.f32 %v5276_v35, %v3641_v16  ;;  %v3772_v15 = vadd.f32 %v5299_v49, %v3642_v37 }
 0x1e5   :  { %v3377_v0 = vsel %vm5268_vm2, %v3124_v22, %v5265_v26  ;;  %v3378_v2 = vsel %vm5313_vm8, %v3124_v22, %v5297_v48  ;;  %v1909_v29 = vcvt.s32.f32 %v7176_v54  ;;  %v1430_v13 = vsel %vm1366_vm11, 1, %v4978_v45 }
 0x1e6   :  { %v2932_v55 = vmul.f32 8.0, %v2868_v58  ;;  %v2581_v23 = vsub.s32 %v2389_v62, %v2517_v52  ;;  %v1494_v50 = vadd.s32 %v7117_v21, %v1430_v13  ;;  %v1622_v36 = vsel %vm1558_vm1, 1, %v4978_v45 }
 0x1e7   :  { %v1973_v61 = vmul.f32 0.0625, %v1909_v29  ;;  %v7194_v10 = vsel %vm5367_vm13, %v7115_v42, %v4843_v24  ;;  %v4207_v20 = vmul.f32 2.0, %v7115_v42  ;;  %4844 = vtanh.f32 %v562_v41  ;;  %v448_v42 = vpop.f32.mrf.mxu2 }
 0x1e8   :  { %v3509_v44 = vsel %vm5292_vm4, %v2932_v55, %v3377_v0  ;;  %v3510_v6 = vsel %vm5332_vm9, %v2932_v55, %v3378_v2  ;;  %v2645_v51 = vmul.u32 16, %v2581_v23  ;;  %v2965_v30 = vcvt.s32.f32 %v2581_v23 }
 0x1e9   :  { %v4025_v21 = vadd.f32 %v7075_v47, %v3509_v44  ;;  %v4026_v11 = vadd.f32 %v3898_v53, %v3510_v6  ;;  %v2037_v9 = vfloor.f32 %v1973_v61  ;;  %v1686_v40 = vsub.s32 %v1494_v50, %v1622_v36  ;;  %4272 = vst.msk [vmem:[%s9270_s5 + $0x78] sm:$0xff] %vm4256_vm10, %v4207_v20 }
 0x1ea   :  { %v2709_v7 = vsub.s32 %v7090_v5, %v2645_v51  ;;  %v3029_v46 = vadd.f32 0.5, %v2965_v30  ;;  %v7208_v16 = vmul.f32 %v3771_v34, %v7130_v14  ;;  %v3579_v37 = vmul.f32 %v5274_v33, %v7194_v10 }
 0x1eb   :  { %4154 = vst [vmem:[%s9271_s4 + $0x2d0] sm:$0xff] %v4025_v21  ;;  %v4686_v47 = vcvt.f32.s32 %v2037_v9  ;;  %v1750_v53 = vmul.u32 256, %v1686_v40  ;;  %v7216_v59 = vadd.s32 376, %v5113_v25  ;;  %v7219_v3 = vadd.s32 128, %v5113_v25 }
 0x1ec   :  { %4155 = vst.msk [vmem:[%s9271_s4 + $0x2d8] sm:$0xff] %vm4064_vm3, %v4026_v11  ;;  %v2773_v5 = vcvt.s32.f32 %v2709_v7  ;;  %v3093_v14 = vmul.f32 8.0, %v3029_v46  ;;  %v7226_v4 = vmul.f32 %v3772_v15, %v7143_v32  ;;  %v7229_v17 = vadd.f32 %v448_v42, %v5236_v8  ;;  %v657_v11 = vpop.f32.mrf.mxu3 }
 0x1ed   :  { %v4845_v31 = vpop.eup %4844  ;;  %v2165_v1 = vmul.u32 16, %v4686_v47  ;;  %v7232_v22 = vsub.s32 %v7054_v12, %v1750_v53  ;;  %v1014_v24 = vcvt.s32.f32 %v7216_v59  ;;  %v983_v19 = vcvt.s32.f32 %v7219_v3 }
 0x1ee   :  { %v2837_v52 = vadd.f32 0.5, %v2773_v5  ;;  %v3315_v58 = vsel %vm5268_vm2, %v3093_v14, %v5265_v26  ;;  %v3709_v32 = vadd.f32 %v5276_v35, %v3579_v37  ;;  %v3184_v62 = vsel %vm5386_vm14, %v562_v41, %v4845_v31 }
 0x1ef   :  { %v3316_v34 = vsel %vm5313_vm8, %v3093_v14, %v5297_v48  ;;  %v2229_v12 = vsub.s32 %v7176_v54, %v2165_v1  ;;  %v1878_v15 = vcvt.s32.f32 %v7232_v22  ;;  %v3580_v0 = vmul.f32 %v5279_v38, %v3184_v62  ;;  %v355_v1 = vpop.f32.mrf.mxu0 }
 0x1f0   :  { %v2901_v2 = vmul.f32 8.0, %v2837_v52  ;;  %v1078_v29 = vmul.f32 0.00390625, %v1014_v24  ;;  %v1047_v13 = vmul.f32 0.00390625, %v983_v19  ;;  %v7249_v55 = vadd.s32 384, %v5113_v25 }
 0x1f1   :  { %vm2293_vm0 = vcmp.ge.s32.totalorder %v2229_v12, 16  ;;  %vm2485_vm5 = vcmp.lt.s32.totalorder %v2229_v12, 0  ;;  %v1942_v23 = vmul.f32 0.0625, %v1878_v15  ;;  %v3710_v41 = vadd.f32 %v5299_v49, %v3580_v0 }
 0x1f2   :  { %v3447_v50 = vsel %vm5292_vm4, %v2901_v2, %v3315_v58  ;;  %v3448_v36 = vsel %vm5332_vm9, %v2901_v2, %v3316_v34  ;;  %v2357_v61 = vsel %vm2293_vm0, 1, %v4978_v45  ;;  %v2549_v20 = vsel %vm2485_vm5, 1, %v4978_v45  ;;  %v564_v58 = vpop.f32.mrf.mxu1 }
 0x1f3   :  { %v3963_v44 = vadd.f32 %v7166_v39, %v3447_v50  ;;  %v3964_v6 = vadd.f32 %v7169_v57, %v3448_v36  ;;  %v2421_v51 = vadd.s32 %v4686_v47, %v2357_v61  ;;  %v2006_v30 = vfloor.f32 %v1942_v23 }
 0x1f4   :  { %4846 = vtanh.f32 %v7229_v17  ;;  %v1142_v21 = vfloor.f32 %v1078_v29  ;;  %v1111_v9 = vfloor.f32 %v1047_v13  ;;  %v1015_v40 = vcvt.s32.f32 %v7249_v55 }
 0x1f5   :  { %4092 = vst [vmem:[%s9271_s4 + $0xe0] sm:$0xff] %v3963_v44  ;;  %v2613_v42 = vsub.s32 %v2421_v51, %v2549_v20  ;;  %v4624_v7 = vcvt.f32.s32 %v2006_v30  ;;  %v7266_v46 = vmul.f32 %v3709_v32, %v7194_v10  ;;  %v7269_v39 = vadd.f32 %v657_v11, %v5251_v18 }
 0x1f6   :  { %4093 = vst.msk [vmem:[%s9271_s4 + $0xe8] sm:$0xff] %vm4064_vm3, %v3964_v6  ;;  %v7275_v57 = vmul.f32 %v3710_v41, %v3184_v62  ;;  %v4560_v37 = vcvt.f32.s32 %v1142_v21  ;;  %v4498_v47 = vcvt.f32.s32 %v1111_v9  ;;  %v7278_v53 = vadd.s32 136, %v5113_v25 }
 0x1f7   :  { %v2677_v5 = vmul.u32 16, %v2613_v42  ;;  %v2997_v14 = vcvt.s32.f32 %v2613_v42  ;;  %v2134_v31 = vmul.u32 16, %v4624_v7  ;;  %v4239_v10 = vmul.f32 2.0, %v7229_v17 }
 0x1f8   :  { %v1270_v24 = vmul.u32 256, %v4560_v37  ;;  %v7282_v19 = vadd.f32 %v355_v1, %v5236_v8  ;;  %v1239_v52 = vmul.u32 256, %v4498_v47  ;;  %v1079_v32 = vmul.f32 0.00390625, %v1015_v40 }
 0x1f9   :  { %v2741_v62 = vsub.s32 %v7176_v54, %v2677_v5  ;;  %v3061_v34 = vadd.f32 0.5, %v2997_v14  ;;  %v2198_v12 = vsub.s32 %v7232_v22, %v2134_v31  ;;  %4304 = vst.msk [vmem:[%s9270_s5 + $0x178] sm:$0xff] %vm4256_vm10, %v4239_v10  ;;  %4848 = vtanh.f32 %v7269_v39 }
 0x1fa   :  { %v4847_v15 = vpop.eup %4846  ;;  %v1334_v0 = vsub.s32 %v7216_v59, %v1270_v24  ;;  %4850 = vtanh.f32 %v7282_v19  ;;  %v1303_v2 = vsub.s32 %v7219_v3, %v1239_v52  ;;  %v7295_v29 = vadd.f32 %v564_v58, %v5251_v18 }
 0x1fb   :  { %v2805_v54 = vcvt.s32.f32 %v2741_v62  ;;  %v3125_v13 = vmul.f32 8.0, %v3061_v34  ;;  %vm2262_vm6 = vcmp.ge.s32.totalorder %v2198_v12, 16  ;;  %vm2454_vm7 = vcmp.lt.s32.totalorder %v2198_v12, 0  ;;  %v451_v12 = vpop.f32.mrf.mxu2 }
 0x1fc   :  { %v2326_v23 = vsel %vm2262_vm6, 1, %v4978_v45  ;;  %v2518_v41 = vsel %vm2454_vm7, 1, %v4978_v45  ;;  %vm1398_vm11 = vcmp.ge.s32.totalorder %v1334_v0, 256  ;;  %vm1590_vm12 = vcmp.lt.s32.totalorder %v1334_v0, 0 }
 0x1fd   :  { %v2869_v50 = vadd.f32 0.5, %v2805_v54  ;;  %v3379_v36 = vsel %vm5268_vm2, %v3125_v13, %v5265_v26  ;;  %v2390_v61 = vadd.s32 %v4624_v7, %v2326_v23  ;;  %v984_v20 = vcvt.s32.f32 %v7278_v53 }
 0x1fe   :  { %v3380_v44 = vsel %vm5313_vm8, %v3125_v13, %v5297_v48  ;;  %v1462_v6 = vsel %vm1398_vm11, 1, %v4978_v45  ;;  %v1654_v51 = vsel %vm1590_vm12, 1, %v4978_v45  ;;  %vm1367_vm15 = vcmp.ge.s32.totalorder %v1303_v2, 256 }
 0x1ff   :  { %v4849_v30 = vpop.eup %4848  ;;  %v2933_v21 = vmul.f32 8.0, %v2869_v50  ;;  %v2582_v11 = vsub.s32 %v2390_v61, %v2518_v41  ;;  %v1526_v9 = vadd.s32 %v4560_v37, %v1462_v6  ;;  %v7311_v40 = vsel %vm5367_vm13, %v7229_v17, %v4847_v15 }
 0x200   :  { %v4851_v42 = vpop.eup %4850  ;;  %v1431_v7 = vsel %vm1367_vm15, 1, %v4978_v45  ;;  %vm1559_vm1 = vcmp.lt.s32.totalorder %v1303_v2, 0  ;;  %4852 = vtanh.f32 %v7295_v29  ;;  %v1143_v5 = vfloor.f32 %v1079_v32 }
 0x201   :  { %v3511_v14 = vsel %vm5292_vm4, %v2933_v21, %v3379_v36  ;;  %v3512_v31 = vsel %vm5332_vm9, %v2933_v21, %v3380_v44  ;;  %v2646_v10 = vmul.u32 16, %v2582_v11  ;;  %v2966_v37 = vcvt.s32.f32 %v2582_v11 }
 0x202   :  { %v4027_v1 = vadd.f32 %v7208_v16, %v3511_v14  ;;  %v4028_v17 = vadd.f32 %v7226_v4, %v3512_v31  ;;  %v1718_v24 = vsub.s32 %v1526_v9, %v1654_v51  ;;  %v3643_v52 = vmul.f32 %v5274_v33, %v7311_v40  ;;  %v660_v31 = vpop.f32.mrf.mxu3 }
 0x203   :  { %v2710_v58 = vsub.s32 %v7232_v22, %v2646_v10  ;;  %v3030_v62 = vadd.f32 0.5, %v2966_v37  ;;  %v7327_v32 = vsel %vm5386_vm14, %v7269_v39, %v4849_v30  ;;  %v1495_v34 = vadd.s32 %v4498_v47, %v1431_v7 }
 0x204   :  { %4156 = vst [vmem:[%s9271_s4 + $0x2e0] sm:$0xff] %v4027_v1  ;;  %v1782_v16 = vmul.u32 256, %v1718_v24  ;;  %v1623_v4 = vsel %vm1559_vm1, 1, %v4978_v45  ;;  %v7337_v22 = vsel %vm5367_vm13, %v7282_v19, %v4851_v42  ;;  %v7340_v15 = vadd.s32 392, %v5113_v25 }
 0x205   :  { %4157 = vst.msk [vmem:[%s9271_s4 + $0x2e8] sm:$0xff] %vm4064_vm3, %v4028_v17  ;;  %v2774_v39 = vcvt.s32.f32 %v2710_v58  ;;  %v3094_v47 = vmul.f32 8.0, %v3030_v62  ;;  %v1687_v0 = vsub.s32 %v1495_v34, %v1623_v4  ;;  %v4562_v54 = vcvt.f32.s32 %v1143_v5  ;;  %v358_v58 = vpop.f32.mrf.mxu0 }
 0x206   :  { %v4853_v13 = vpop.eup %4852  ;;  %v7347_v2 = vsub.s32 %v7216_v59, %v1782_v16  ;;  %v3644_v23 = vmul.f32 %v5279_v38, %v7327_v32  ;;  %v4208_v41 = vmul.f32 2.0, %v7282_v19  ;;  %v452_v50 = vadd.f32 %v451_v12, %v5236_v8 }
 0x207   :  { %v2838_v36 = vadd.f32 0.5, %v2774_v39  ;;  %v3317_v61 = vsel %vm5268_vm2, %v3094_v47, %v5265_v26  ;;  %v3773_v44 = vadd.f32 %v5276_v35, %v3643_v52  ;;  %v3581_v6 = vmul.f32 %v5274_v33, %v7337_v22 }
 0x208   :  { %v3318_v59 = vsel %vm5313_vm8, %v3094_v47, %v5297_v48  ;;  %v1910_v51 = vcvt.s32.f32 %v7347_v2  ;;  %v1751_v30 = vmul.u32 256, %v1687_v0  ;;  %4273 = vst.msk [vmem:[%s9270_s5 + $0x80] sm:$0xff] %vm4256_vm10, %v4208_v41  ;;  %v3186_v19 = vsel %vm5386_vm14, %v7295_v29, %v4853_v13 }
 0x209   :  { %v2902_v21 = vmul.f32 8.0, %v2838_v36  ;;  %v3582_v11 = vmul.f32 %v5279_v38, %v3186_v19  ;;  %4854 = vtanh.f32 %v452_v50  ;;  %v1271_v9 = vmul.u32 256, %v4562_v54 }
 0x20a   :  { %v1974_v42 = vmul.f32 0.0625, %v1910_v51  ;;  %v3774_v7 = vadd.f32 %v5299_v49, %v3644_v23  ;;  %v7373_v5 = vsub.s32 %v7219_v3, %v1751_v30  ;;  %v4240_v14 = vmul.f32 2.0, %v452_v50 }
 0x20b   :  { %v3449_v10 = vsel %vm5292_vm4, %v2902_v21, %v3317_v61  ;;  %v3450_v37 = vsel %vm5332_vm9, %v2902_v21, %v3318_v59  ;;  %v3711_v29 = vadd.f32 %v5276_v35, %v3581_v6  ;;  %v1335_v1 = vsub.s32 %v7249_v55, %v1271_v9 }
 0x20c   :  { %v3965_v17 = vadd.f32 %v7266_v46, %v3449_v10  ;;  %v3966_v24 = vadd.f32 %v7275_v57, %v3450_v37  ;;  %v2038_v52 = vfloor.f32 %v1974_v42  ;;  %v1879_v3 = vcvt.s32.f32 %v7373_v5  ;;  %4305 = vst.msk [vmem:[%s9270_s5 + $0x180] sm:$0xff] %vm4256_vm10, %v4240_v14 }
 0x20d   :  { %v3712_v62 = vadd.f32 %v5299_v49, %v3582_v11  ;;  %vm1399_vm0 = vcmp.ge.s32.totalorder %v1335_v1, 256  ;;  %vm1591_vm5 = vcmp.lt.s32.totalorder %v1335_v1, 0  ;;  %v661_v34 = vadd.f32 %v660_v31, %v5251_v18  ;;  %v567_v11 = vpop.f32.mrf.mxu1 }
 0x20e   :  { %4094 = vst [vmem:[%s9271_s4 + $0xf0] sm:$0xff] %v3965_v17  ;;  %v4688_v46 = vcvt.f32.s32 %v2038_v52  ;;  %v1943_v57 = vmul.f32 0.0625, %v1879_v3  ;;  %v1463_v12 = vsel %vm1399_vm0, 1, %v4978_v45  ;;  %v1655_v16 = vsel %vm1591_vm5, 1, %v4978_v45 }
 0x20f   :  { %v4855_v4 = vpop.eup %4854  ;;  %4095 = vst.msk [vmem:[%s9271_s4 + $0xf8] sm:$0xff] %vm4064_vm3, %v3966_v24  ;;  %v1527_v39 = vadd.s32 %v4562_v54, %v1463_v12  ;;  %4856 = vtanh.f32 %v661_v34  ;;  %v7400_v47 = vadd.f32 %v358_v58, %v5236_v8  ;;  %v1048_v0 = vmul.f32 0.00390625, %v984_v20 }
 0x210   :  { %v2166_v13 = vmul.u32 16, %v4688_v46  ;;  %v2007_v23 = vfloor.f32 %v1943_v57  ;;  %v3249_v41 = vsel %vm5367_vm13, %v452_v50, %v4855_v4  ;;  %v1016_v36 = vcvt.s32.f32 %v7340_v15 }
 0x211   :  { %v7408_v61 = vmul.f32 %v3773_v44, %v7311_v40  ;;  %v7411_v6 = vmul.f32 %v3774_v7, %v7327_v32  ;;  %v1719_v54 = vsub.s32 %v1527_v39, %v1655_v16  ;;  %v1112_v59 = vfloor.f32 %v1048_v0 }
 0x212   :  { %v2230_v51 = vsub.s32 %v7347_v2, %v2166_v13  ;;  %v4626_v30 = vcvt.f32.s32 %v2007_v23  ;;  %v7415_v20 = vmul.f32 %v3711_v29, %v7337_v22  ;;  %v7417_v21 = vmul.f32 %v3712_v62, %v3186_v19 }
 0x213   :  { %v1783_v50 = vmul.u32 256, %v1719_v54  ;;  %v3645_v9 = vmul.f32 %v5274_v33, %v3249_v41  ;;  %v4500_v42 = vcvt.f32.s32 %v1112_v59  ;;  %v1080_v40 = vmul.f32 0.00390625, %v1016_v36 }
 0x214   :  { %vm2294_vm6 = vcmp.ge.s32.totalorder %v2230_v51, 16  ;;  %vm2486_vm7 = vcmp.lt.s32.totalorder %v2230_v51, 0  ;;  %v2135_v32 = vmul.u32 16, %v4626_v30  ;;  %4858 = vtanh.f32 %v7400_v47 }
 0x215   :  { %v4857_v44 = vpop.eup %4856  ;;  %v2358_v7 = vsel %vm2294_vm6, 1, %v4978_v45  ;;  %v2550_v14 = vsel %vm2486_vm7, 1, %v4978_v45  ;;  %v7424_v22 = vsub.s32 %v7249_v55, %v1783_v50  ;;  %v568_v19 = vadd.f32 %v567_v11, %v5251_v18 }
 0x216   :  { %v2422_v31 = vadd.s32 %v4688_v46, %v2358_v7  ;;  %v2199_v10 = vsub.s32 %v7373_v5, %v2135_v32  ;;  %v1240_v37 = vmul.u32 256, %v4500_v42  ;;  %v7429_v29 = vadd.s32 144, %v5113_v25 }
 0x217   :  { %v1911_v1 = vcvt.s32.f32 %v7424_v22  ;;  %v3775_v17 = vadd.f32 %v5276_v35, %v3645_v9  ;;  %v7435_v24 = vsel %vm5386_vm14, %v661_v34, %v4857_v44  ;;  %v1144_v52 = vfloor.f32 %v1080_v40 }
 0x218   :  { %v2614_v55 = vsub.s32 %v2422_v31, %v2550_v14  ;;  %vm2263_vm11 = vcmp.ge.s32.totalorder %v2199_v10, 16  ;;  %vm2455_vm12 = vcmp.lt.s32.totalorder %v2199_v10, 0  ;;  %v1304_v3 = vsub.s32 %v7278_v53, %v1240_v37 }
 0x219   :  { %v2327_v58 = vsel %vm2263_vm11, 1, %v4978_v45  ;;  %v2519_v62 = vsel %vm2455_vm12, 1, %v4978_v45  ;;  %v1975_v46 = vmul.f32 0.0625, %v1911_v1  ;;  %4860 = vtanh.f32 %v568_v19 }
 0x21a   :  { %v4859_v57 = vpop.eup %4858  ;;  %v2678_v12 = vmul.u32 16, %v2614_v55  ;;  %v2998_v16 = vcvt.s32.f32 %v2614_v55  ;;  %v2391_v4 = vadd.s32 %v4626_v30, %v2327_v58  ;;  %vm1368_vm15 = vcmp.ge.s32.totalorder %v1304_v3, 256 }
 0x21b   :  { %v2039_v39 = vfloor.f32 %v1975_v46  ;;  %v3646_v34 = vmul.f32 %v5279_v38, %v7435_v24  ;;  %v1432_v0 = vsel %vm1368_vm15, 1, %v4978_v45  ;;  %vm1560_vm1 = vcmp.lt.s32.totalorder %v1304_v3, 0 }
 0x21c   :  { %v2742_v13 = vsub.s32 %v7347_v2, %v2678_v12  ;;  %v3062_v23 = vadd.f32 0.5, %v2998_v16  ;;  %v2583_v36 = vsub.s32 %v2391_v4, %v2519_v62  ;;  %v1496_v54 = vadd.s32 %v4500_v42, %v1432_v0  ;;  %v454_v2 = vpop.f32.mrf.mxu2 }
 0x21d   :  { %v4690_v59 = vcvt.f32.s32 %v2039_v39  ;;  %v7444_v51 = vmul.f32 %v3775_v17, %v3249_v41  ;;  %v1624_v11 = vsel %vm1560_vm1, 1, %v4978_v45  ;;  %v4209_v30 = vmul.f32 2.0, %v7400_v47 }
 0x21e   :  { %v2806_v50 = vcvt.s32.f32 %v2742_v13  ;;  %v3126_v9 = vmul.f32 8.0, %v3062_v23  ;;  %v2647_v40 = vmul.u32 16, %v2583_v36  ;;  %v2967_v32 = vcvt.s32.f32 %v2583_v36 }
 0x21f   :  { %v4861_v44 = vpop.eup %4860  ;;  %v2167_v7 = vmul.u32 16, %v4690_v59  ;;  %v3776_v14 = vadd.f32 %v5299_v49, %v3646_v34  ;;  %v1688_v31 = vsub.s32 %v1496_v54, %v1624_v11  ;;  %4274 = vst.msk [vmem:[%s9270_s5 + $0x88] sm:$0xff] %vm4256_vm10, %v4209_v30  ;;  %v4564_v41 = vcvt.f32.s32 %v1144_v52 }
 0x220   :  { %v2870_v42 = vadd.f32 0.5, %v2806_v50  ;;  %v3381_v10 = vsel %vm5268_vm2, %v3126_v9, %v5265_v26  ;;  %v2711_v37 = vsub.s32 %v7373_v5, %v2647_v40  ;;  %v7460_v1 = vsel %vm5367_vm13, %v7400_v47, %v4859_v57  ;;  %v361_v40 = vpop.f32.mrf.mxu0 }
 0x221   :  { %v3382_v17 = vsel %vm5313_vm8, %v3126_v9, %v5297_v48  ;;  %v3031_v55 = vadd.f32 0.5, %v2967_v32  ;;  %v2231_v3 = vsub.s32 %v7424_v22, %v2167_v7  ;;  %v1752_v52 = vmul.u32 256, %v1688_v31 }
 0x222   :  { %v2934_v58 = vmul.f32 8.0, %v2870_v42  ;;  %v2775_v62 = vcvt.s32.f32 %v2711_v37  ;;  %v7468_v46 = vsel %vm5386_vm14, %v568_v19, %v4861_v44  ;;  %v455_v5 = vadd.f32 %v454_v2, %v5236_v8 }
 0x223   :  { %v3095_v12 = vmul.f32 8.0, %v3031_v55  ;;  %vm2295_vm0 = vcmp.ge.s32.totalorder %v2231_v3, 16  ;;  %vm2487_vm5 = vcmp.lt.s32.totalorder %v2231_v3, 0  ;;  %v7472_v47 = vsub.s32 %v7278_v53, %v1752_v52 }
 0x224   :  { %v3513_v57 = vsel %vm5292_vm4, %v2934_v58, %v3381_v10  ;;  %v3514_v16 = vsel %vm5332_vm9, %v2934_v58, %v3382_v17  ;;  %v2839_v4 = vadd.f32 0.5, %v2775_v62  ;;  %v2359_v39 = vsel %vm2295_vm0, 1, %v4978_v45 }
 0x225   :  { %v4029_v19 = vadd.f32 %v7408_v61, %v3513_v57  ;;  %v4030_v34 = vadd.f32 %v7411_v6, %v3514_v16  ;;  %v3319_v0 = vsel %vm5268_vm2, %v3095_v12, %v5265_v26  ;;  %v3320_v53 = vsel %vm5313_vm8, %v3095_v12, %v5297_v48 }
 0x226   :  { %v2903_v13 = vmul.f32 8.0, %v2839_v4  ;;  %v2423_v23 = vadd.s32 %v4690_v59, %v2359_v39  ;;  %v2551_v36 = vsel %vm2487_vm5, 1, %v4978_v45  ;;  %v1880_v54 = vcvt.s32.f32 %v7472_v47 }
 0x227   :  { %4158 = vst [vmem:[%s9271_s4 + $0x2f0] sm:$0xff] %v4029_v19  ;;  %v7493_v61 = vmul.f32 %v3776_v14, %v7435_v24  ;;  %v3583_v6 = vmul.f32 %v5274_v33, %v7460_v1  ;;  %4862 = vtanh.f32 %v455_v5  ;;  %v1272_v11 = vmul.u32 256, %v4564_v41  ;;  %v663_v24 = vpop.f32.mrf.mxu3 }
 0x228   :  { %4159 = vst.msk [vmem:[%s9271_s4 + $0x2f8] sm:$0xff] %vm4064_vm3, %v4030_v34  ;;  %v3451_v59 = vsel %vm5292_vm4, %v2903_v13, %v3319_v0  ;;  %v3452_v30 = vsel %vm5332_vm9, %v2903_v13, %v3320_v53  ;;  %v2615_v50 = vsub.s32 %v2423_v23, %v2551_v36  ;;  %v1944_v9 = vmul.f32 0.0625, %v1880_v54 }
 0x229   :  { %v3967_v32 = vadd.f32 %v7415_v20, %v3451_v59  ;;  %v3968_v44 = vadd.f32 %v7417_v21, %v3452_v30  ;;  %v3584_v7 = vmul.f32 %v5279_v38, %v7468_v46  ;;  %v1336_v14 = vsub.s32 %v7340_v15, %v1272_v11 }
 0x22a   :  { %v2679_v31 = vmul.u32 16, %v2615_v50  ;;  %v2999_v2 = vcvt.s32.f32 %v2615_v50  ;;  %v2008_v42 = vfloor.f32 %v1944_v9  ;;  %v4241_v10 = vmul.f32 2.0, %v455_v5 }
 0x22b   :  { %4096 = vst [vmem:[%s9271_s4 + $0x100] sm:$0xff] %v3967_v32  ;;  %vm1400_vm6 = vcmp.ge.s32.totalorder %v1336_v14, 256  ;;  %vm1592_vm7 = vcmp.lt.s32.totalorder %v1336_v14, 0  ;;  %v664_v37 = vadd.f32 %v663_v24, %v5251_v18  ;;  %v7515_v20 = vadd.f32 %v361_v40, %v5236_v8  ;;  %v570_v24 = vpop.f32.mrf.mxu1 }
 0x22c   :  { %4097 = vst.msk [vmem:[%s9271_s4 + $0x108] sm:$0xff] %vm4064_vm3, %v3968_v44  ;;  %v2743_v21 = vsub.s32 %v7424_v22, %v2679_v31  ;;  %v3063_v17 = vadd.f32 0.5, %v2999_v2  ;;  %v4628_v55 = vcvt.f32.s32 %v2008_v42  ;;  %v1464_v3 = vsel %vm1400_vm6, 1, %v4978_v45 }
 0x22d   :  { %v4863_v52 = vpop.eup %4862  ;;  %v1528_v58 = vadd.s32 %v4564_v41, %v1464_v3  ;;  %v1656_v62 = vsel %vm1592_vm7, 1, %v4978_v45  ;;  %4306 = vst.msk [vmem:[%s9270_s5 + $0x188] sm:$0xff] %vm4256_vm10, %v4241_v10  ;;  %4864 = vtanh.f32 %v664_v37  ;;  %v985_v12 = vcvt.s32.f32 %v7429_v29 }
 0x22e   :  { %v2807_v57 = vcvt.s32.f32 %v2743_v21  ;;  %v3127_v16 = vmul.f32 8.0, %v3063_v17  ;;  %v2136_v4 = vmul.u32 16, %v4628_v55  ;;  %v7531_v22 = vsel %vm5367_vm13, %v455_v5, %v4863_v52 }
 0x22f   :  { %v3713_v39 = vadd.f32 %v5276_v35, %v3583_v6  ;;  %v3714_v41 = vadd.f32 %v5299_v49, %v3584_v7  ;;  %v1720_v19 = vsub.s32 %v1528_v58, %v1656_v62  ;;  %v1049_v34 = vmul.f32 0.00390625, %v985_v12 }
 0x230   :  { %v2871_v0 = vadd.f32 0.5, %v2807_v57  ;;  %v2200_v53 = vsub.s32 %v7472_v47, %v2136_v4  ;;  %v3647_v13 = vmul.f32 %v5274_v33, %v7531_v22  ;;  %4866 = vtanh.f32 %v7515_v20 }
 0x231   :  { %v3383_v23 = vsel %vm5268_vm2, %v3127_v16, %v5265_v26  ;;  %v3384_v5 = vsel %vm5313_vm8, %v3127_v16, %v5297_v48  ;;  %v1784_v36 = vmul.u32 256, %v1720_v19  ;;  %v1113_v54 = vfloor.f32 %v1049_v34  ;;  %v457_v19 = vpop.f32.mrf.mxu2 }
 0x232   :  { %v2935_v6 = vmul.f32 8.0, %v2871_v0  ;;  %vm2264_vm11 = vcmp.ge.s32.totalorder %v2200_v53, 16  ;;  %vm2456_vm12 = vcmp.lt.s32.totalorder %v2200_v53, 0  ;;  %v7546_v11 = vadd.s32 400, %v5113_v25 }
 0x233   :  { %v4865_v59 = vpop.eup %4864  ;;  %v2328_v30 = vsel %vm2264_vm11, 1, %v4978_v45  ;;  %v2520_v50 = vsel %vm2456_vm12, 1, %v4978_v45  ;;  %v7551_v9 = vsub.s32 %v7340_v15, %v1784_v36  ;;  %v7554_v40 = vadd.s32 152, %v5113_v25 }
 0x234   :  { %v3515_v32 = vsel %vm5292_vm4, %v2935_v6, %v3383_v23  ;;  %v3516_v44 = vsel %vm5332_vm9, %v2935_v6, %v3384_v5  ;;  %v2392_v7 = vadd.s32 %v4628_v55, %v2328_v30  ;;  %v7562_v14 = vsel %vm5386_vm14, %v664_v37, %v4865_v59 }
 0x235   :  { %v4031_v31 = vadd.f32 %v7444_v51, %v3515_v32  ;;  %v4032_v15 = vadd.f32 %v7493_v61, %v3516_v44  ;;  %v1912_v2 = vcvt.s32.f32 %v7551_v9  ;;  %v3648_v42 = vmul.f32 %v5279_v38, %v7562_v14 }
 0x236   :  { %v4867_v10 = vpop.eup %4866  ;;  %v2584_v21 = vsub.s32 %v2392_v7, %v2520_v50  ;;  %v4502_v17 = vcvt.f32.s32 %v1113_v54  ;;  %v571_v3 = vadd.f32 %v570_v24, %v5251_v18  ;;  %v1017_v55 = vcvt.s32.f32 %v7546_v11 }
 0x237   :  { %4160 = vst [vmem:[%s9271_s4 + $0x300] sm:$0xff] %v4031_v31  ;;  %v3841_v51 = vmul.f32 %v3713_v39, %v7460_v1  ;;  %v3842_v61 = vmul.f32 %v3714_v41, %v7468_v46  ;;  %v1976_v37 = vmul.f32 0.0625, %v1912_v2  ;;  %v986_v52 = vcvt.s32.f32 %v7554_v40 }
 0x238   :  { %4161 = vst.msk [vmem:[%s9271_s4 + $0x308] sm:$0xff] %vm4064_vm3, %v4032_v15  ;;  %v2648_v58 = vmul.u32 16, %v2584_v21  ;;  %v2968_v62 = vcvt.s32.f32 %v2584_v21  ;;  %v1241_v12 = vmul.u32 256, %v4502_v17  ;;  %4868 = vtanh.f32 %v571_v3 }
 0x239   :  { %v2040_v57 = vfloor.f32 %v1976_v37  ;;  %v3777_v16 = vadd.f32 %v5276_v35, %v3647_v13  ;;  %v3778_v4 = vadd.f32 %v5299_v49, %v3648_v42  ;;  %v1081_v1 = vmul.f32 0.00390625, %v1017_v55 }
 0x23a   :  { %v2712_v46 = vsub.s32 %v7472_v47, %v2648_v58  ;;  %v3032_v39 = vadd.f32 0.5, %v2968_v62  ;;  %v1305_v41 = vsub.s32 %v7429_v29, %v1241_v12  ;;  %v1050_v34 = vmul.f32 0.00390625, %v986_v52  ;;  %v666_v58 = vpop.f32.mrf.mxu3 }
 0x23b   :  { %v4692_v0 = vcvt.f32.s32 %v2040_v57  ;;  %v7586_v53 = vadd.f32 %v457_v19, %v5236_v8  ;;  %v1145_v23 = vfloor.f32 %v1081_v1  ;;  %v7589_v5 = vadd.s32 408, %v5113_v25 }
 0x23c   :  { %v2776_v36 = vcvt.s32.f32 %v2712_v46  ;;  %v3096_v13 = vmul.f32 8.0, %v3032_v39  ;;  %vm1369_vm15 = vcmp.ge.s32.totalorder %v1305_v41, 256  ;;  %vm1561_vm1 = vcmp.lt.s32.totalorder %v1305_v41, 0 }
 0x23d   :  { %v2168_v54 = vmul.u32 16, %v4692_v0  ;;  %v1433_v47 = vsel %vm1369_vm15, 1, %v4978_v45  ;;  %v1625_v6 = vsel %vm1561_vm1, 1, %v4978_v45  ;;  %v3189_v59 = vsel %vm5367_vm13, %v7515_v20, %v4867_v10 }
 0x23e   :  { %v4869_v30 = vpop.eup %4868  ;;  %v2840_v50 = vadd.f32 0.5, %v2776_v36  ;;  %v3321_v24 = vsel %vm5268_vm2, %v3096_v13, %v5265_v26  ;;  %v1497_v32 = vadd.s32 %v4502_v17, %v1433_v47  ;;  %v1114_v44 = vfloor.f32 %v1050_v34 }
 0x23f   :  { %v3322_v7 = vsel %vm5313_vm8, %v3096_v13, %v5297_v48  ;;  %v2232_v31 = vsub.s32 %v7551_v9, %v2168_v54  ;;  %v3585_v15 = vmul.f32 %v5274_v33, %v3189_v59  ;;  %v4210_v2 = vmul.f32 2.0, %v7515_v20 }
 0x240   :  { %v2904_v42 = vmul.f32 8.0, %v2840_v50  ;;  %v1689_v10 = vsub.s32 %v1497_v32, %v1625_v6  ;;  %v7607_v21 = vsel %vm5386_vm14, %v571_v3, %v4869_v30  ;;  %4870 = vtanh.f32 %v7586_v53 }
 0x241   :  { %vm2296_vm0 = vcmp.ge.s32.totalorder %v2232_v31, 16  ;;  %vm2488_vm5 = vcmp.lt.s32.totalorder %v2232_v31, 0  ;;  %v3715_v17 = vadd.f32 %v5276_v35, %v3585_v15  ;;  %4275 = vst.msk [vmem:[%s9270_s5 + $0x90] sm:$0xff] %vm4256_vm10, %v4210_v2  ;;  %v4566_v55 = vcvt.f32.s32 %v1145_v23  ;;  %v573_v31 = vpop.f32.mrf.mxu1 }
 0x242   :  { %v3453_v20 = vsel %vm5292_vm4, %v2904_v42, %v3321_v24  ;;  %v3454_v37 = vsel %vm5332_vm9, %v2904_v42, %v3322_v7  ;;  %v2360_v3 = vsel %vm2296_vm0, 1, %v4978_v45  ;;  %v2552_v52 = vsel %vm2488_vm5, 1, %v4978_v45 }
 0x243   :  { %v3969_v62 = vadd.f32 %v3841_v51, %v3453_v20  ;;  %v3970_v12 = vadd.f32 %v3842_v61, %v3454_v37  ;;  %v2424_v57 = vadd.s32 %v4692_v0, %v2360_v3  ;;  %v1753_v1 = vmul.u32 256, %v1689_v10  ;;  %v364_v61 = vpop.f32.mrf.mxu0 }
 0x244   :  { %v7622_v46 = vmul.f32 %v3777_v16, %v7531_v22  ;;  %v1273_v39 = vmul.u32 256, %v4566_v55  ;;  %v4242_v41 = vmul.f32 2.0, %v7586_v53  ;;  %v3906_v34 = vmul.f32 %v3778_v4, %v7562_v14 }
 0x245   :  { %4098 = vst [vmem:[%s9271_s4 + $0x110] sm:$0xff] %v3969_v62  ;;  %v2616_v19 = vsub.s32 %v2424_v57, %v2552_v52  ;;  %v7630_v23 = vsub.s32 %v7429_v29, %v1753_v1  ;;  %v667_v51 = vadd.f32 %v666_v58, %v5251_v18  ;;  %v3586_v22 = vmul.f32 %v5279_v38, %v7607_v21 }
 0x246   :  { %v4871_v0 = vpop.eup %4870  ;;  %4099 = vst.msk [vmem:[%s9271_s4 + $0x118] sm:$0xff] %vm4064_vm3, %v3970_v12  ;;  %v1337_v16 = vsub.s32 %v7546_v11, %v1273_v39  ;;  %v4504_v36 = vcvt.f32.s32 %v1114_v44  ;;  %v1018_v14 = vcvt.s32.f32 %v7589_v5  ;;  %v7642_v54 = vmul.f32 %v3715_v17, %v3189_v59 }
 0x247   :  { %v2680_v4 = vmul.u32 16, %v2616_v19  ;;  %v3000_v29 = vcvt.s32.f32 %v2616_v19  ;;  %v1881_v13 = vcvt.s32.f32 %v7630_v23  ;;  %4307 = vst.msk [vmem:[%s9270_s5 + $0x190] sm:$0xff] %vm4256_vm10, %v4242_v41  ;;  %4872 = vtanh.f32 %v667_v51 }
 0x248   :  { %vm1401_vm6 = vcmp.ge.s32.totalorder %v1337_v16, 256  ;;  %vm1593_vm7 = vcmp.lt.s32.totalorder %v1337_v16, 0  ;;  %v365_v47 = vadd.f32 %v364_v61, %v5236_v8  ;;  %v3253_v44 = vsel %vm5367_vm13, %v7586_v53, %v4871_v0 }
 0x249   :  { %v2744_v6 = vsub.s32 %v7551_v9, %v2680_v4  ;;  %v3064_v30 = vadd.f32 0.5, %v3000_v29  ;;  %v1945_v50 = vmul.f32 0.0625, %v1881_v13  ;;  %v1465_v24 = vsel %vm1401_vm6, 1, %v4978_v45 }
 0x24a   :  { %v1529_v32 = vadd.s32 %v4566_v55, %v1465_v24  ;;  %v1657_v59 = vsel %vm1593_vm7, 1, %v4978_v45  ;;  %v1242_v7 = vmul.u32 256, %v4504_v36  ;;  %v1082_v10 = vmul.f32 0.00390625, %v1018_v14 }
 0x24b   :  { %v2808_v15 = vcvt.s32.f32 %v2744_v6  ;;  %v3128_v2 = vmul.f32 8.0, %v3064_v30  ;;  %v2009_v42 = vfloor.f32 %v1945_v50  ;;  %v3716_v17 = vadd.f32 %v5299_v49, %v3586_v22 }
 0x24c   :  { %v1721_v9 = vsub.s32 %v1529_v32, %v1657_v59  ;;  %4874 = vtanh.f32 %v365_v47  ;;  %v1306_v20 = vsub.s32 %v7554_v40, %v1242_v7  ;;  %v3649_v3 = vmul.f32 %v5274_v33, %v3253_v44 }
 0x24d   :  { %v2872_v37 = vadd.f32 0.5, %v2808_v15  ;;  %v4630_v55 = vcvt.f32.s32 %v2009_v42  ;;  %v7659_v52 = vadd.f32 %v573_v31, %v5251_v18  ;;  %v4873_v53 = vpop.eup %4872  ;;  %v3385_v58 = vsel %vm5268_vm2, %v3128_v2, %v5265_v26 }
 0x24e   :  { %v3386_v62 = vsel %vm5313_vm8, %v3128_v2, %v5297_v48  ;;  %v1785_v12 = vmul.u32 256, %v1721_v9  ;;  %vm1370_vm11 = vcmp.ge.s32.totalorder %v1306_v20, 256  ;;  %v1146_v41 = vfloor.f32 %v1082_v10  ;;  %v669_v9 = vpop.f32.mrf.mxu3 }
 0x24f   :  { %v2936_v57 = vmul.f32 8.0, %v2872_v37  ;;  %v2137_v1 = vmul.u32 16, %v4630_v55  ;;  %v1434_v39 = vsel %vm1370_vm11, 1, %v4978_v45  ;;  %vm1562_vm12 = vcmp.lt.s32.totalorder %v1306_v20, 0 }
 0x250   :  { %v7669_v19 = vsub.s32 %v7546_v11, %v1785_v12  ;;  %v1498_v61 = vadd.s32 %v4504_v36, %v1434_v39  ;;  %v4211_v0 = vmul.f32 2.0, %v365_v47  ;;  %v7678_v4 = vsel %vm5386_vm14, %v667_v51, %v4873_v53  ;;  %v460_v51 = vpop.f32.mrf.mxu2 }
 0x251   :  { %v3517_v22 = vsel %vm5292_vm4, %v2936_v57, %v3385_v58  ;;  %v3518_v16 = vsel %vm5332_vm9, %v2936_v57, %v3386_v62  ;;  %v2201_v14 = vsub.s32 %v7630_v23, %v2137_v1  ;;  %v1626_v6 = vsel %vm1562_vm12, 1, %v4978_v45 }
 0x252   :  { %v4875_v29 = vpop.eup %4874  ;;  %v4033_v13 = vadd.f32 %v7622_v46, %v3517_v22  ;;  %v4034_v11 = vadd.f32 %v3906_v34, %v3518_v16  ;;  %v1913_v36 = vcvt.s32.f32 %v7669_v19  ;;  %4276 = vst.msk [vmem:[%s9270_s5 + $0x98] sm:$0xff] %vm4256_vm10, %v4211_v0  ;;  %v3779_v30 = vadd.f32 %v5276_v35, %v3649_v3 }
 0x253   :  { %vm2265_vm15 = vcmp.ge.s32.totalorder %v2201_v14, 16  ;;  %vm2457_vm1 = vcmp.lt.s32.totalorder %v2201_v14, 0  ;;  %v1690_v50 = vsub.s32 %v1498_v61, %v1626_v6  ;;  %v3650_v32 = vmul.f32 %v5279_v38, %v7678_v4 }
 0x254   :  { %4162 = vst [vmem:[%s9271_s4 + $0x310] sm:$0xff] %v4033_v13  ;;  %v2329_v46 = vsel %vm2265_vm15, 1, %v4978_v45  ;;  %v2521_v34 = vsel %vm2457_vm1, 1, %v4978_v45  ;;  %v1977_v24 = vmul.f32 0.0625, %v1913_v36  ;;  %v3191_v31 = vsel %vm5367_vm13, %v365_v47, %v4875_v29 }
 0x255   :  { %4163 = vst.msk [vmem:[%s9271_s4 + $0x318] sm:$0xff] %vm4064_vm3, %v4034_v11  ;;  %v2393_v59 = vadd.s32 %v4630_v55, %v2329_v46  ;;  %v1754_v7 = vmul.u32 256, %v1690_v50  ;;  %4876 = vtanh.f32 %v7659_v52  ;;  %v7703_v15 = vmul.f32 %v3716_v17, %v7607_v21 }
 0x256   :  { %v2041_v2 = vfloor.f32 %v1977_v24  ;;  %v461_v42 = vadd.f32 %v460_v51, %v5236_v8  ;;  %v4568_v10 = vcvt.f32.s32 %v1146_v41  ;;  %v7706_v37 = vmul.f32 %v3779_v30, %v3253_v44 }
 0x257   :  { %v2585_v20 = vsub.s32 %v2393_v59, %v2521_v34  ;;  %v7709_v3 = vsub.s32 %v7554_v40, %v1754_v7  ;;  %v670_v55 = vadd.f32 %v669_v9, %v5251_v18  ;;  %v3780_v47 = vadd.f32 %v5299_v49, %v3650_v32 }
 0x258   :  { %v4694_v53 = vcvt.f32.s32 %v2041_v2  ;;  %v3587_v58 = vmul.f32 %v5274_v33, %v3191_v31  ;;  %v1274_v21 = vmul.u32 256, %v4568_v10  ;;  %v7716_v57 = vadd.s32 160, %v5113_v25 }
 0x259   :  { %v2649_v17 = vmul.u32 16, %v2585_v20  ;;  %v2969_v62 = vcvt.s32.f32 %v2585_v20  ;;  %v1882_v12 = vcvt.s32.f32 %v7709_v3  ;;  %4878 = vtanh.f32 %v461_v42 }
 0x25a   :  { %v2169_v44 = vmul.u32 16, %v4694_v53  ;;  %v1338_v40 = vsub.s32 %v7589_v5, %v1274_v21  ;;  %v4243_v1 = vmul.f32 2.0, %v461_v42  ;;  %4880 = vtanh.f32 %v670_v55 }
 0x25b   :  { %v4877_v39 = vpop.eup %4876  ;;  %v2713_v41 = vsub.s32 %v7630_v23, %v2649_v17  ;;  %v3033_v61 = vadd.f32 0.5, %v2969_v62  ;;  %v1946_v0 = vmul.f32 0.0625, %v1882_v12  ;;  %v3717_v23 = vadd.f32 %v5276_v35, %v3587_v58  ;;  %v367_v12 = vpop.f32.mrf.mxu0 }
 0x25c   :  { %v2233_v22 = vsub.s32 %v7669_v19, %v2169_v44  ;;  %v3192_v16 = vsel %vm5386_vm14, %v7659_v52, %v4877_v39  ;;  %vm1402_vm0 = vcmp.ge.s32.totalorder %v1338_v40, 256  ;;  %vm1594_vm5 = vcmp.lt.s32.totalorder %v1338_v40, 0  ;;  %4308 = vst.msk [vmem:[%s9270_s5 + $0x198] sm:$0xff] %vm4256_vm10, %v4243_v1 }
 0x25d   :  { %v2777_v14 = vcvt.s32.f32 %v2713_v41  ;;  %v3097_v29 = vmul.f32 8.0, %v3033_v61  ;;  %v2010_v13 = vfloor.f32 %v1946_v0  ;;  %v3588_v11 = vmul.f32 %v5279_v38, %v3192_v16 }
 0x25e   :  { %vm2297_vm6 = vcmp.ge.s32.totalorder %v2233_v22, 16  ;;  %vm2489_vm7 = vcmp.lt.s32.totalorder %v2233_v22, 0  ;;  %v1466_v36 = vsel %vm1402_vm0, 1, %v4978_v45  ;;  %v1658_v50 = vsel %vm1594_vm5, 1, %v4978_v45 }
 0x25f   :  { %v2841_v6 = vadd.f32 0.5, %v2777_v14  ;;  %v3323_v52 = vsel %vm5268_vm2, %v3097_v29, %v5265_v26  ;;  %v2361_v30 = vsel %vm2297_vm6, 1, %v4978_v45  ;;  %v4879_v51 = vpop.eup %4878  ;;  %v3324_v46 = vsel %vm5313_vm8, %v3097_v29, %v5297_v48 }
 0x260   :  { %v2425_v34 = vadd.s32 %v4694_v53, %v2361_v30  ;;  %v2553_v24 = vsel %vm2489_vm7, 1, %v4978_v45  ;;  %v4632_v32 = vcvt.f32.s32 %v2010_v13  ;;  %v4881_v59 = vpop.eup %4880  ;;  %v3908_v2 = vmul.f32 %v3780_v47, %v7678_v4  ;;  %v576_v30 = vpop.f32.mrf.mxu1 }
 0x261   :  { %v2905_v7 = vmul.f32 8.0, %v2841_v6  ;;  %v1530_v9 = vadd.s32 %v4568_v10, %v1466_v36  ;;  %v987_v20 = vcvt.s32.f32 %v7716_v57  ;;  %v7742_v17 = vmul.f32 %v3717_v23, %v3191_v31 }
 0x262   :  { %v2617_v58 = vsub.s32 %v2425_v34, %v2553_v24  ;;  %v2138_v21 = vmul.u32 16, %v4632_v32  ;;  %v3718_v62 = vadd.f32 %v5299_v49, %v3588_v11  ;;  %v7751_v4 = vsel %vm5367_vm13, %v461_v42, %v4879_v51 }
 0x263   :  { %v3455_v53 = vsel %vm5292_vm4, %v2905_v7, %v3323_v52  ;;  %v3456_v44 = vsel %vm5332_vm9, %v2905_v7, %v3324_v46  ;;  %v1722_v40 = vsub.s32 %v1530_v9, %v1658_v50  ;;  %v7758_v61 = vsel %vm5386_vm14, %v670_v55, %v4881_v59 }
 0x264   :  { %v3971_v10 = vadd.f32 %v7642_v54, %v3455_v53  ;;  %v3972_v47 = vadd.f32 %v7703_v15, %v3456_v44  ;;  %v2681_v31 = vmul.u32 16, %v2617_v58  ;;  %v3001_v1 = vcvt.s32.f32 %v2617_v58 }
 0x265   :  { %v2202_v39 = vsub.s32 %v7709_v3, %v2138_v21  ;;  %v1786_v41 = vmul.u32 256, %v1722_v40  ;;  %v7761_v0 = vadd.f32 %v367_v12, %v5236_v8  ;;  %v3651_v15 = vmul.f32 %v5274_v33, %v7751_v4 }
 0x266   :  { %4100 = vst [vmem:[%s9271_s4 + $0x120] sm:$0xff] %v3971_v10  ;;  %v2745_v54 = vsub.s32 %v7669_v19, %v2681_v31  ;;  %v3065_v42 = vadd.f32 0.5, %v3001_v1  ;;  %v1051_v22 = vmul.f32 0.00390625, %v987_v20  ;;  %v7773_v55 = vmul.f32 %v3718_v62, %v3192_v16 }
 0x267   :  { %4101 = vst.msk [vmem:[%s9271_s4 + $0x128] sm:$0xff] %vm4064_vm3, %v3972_v47  ;;  %vm2266_vm11 = vcmp.ge.s32.totalorder %v2202_v39, 16  ;;  %vm2458_vm12 = vcmp.lt.s32.totalorder %v2202_v39, 0  ;;  %v7776_v14 = vsub.s32 %v7589_v5, %v1786_v41  ;;  %v3652_v6 = vmul.f32 %v5279_v38, %v7758_v61  ;;  %v463_v39 = vpop.f32.mrf.mxu2 }
 0x268   :  { %v2809_v29 = vcvt.s32.f32 %v2745_v54  ;;  %v3129_v13 = vmul.f32 8.0, %v3065_v42  ;;  %v2330_v19 = vsel %vm2266_vm11, 1, %v4978_v45  ;;  %v2522_v23 = vsel %vm2458_vm12, 1, %v4978_v45 }
 0x269   :  { %v2394_v11 = vadd.s32 %v4632_v32, %v2330_v19  ;;  %v1914_v36 = vcvt.s32.f32 %v7776_v14  ;;  %v1115_v52 = vfloor.f32 %v1051_v22  ;;  %v3781_v51 = vadd.f32 %v5276_v35, %v3651_v15 }
 0x26a   :  { %v2873_v50 = vadd.f32 0.5, %v2809_v29  ;;  %v3387_v5 = vsel %vm5268_vm2, %v3129_v13, %v5265_v26  ;;  %v3388_v16 = vsel %vm5313_vm8, %v3129_v13, %v5297_v48  ;;  %v7791_v32 = vadd.s32 416, %v5113_v25 }
 0x26b   :  { %v2586_v46 = vsub.s32 %v2394_v11, %v2522_v23  ;;  %v1978_v34 = vmul.f32 0.0625, %v1914_v36  ;;  %v4506_v24 = vcvt.f32.s32 %v1115_v52  ;;  %4882 = vtanh.f32 %v7761_v0 }
 0x26c   :  { %v2937_v59 = vmul.f32 8.0, %v2873_v50  ;;  %v577_v7 = vadd.f32 %v576_v30, %v5251_v18  ;;  %v7796_v9 = vadd.s32 168, %v5113_v25  ;;  %v3782_v44 = vadd.f32 %v5299_v49, %v3652_v6 }
 0x26d   :  { %v2650_v20 = vmul.u32 16, %v2586_v46  ;;  %v2970_v58 = vcvt.s32.f32 %v2586_v46  ;;  %v2042_v21 = vfloor.f32 %v1978_v34  ;;  %v1243_v62 = vmul.u32 256, %v4506_v24 }
 0x26e   :  { %v3519_v12 = vsel %vm5292_vm4, %v2937_v59, %v3387_v5  ;;  %v3520_v53 = vsel %vm5332_vm9, %v2937_v59, %v3388_v16  ;;  %v1019_v40 = vcvt.s32.f32 %v7791_v32  ;;  %4884 = vtanh.f32 %v577_v7 }
 0x26f   :  { %v4035_v10 = vadd.f32 %v7706_v37, %v3519_v12  ;;  %v4036_v47 = vadd.f32 %v3908_v2, %v3520_v53  ;;  %v2714_v31 = vsub.s32 %v7709_v3, %v2650_v20  ;;  %v3034_v1 = vadd.f32 0.5, %v2970_v58 }
 0x270   :  { %v4696_v41 = vcvt.f32.s32 %v2042_v21  ;;  %v1307_v54 = vsub.s32 %v7716_v57, %v1243_v62  ;;  %v988_v42 = vcvt.s32.f32 %v7796_v9  ;;  %v4212_v29 = vmul.f32 2.0, %v7761_v0  ;;  %v672_v21 = vpop.f32.mrf.mxu3 }
 0x271   :  { %4164 = vst [vmem:[%s9271_s4 + $0x320] sm:$0xff] %v4035_v10  ;;  %v2778_v15 = vcvt.s32.f32 %v2714_v31  ;;  %v3098_v22 = vmul.f32 8.0, %v3034_v1  ;;  %v1083_v37 = vmul.f32 0.00390625, %v1019_v40  ;;  %v4883_v2 = vpop.eup %4882  ;;  %v464_v13 = vadd.f32 %v463_v39, %v5236_v8  ;;  %v370_v40 = vpop.f32.mrf.mxu0 }
 0x272   :  { %4165 = vst.msk [vmem:[%s9271_s4 + $0x328] sm:$0xff] %vm4064_vm3, %v4036_v47  ;;  %v2170_v3 = vmul.u32 16, %v4696_v41  ;;  %vm1371_vm15 = vcmp.ge.s32.totalorder %v1307_v54, 256  ;;  %vm1563_vm1 = vcmp.lt.s32.totalorder %v1307_v54, 0  ;;  %v7821_v11 = vmul.f32 %v3781_v51, %v7751_v4 }
 0x273   :  { %v2842_v19 = vadd.f32 0.5, %v2778_v15  ;;  %v3325_v23 = vsel %vm5268_vm2, %v3098_v22, %v5265_v26  ;;  %v1435_v36 = vsel %vm1371_vm15, 1, %v4978_v45  ;;  %4277 = vst.msk [vmem:[%s9270_s5 + $0xa0] sm:$0xff] %vm4256_vm10, %v4212_v29  ;;  %v3326_v6 = vsel %vm5313_vm8, %v3098_v22, %v5297_v48 }
 0x274   :  { %v2234_v52 = vsub.s32 %v7776_v14, %v2170_v3  ;;  %v1499_v30 = vadd.s32 %v4506_v24, %v1435_v36  ;;  %v1627_v50 = vsel %vm1563_vm1, 1, %v4978_v45  ;;  %v7836_v4 = vsel %vm5367_vm13, %v7761_v0, %v4883_v2  ;;  %v4885_v46 = vpop.eup %4884 }
 0x275   :  { %v2906_v5 = vmul.f32 8.0, %v2842_v19  ;;  %v1147_v16 = vfloor.f32 %v1083_v37  ;;  %v1052_v51 = vmul.f32 0.00390625, %v988_v42  ;;  %4886 = vtanh.f32 %v464_v13 }
 0x276   :  { %vm2298_vm0 = vcmp.ge.s32.totalorder %v2234_v52, 16  ;;  %vm2490_vm5 = vcmp.lt.s32.totalorder %v2234_v52, 0  ;;  %v1691_v34 = vsub.s32 %v1499_v30, %v1627_v50  ;;  %v7847_v10 = vmul.f32 %v3782_v44, %v7758_v61  ;;  %v579_v61 = vpop.f32.mrf.mxu1 }
 0x277   :  { %v3457_v59 = vsel %vm5292_vm4, %v2906_v5, %v3325_v23  ;;  %v3458_v24 = vsel %vm5332_vm9, %v2906_v5, %v3326_v6  ;;  %v2362_v20 = vsel %vm2298_vm0, 1, %v4978_v45  ;;  %v2554_v58 = vsel %vm2490_vm5, 1, %v4978_v45 }
 0x278   :  { %v3973_v0 = vadd.f32 %v7742_v17, %v3457_v59  ;;  %v3974_v62 = vadd.f32 %v7773_v55, %v3458_v24  ;;  %v2426_v12 = vadd.s32 %v4696_v41, %v2362_v20  ;;  %v1755_v53 = vmul.u32 256, %v1691_v34 }
 0x279   :  { %v7851_v47 = vsel %vm5386_vm14, %v577_v7, %v4885_v46  ;;  %v4570_v31 = vcvt.f32.s32 %v1147_v16  ;;  %v4244_v1 = vmul.f32 2.0, %v464_v13  ;;  %v673_v55 = vadd.f32 %v672_v21, %v5251_v18 }
 0x27a   :  { %4102 = vst [vmem:[%s9271_s4 + $0x130] sm:$0xff] %v3973_v0  ;;  %v2618_v39 = vsub.s32 %v2426_v12, %v2554_v58  ;;  %v7857_v17 = vsub.s32 %v7716_v57, %v1755_v53  ;;  %v7861_v41 = vadd.f32 %v370_v40, %v5236_v8  ;;  %v3589_v7 = vmul.f32 %v5274_v33, %v7836_v4 }
 0x27b   :  { %4103 = vst.msk [vmem:[%s9271_s4 + $0x138] sm:$0xff] %vm4064_vm3, %v3974_v62  ;;  %v1275_v44 = vmul.u32 256, %v4570_v31  ;;  %v1116_v54 = vfloor.f32 %v1052_v51  ;;  %v7870_v42 = vadd.s32 424, %v5113_v25  ;;  %v4887_v57 = vpop.eup %4886  ;;  %v3590_v37 = vmul.f32 %v5279_v38, %v7851_v47 }
 0x27c   :  { %v2682_v15 = vmul.u32 16, %v2618_v39  ;;  %v3002_v22 = vcvt.s32.f32 %v2618_v39  ;;  %v1883_v29 = vcvt.s32.f32 %v7857_v17  ;;  %4309 = vst.msk [vmem:[%s9270_s5 + $0x1a0] sm:$0xff] %vm4256_vm10, %v4244_v1  ;;  %4888 = vtanh.f32 %v673_v55 }
 0x27d   :  { %v1339_v2 = vsub.s32 %v7791_v32, %v1275_v44  ;;  %v4508_v3 = vcvt.f32.s32 %v1116_v54  ;;  %v7881_v19 = vadd.f32 %v579_v61, %v5251_v18  ;;  %4890 = vtanh.f32 %v7861_v41 }
 0x27e   :  { %v2746_v23 = vsub.s32 %v7776_v14, %v2682_v15  ;;  %v3066_v36 = vadd.f32 0.5, %v3002_v22  ;;  %v1947_v6 = vmul.f32 0.0625, %v1883_v29  ;;  %v3257_v52 = vsel %vm5367_vm13, %v464_v13, %v4887_v57 }
 0x27f   :  { %vm1403_vm6 = vcmp.ge.s32.totalorder %v1339_v2, 256  ;;  %vm1595_vm7 = vcmp.lt.s32.totalorder %v1339_v2, 0  ;;  %v1244_v30 = vmul.u32 256, %v4508_v3  ;;  %v3653_v14 = vmul.f32 %v5274_v33, %v3257_v52 }
 0x280   :  { %v2810_v50 = vcvt.s32.f32 %v2746_v23  ;;  %v3130_v5 = vmul.f32 8.0, %v3066_v36  ;;  %v2011_v16 = vfloor.f32 %v1947_v6  ;;  %v1467_v51 = vsel %vm1403_vm6, 1, %v4978_v45 }
 0x281   :  { %v1531_v46 = vadd.s32 %v4570_v31, %v1467_v51  ;;  %v1659_v34 = vsel %vm1595_vm7, 1, %v4978_v45  ;;  %v1308_v59 = vsub.s32 %v7796_v9, %v1244_v30  ;;  %v3719_v58 = vadd.f32 %v5276_v35, %v3589_v7 }
 0x282   :  { %v2874_v24 = vadd.f32 0.5, %v2810_v50  ;;  %v4634_v20 = vcvt.f32.s32 %v2011_v16  ;;  %4892 = vtanh.f32 %v7881_v19  ;;  %v4889_v13 = vpop.eup %4888  ;;  %v3389_v21 = vsel %vm5268_vm2, %v3130_v5, %v5265_v26 }
 0x283   :  { %v3390_v0 = vsel %vm5313_vm8, %v3130_v5, %v5297_v48  ;;  %v1723_v62 = vsub.s32 %v1531_v46, %v1659_v34  ;;  %vm1372_vm11 = vcmp.ge.s32.totalorder %v1308_v59, 256  ;;  %v4891_v12 = vpop.eup %4890  ;;  %v3720_v31 = vadd.f32 %v5299_v49, %v3590_v37  ;;  %v466_v5 = vpop.f32.mrf.mxu2 }
 0x284   :  { %v2938_v53 = vmul.f32 8.0, %v2874_v24  ;;  %v2139_v40 = vmul.u32 16, %v4634_v20  ;;  %v1436_v1 = vsel %vm1372_vm11, 1, %v4978_v45  ;;  %v3783_v61 = vadd.f32 %v5276_v35, %v3653_v14 }
 0x285   :  { %v1787_v39 = vmul.u32 256, %v1723_v62  ;;  %v1500_v7 = vadd.s32 %v4508_v3, %v1436_v1  ;;  %vm1564_vm12 = vcmp.lt.s32.totalorder %v1308_v59, 0  ;;  %v7909_v15 = vsel %vm5386_vm14, %v673_v55, %v4889_v13 }
 0x286   :  { %v3521_v44 = vsel %vm5292_vm4, %v2938_v53, %v3389_v21  ;;  %v3522_v54 = vsel %vm5332_vm9, %v2938_v53, %v3390_v0  ;;  %v2203_v57 = vsub.s32 %v7857_v17, %v2139_v40  ;;  %v1628_v2 = vsel %vm1564_vm12, 1, %v4978_v45  ;;  %v675_v53 = vpop.f32.mrf.mxu3 }
 0x287   :  { %v4037_v22 = vadd.f32 %v7821_v11, %v3521_v44  ;;  %v4038_v29 = vadd.f32 %v7847_v10, %v3522_v54  ;;  %v7914_v37 = vsub.s32 %v7791_v32, %v1787_v39  ;;  %v7918_v23 = vmul.f32 %v3719_v58, %v7836_v4 }
 0x288   :  { %v4893_v3 = vpop.eup %4892  ;;  %vm2267_vm15 = vcmp.ge.s32.totalorder %v2203_v57, 16  ;;  %vm2459_vm1 = vcmp.lt.s32.totalorder %v2203_v57, 0  ;;  %v1692_v36 = vsub.s32 %v1500_v7, %v1628_v2  ;;  %v7929_v55 = vsel %vm5367_vm13, %v7861_v41, %v4891_v12 }
 0x289   :  { %4166 = vst [vmem:[%s9271_s4 + $0x330] sm:$0xff] %v4037_v22  ;;  %v2331_v11 = vsel %vm2267_vm15, 1, %v4978_v45  ;;  %v2523_v10 = vsel %vm2459_vm1, 1, %v4978_v45  ;;  %v1915_v32 = vcvt.s32.f32 %v7914_v37  ;;  %v3654_v6 = vmul.f32 %v5279_v38, %v7909_v15 }
 0x28a   :  { %4167 = vst.msk [vmem:[%s9271_s4 + $0x338] sm:$0xff] %vm4064_vm3, %v4038_v29  ;;  %v2395_v4 = vadd.s32 %v4634_v20, %v2331_v11  ;;  %v1756_v30 = vmul.u32 256, %v1692_v36  ;;  %v4213_v50 = vmul.f32 2.0, %v7861_v41  ;;  %v3848_v16 = vmul.f32 %v3720_v31, %v7851_v47 }
 0x28b   :  { %v1979_v51 = vmul.f32 0.0625, %v1915_v32  ;;  %v7939_v46 = vmul.f32 %v3783_v61, %v3257_v52  ;;  %v1020_v34 = vcvt.s32.f32 %v7870_v42  ;;  %v3591_v24 = vmul.f32 %v5274_v33, %v7929_v55 }
 0x28c   :  { %v2587_v14 = vsub.s32 %v2395_v4, %v2523_v10  ;;  %v7943_v59 = vsub.s32 %v7796_v9, %v1756_v30  ;;  %4278 = vst.msk [vmem:[%s9270_s5 + $0xa8] sm:$0xff] %vm4256_vm10, %v4213_v50  ;;  %v7954_v47 = vsel %vm5386_vm14, %v7881_v19, %v4893_v3  ;;  %v7957_v52 = vadd.f32 %v466_v5, %v5236_v8 }
 0x28d   :  { %v2043_v41 = vfloor.f32 %v1979_v51  ;;  %v1084_v20 = vmul.f32 0.00390625, %v1020_v34  ;;  %v7960_v9 = vadd.s32 176, %v5113_v25  ;;  %v3784_v21 = vadd.f32 %v5299_v49, %v3654_v6 }
 0x28e   :  { %v2651_v58 = vmul.u32 16, %v2587_v14  ;;  %v2971_v13 = vcvt.s32.f32 %v2587_v14  ;;  %v1884_v0 = vcvt.s32.f32 %v7943_v59  ;;  %v3592_v12 = vmul.f32 %v5279_v38, %v7954_v47 }
 0x28f   :  { %v4698_v62 = vcvt.f32.s32 %v2043_v41  ;;  %v1148_v19 = vfloor.f32 %v1084_v20  ;;  %v989_v40 = vcvt.s32.f32 %v7960_v9  ;;  %v7969_v61 = vadd.f32 %v675_v53, %v5251_v18  ;;  %v373_v41 = vpop.f32.mrf.mxu0 }
 0x290   :  { %v2715_v31 = vsub.s32 %v7857_v17, %v2651_v58  ;;  %v3035_v1 = vadd.f32 0.5, %v2971_v13  ;;  %v1948_v39 = vmul.f32 0.0625, %v1884_v0  ;;  %v3721_v44 = vadd.f32 %v5276_v35, %v3591_v24 }
 0x291   :  { %v2171_v7 = vmul.u32 16, %v4698_v62  ;;  %4894 = vtanh.f32 %v7957_v52  ;;  %v4572_v54 = vcvt.f32.s32 %v1148_v19  ;;  %v4245_v2 = vmul.f32 2.0, %v7957_v52 }
 0x292   :  { %v2779_v57 = vcvt.s32.f32 %v2715_v31  ;;  %v3099_v22 = vmul.f32 8.0, %v3035_v1  ;;  %v2012_v29 = vfloor.f32 %v1948_v39  ;;  %v3722_v17 = vadd.f32 %v5299_v49, %v3592_v12 }
 0x293   :  { %v2235_v3 = vsub.s32 %v7914_v37, %v2171_v7  ;;  %v1276_v36 = vmul.u32 256, %v4572_v54  ;;  %v1053_v11 = vmul.f32 0.00390625, %v989_v40  ;;  %4310 = vst.msk [vmem:[%s9270_s5 + $0x1a8] sm:$0xff] %vm4256_vm10, %v4245_v2  ;;  %4896 = vtanh.f32 %v7969_v61 }
 0x294   :  { %v2843_v10 = vadd.f32 0.5, %v2779_v57  ;;  %v3327_v32 = vsel %vm5268_vm2, %v3099_v22, %v5265_v26  ;;  %v4636_v4 = vcvt.f32.s32 %v2012_v29  ;;  %v3328_v6 = vsel %vm5313_vm8, %v3099_v22, %v5297_v48 }
 0x295   :  { %vm2299_vm0 = vcmp.ge.s32.totalorder %v2235_v3, 16  ;;  %vm2491_vm5 = vcmp.lt.s32.totalorder %v2235_v3, 0  ;;  %v1340_v30 = vsub.s32 %v7870_v42, %v1276_v36  ;;  %v1117_v20 = vfloor.f32 %v1053_v11  ;;  %v582_v3 = vpop.f32.mrf.mxu1 }
 0x296   :  { %v2907_v50 = vmul.f32 8.0, %v2843_v10  ;;  %v2363_v5 = vsel %vm2299_vm0, 1, %v4978_v45  ;;  %v2555_v51 = vsel %vm2491_vm5, 1, %v4978_v45  ;;  %v2140_v34 = vmul.u32 16, %v4636_v4 }
 0x297   :  { %v4895_v14 = vpop.eup %4894  ;;  %v2427_v24 = vadd.s32 %v4698_v62, %v2363_v5  ;;  %vm1404_vm6 = vcmp.ge.s32.totalorder %v1340_v30, 256  ;;  %vm1596_vm7 = vcmp.lt.s32.totalorder %v1340_v30, 0  ;;  %v374_v39 = vadd.f32 %v373_v41, %v5236_v8 }
 0x298   :  { %v3459_v58 = vsel %vm5292_vm4, %v2907_v50, %v3327_v32  ;;  %v3460_v13 = vsel %vm5332_vm9, %v2907_v50, %v3328_v6  ;;  %v2204_v0 = vsub.s32 %v7943_v59, %v2140_v34  ;;  %v1468_v12 = vsel %vm1404_vm6, 1, %v4978_v45 }
 0x299   :  { %v3975_v19 = vadd.f32 %v7918_v23, %v3459_v58  ;;  %v3976_v53 = vadd.f32 %v3848_v16, %v3460_v13  ;;  %v2619_v40 = vsub.s32 %v2427_v24, %v2555_v51  ;;  %v1532_v31 = vadd.s32 %v4572_v54, %v1468_v12  ;;  %v4897_v62 = vpop.eup %4896 }
 0x29a   :  { %vm2268_vm11 = vcmp.ge.s32.totalorder %v2204_v0, 16  ;;  %vm2460_vm12 = vcmp.lt.s32.totalorder %v2204_v0, 0  ;;  %v1660_v1 = vsel %vm1596_vm7, 1, %v4978_v45  ;;  %v3912_v16 = vmul.f32 %v3784_v21, %v7909_v15 }
 0x29b   :  { %4104 = vst [vmem:[%s9271_s4 + $0x140] sm:$0xff] %v3975_v19  ;;  %v2683_v7 = vmul.u32 16, %v2619_v40  ;;  %v3003_v57 = vcvt.s32.f32 %v2619_v40  ;;  %v2332_v22 = vsel %vm2268_vm11, 1, %v4978_v45  ;;  %v2524_v23 = vsel %vm2460_vm12, 1, %v4978_v45 }
 0x29c   :  { %4105 = vst.msk [vmem:[%s9271_s4 + $0x148] sm:$0xff] %vm4064_vm3, %v3976_v53  ;;  %v2396_v54 = vadd.s32 %v4636_v4, %v2332_v22  ;;  %v8010_v29 = vmul.f32 %v3721_v44, %v7929_v55  ;;  %v1724_v2 = vsub.s32 %v1532_v31, %v1660_v1  ;;  %v3850_v10 = vmul.f32 %v3722_v17, %v7954_v47  ;;  %v469_v31 = vpop.f32.mrf.mxu2 }
 0x29d   :  { %v2747_v36 = vsub.s32 %v7914_v37, %v2683_v7  ;;  %v3067_v11 = vadd.f32 0.5, %v3003_v57  ;;  %v4510_v32 = vcvt.f32.s32 %v1117_v20  ;;  %v8017_v50 = vsel %vm5367_vm13, %v7957_v52, %v4895_v14 }
 0x29e   :  { %v2588_v6 = vsub.s32 %v2396_v54, %v2524_v23  ;;  %v1788_v30 = vmul.u32 256, %v1724_v2  ;;  %4898 = vtanh.f32 %v374_v39  ;;  %v583_v44 = vadd.f32 %v582_v3, %v5251_v18 }
 0x29f   :  { %v2811_v15 = vcvt.s32.f32 %v2747_v36  ;;  %v3131_v21 = vmul.f32 8.0, %v3067_v11  ;;  %v1245_v55 = vmul.u32 256, %v4510_v32  ;;  %v8026_v47 = vsel %vm5386_vm14, %v7969_v61, %v4897_v62 }
 0x2a0   :  { %v2652_v4 = vmul.u32 16, %v2588_v6  ;;  %v2972_v5 = vcvt.s32.f32 %v2588_v6  ;;  %v8021_v37 = vsub.s32 %v7870_v42, %v1788_v30  ;;  %v3655_v34 = vmul.f32 %v5274_v33, %v8017_v50 }
 0x2a1   :  { %v2875_v17 = vadd.f32 0.5, %v2811_v15  ;;  %v3391_v52 = vsel %vm5268_vm2, %v3131_v21, %v5265_v26  ;;  %v3392_v51 = vsel %vm5313_vm8, %v3131_v21, %v5297_v48  ;;  %v1309_v61 = vsub.s32 %v7960_v9, %v1245_v55 }
 0x2a2   :  { %v2716_v42 = vsub.s32 %v7943_v59, %v2652_v4  ;;  %v3036_v14 = vadd.f32 0.5, %v2972_v5  ;;  %v1916_v24 = vcvt.s32.f32 %v8021_v37  ;;  %v3656_v20 = vmul.f32 %v5279_v38, %v8026_v47 }
 0x2a3   :  { %v2939_v41 = vmul.f32 8.0, %v2875_v17  ;;  %4900 = vtanh.f32 %v583_v44  ;;  %v8042_v58 = vadd.s32 432, %v5113_v25  ;;  %vm1373_vm15 = vcmp.ge.s32.totalorder %v1309_v61, 256 }
 0x2a4   :  { %v4899_v13 = vpop.eup %4898  ;;  %v2780_v0 = vcvt.s32.f32 %v2716_v42  ;;  %v3100_v12 = vmul.f32 8.0, %v3036_v14  ;;  %v1980_v19 = vmul.f32 0.0625, %v1916_v24  ;;  %v1437_v40 = vsel %vm1373_vm15, 1, %v4978_v45 }
 0x2a5   :  { %v3523_v59 = vsel %vm5292_vm4, %v2939_v41, %v3391_v52  ;;  %v3524_v53 = vsel %vm5332_vm9, %v2939_v41, %v3392_v51  ;;  %vm1565_vm1 = vcmp.lt.s32.totalorder %v1309_v61, 0  ;;  %v1501_v54 = vadd.s32 %v4510_v32, %v1437_v40 }
 0x2a6   :  { %v4039_v62 = vadd.f32 %v7939_v46, %v3523_v59  ;;  %v4040_v1 = vadd.f32 %v3912_v16, %v3524_v53  ;;  %v2844_v7 = vadd.f32 0.5, %v2780_v0  ;;  %v3329_v57 = vsel %vm5268_vm2, %v3100_v12, %v5265_v26 }
 0x2a7   :  { %v3330_v22 = vsel %vm5313_vm8, %v3100_v12, %v5297_v48  ;;  %v2044_v23 = vfloor.f32 %v1980_v19  ;;  %v1629_v2 = vsel %vm1565_vm1, 1, %v4978_v45  ;;  %v3197_v46 = vsel %vm5367_vm13, %v374_v39, %v4899_v13 }
 0x2a8   :  { %4168 = vst [vmem:[%s9271_s4 + $0x340] sm:$0xff] %v4039_v62  ;;  %v2908_v3 = vmul.f32 8.0, %v2844_v7  ;;  %v4214_v16 = vmul.f32 2.0, %v374_v39  ;;  %v8063_v36 = vadd.f32 %v469_v31, %v5236_v8  ;;  %v1693_v6 = vsub.s32 %v1501_v54, %v1629_v2  ;;  %v376_v7 = vpop.f32.mrf.mxu0 }
 0x2a9   :  { %v4901_v11 = vpop.eup %4900  ;;  %4169 = vst.msk [vmem:[%s9271_s4 + $0x348] sm:$0xff] %vm4064_vm3, %v4040_v1  ;;  %v4700_v32 = vcvt.f32.s32 %v2044_v23  ;;  %v3593_v30 = vmul.f32 %v5274_v33, %v3197_v46  ;;  %v1021_v15 = vcvt.s32.f32 %v8042_v58  ;;  %v8082_v4 = vadd.s32 184, %v5113_v25 }
 0x2aa   :  { %v3461_v21 = vsel %vm5292_vm4, %v2908_v3, %v3329_v57  ;;  %v3462_v39 = vsel %vm5332_vm9, %v2908_v3, %v3330_v22  ;;  %4279 = vst.msk [vmem:[%s9270_s5 + $0xb0] sm:$0xff] %vm4256_vm10, %v4214_v16  ;;  %v3198_v55 = vsel %vm5386_vm14, %v583_v44, %v4901_v11  ;;  %v1757_v51 = vmul.u32 256, %v1693_v6 }
 0x2ab   :  { %v3977_v5 = vadd.f32 %v8010_v29, %v3461_v21  ;;  %v3978_v17 = vadd.f32 %v3850_v10, %v3462_v39  ;;  %v2172_v52 = vmul.u32 16, %v4700_v32  ;;  %v3785_v42 = vadd.f32 %v5276_v35, %v3655_v34  ;;  %v678_v29 = vpop.f32.mrf.mxu3 }
 0x2ac   :  { %v1085_v14 = vmul.f32 0.00390625, %v1021_v15  ;;  %v990_v24 = vcvt.s32.f32 %v8082_v4  ;;  %v3786_v44 = vadd.f32 %v5299_v49, %v3656_v20  ;;  %v8093_v41 = vsub.s32 %v7960_v9, %v1757_v51 }
 0x2ad   :  { %4106 = vst [vmem:[%s9271_s4 + $0x150] sm:$0xff] %v3977_v5  ;;  %v2236_v61 = vsub.s32 %v8021_v37, %v2172_v52  ;;  %4902 = vtanh.f32 %v8063_v36  ;;  %v3723_v10 = vadd.f32 %v5276_v35, %v3593_v30  ;;  %v3594_v34 = vmul.f32 %v5279_v38, %v3198_v55 }
 0x2ae   :  { %4107 = vst.msk [vmem:[%s9271_s4 + $0x158] sm:$0xff] %vm4064_vm3, %v3978_v17  ;;  %v1149_v13 = vfloor.f32 %v1085_v14  ;;  %v1054_v0 = vmul.f32 0.00390625, %v990_v24  ;;  %v1885_v20 = vcvt.s32.f32 %v8093_v41  ;;  %v4246_v9 = vmul.f32 2.0, %v8063_v36 }
 0x2af   :  { %vm2300_vm0 = vcmp.ge.s32.totalorder %v2236_v61, 16  ;;  %vm2492_vm5 = vcmp.lt.s32.totalorder %v2236_v61, 0  ;;  %v8107_v53 = vadd.f32 %v678_v29, %v5251_v18  ;;  %v3913_v62 = vmul.f32 %v3785_v42, %v8017_v50 }
 0x2b0   :  { %v2364_v12 = vsel %vm2300_vm0, 1, %v4978_v45  ;;  %v2556_v19 = vsel %vm2492_vm5, 1, %v4978_v45  ;;  %v4574_v59 = vcvt.f32.s32 %v1149_v13  ;;  %v1949_v31 = vmul.f32 0.0625, %v1885_v20  ;;  %4311 = vst.msk [vmem:[%s9270_s5 + $0x1b0] sm:$0xff] %vm4256_vm10, %v4246_v9  ;;  %v585_v13 = vpop.f32.mrf.mxu1 }
 0x2b1   :  { %v2428_v40 = vadd.s32 %v4700_v32, %v2364_v12  ;;  %v1118_v57 = vfloor.f32 %v1054_v0  ;;  %v8115_v22 = vadd.s32 440, %v5113_v25  ;;  %v3914_v2 = vmul.f32 %v3786_v44, %v8026_v47 }
 0x2b2   :  { %v1277_v1 = vmul.u32 256, %v4574_v59  ;;  %v2013_v3 = vfloor.f32 %v1949_v31  ;;  %v8118_v16 = vmul.f32 %v3723_v10, %v3197_v46  ;;  %v3724_v11 = vadd.f32 %v5299_v49, %v3594_v34 }
 0x2b3   :  { %v4903_v23 = vpop.eup %4902  ;;  %v2620_v54 = vsub.s32 %v2428_v40, %v2556_v19  ;;  %4904 = vtanh.f32 %v8107_v53  ;;  %v4512_v50 = vcvt.f32.s32 %v1118_v57  ;;  %v8124_v21 = vadd.f32 %v376_v7, %v5236_v8 }
 0x2b4   :  { %v1341_v32 = vsub.s32 %v8042_v58, %v1277_v1  ;;  %v4638_v15 = vcvt.f32.s32 %v2013_v3  ;;  %v1022_v47 = vcvt.s32.f32 %v8115_v22  ;;  %v8129_v51 = vmul.f32 %v3724_v11, %v3198_v55 }
 0x2b5   :  { %v2684_v6 = vmul.u32 16, %v2620_v54  ;;  %v3004_v30 = vcvt.s32.f32 %v2620_v54  ;;  %v1246_v39 = vmul.u32 256, %v4512_v50  ;;  %v8135_v24 = vsel %vm5367_vm13, %v8063_v36, %v4903_v23 }
 0x2b6   :  { %vm1405_vm6 = vcmp.ge.s32.totalorder %v1341_v32, 256  ;;  %vm1597_vm7 = vcmp.lt.s32.totalorder %v1341_v32, 0  ;;  %v2141_v17 = vmul.u32 16, %v4638_v15  ;;  %4906 = vtanh.f32 %v8124_v21 }
 0x2b7   :  { %v2748_v46 = vsub.s32 %v8021_v37, %v2684_v6  ;;  %v3068_v5 = vadd.f32 0.5, %v3004_v30  ;;  %v1469_v52 = vsel %vm1405_vm6, 1, %v4978_v45  ;;  %v1661_v14 = vsel %vm1597_vm7, 1, %v4978_v45 }
 0x2b8   :  { %v1533_v42 = vadd.s32 %v4574_v59, %v1469_v52  ;;  %v2205_v29 = vsub.s32 %v8093_v41, %v2141_v17  ;;  %v8139_v37 = vadd.s32 192, %v5113_v25  ;;  %v1310_v55 = vsub.s32 %v8082_v4, %v1246_v39 }
 0x2b9   :  { %v2812_v61 = vcvt.s32.f32 %v2748_v46  ;;  %v3132_v44 = vmul.f32 8.0, %v3068_v5  ;;  %v4905_v10 = vpop.eup %4904  ;;  %v1086_v0 = vmul.f32 0.00390625, %v1022_v47  ;;  %v3657_v9 = vmul.f32 %v5274_v33, %v8135_v24 }
 0x2ba   :  { %v1725_v34 = vsub.s32 %v1533_v42, %v1661_v14  ;;  %vm2269_vm11 = vcmp.ge.s32.totalorder %v2205_v29, 16  ;;  %vm2461_vm12 = vcmp.lt.s32.totalorder %v2205_v29, 0  ;;  %v586_v7 = vadd.f32 %v585_v13, %v5251_v18 }
 0x2bb   :  { %v2876_v20 = vadd.f32 0.5, %v2812_v61  ;;  %v3393_v36 = vsel %vm5268_vm2, %v3132_v44, %v5265_v26  ;;  %v3394_v12 = vsel %vm5313_vm8, %v3132_v44, %v5297_v48  ;;  %v2333_v19 = vsel %vm2269_vm11, 1, %v4978_v45 }
 0x2bc   :  { %v1789_v59 = vmul.u32 256, %v1725_v34  ;;  %v2397_v31 = vadd.s32 %v4638_v15, %v2333_v19  ;;  %v2525_v1 = vsel %vm2461_vm12, 1, %v4978_v45  ;;  %vm1374_vm15 = vcmp.ge.s32.totalorder %v1310_v55, 256  ;;  %v4907_v6 = vpop.eup %4906 }
 0x2bd   :  { %v2940_v40 = vmul.f32 8.0, %v2876_v20  ;;  %vm1566_vm1 = vcmp.lt.s32.totalorder %v1310_v55, 0  ;;  %v4215_v23 = vmul.f32 2.0, %v8124_v21  ;;  %v8165_v32 = vsel %vm5386_vm14, %v8107_v53, %v4905_v10 }
 0x2be   :  { %v8155_v57 = vsub.s32 %v8042_v58, %v1789_v59  ;;  %v2589_v11 = vsub.s32 %v2397_v31, %v2525_v1  ;;  %v1438_v39 = vsel %vm1374_vm15, 1, %v4978_v45  ;;  %v1630_v17 = vsel %vm1566_vm1, 1, %v4978_v45  ;;  %v681_v59 = vpop.f32.mrf.mxu3 }
 0x2bf   :  { %v3525_v54 = vsel %vm5292_vm4, %v2940_v40, %v3393_v36  ;;  %v3526_v3 = vsel %vm5332_vm9, %v2940_v40, %v3394_v12  ;;  %4280 = vst.msk [vmem:[%s9270_s5 + $0xb8] sm:$0xff] %vm4256_vm10, %v4215_v23  ;;  %v1502_v5 = vadd.s32 %v4512_v50, %v1438_v39  ;;  %4908 = vtanh.f32 %v586_v7 }
 0x2c0   :  { %v4041_v30 = vadd.f32 %v3913_v62, %v3525_v54  ;;  %v4042_v58 = vadd.f32 %v3914_v2, %v3526_v3  ;;  %v1917_v15 = vcvt.s32.f32 %v8155_v57  ;;  %v2653_v47 = vmul.u32 16, %v2589_v11  ;;  %v472_v2 = vpop.f32.mrf.mxu2 }
 0x2c1   :  { %v2973_v46 = vcvt.s32.f32 %v2589_v11  ;;  %v3658_v62 = vmul.f32 %v5279_v38, %v8165_v32  ;;  %v991_v52 = vcvt.s32.f32 %v8139_v37  ;;  %v1694_v14 = vsub.s32 %v1502_v5, %v1630_v17 }
 0x2c2   :  { %4170 = vst [vmem:[%s9271_s4 + $0x350] sm:$0xff] %v4041_v30  ;;  %v1981_v53 = vmul.f32 0.0625, %v1917_v15  ;;  %v2717_v50 = vsub.s32 %v8093_v41, %v2653_v47  ;;  %v8186_v61 = vadd.s32 448, %v5113_v25  ;;  %v3787_v29 = vadd.f32 %v5276_v35, %v3657_v9  ;;  %v379_v47 = vpop.f32.mrf.mxu0 }
 0x2c3   :  { %4171 = vst.msk [vmem:[%s9271_s4 + $0x358] sm:$0xff] %vm4064_vm3, %v4042_v58  ;;  %v3037_v42 = vadd.f32 0.5, %v2973_v46  ;;  %v8192_v10 = vsel %vm5367_vm13, %v8124_v21, %v4907_v6  ;;  %v1150_v34 = vfloor.f32 %v1086_v0  ;;  %v1758_v20 = vmul.u32 256, %v1694_v14 }
 0x2c4   :  { %v2045_v44 = vfloor.f32 %v1981_v53  ;;  %v2781_v55 = vcvt.s32.f32 %v2717_v50  ;;  %v8195_v36 = vadd.f32 %v472_v2, %v5236_v8  ;;  %v3788_v12 = vadd.f32 %v5299_v49, %v3658_v62 }
 0x2c5   :  { %v3101_v13 = vmul.f32 8.0, %v3037_v42  ;;  %v4576_v19 = vcvt.f32.s32 %v1150_v34  ;;  %v1055_v40 = vmul.f32 0.00390625, %v991_v52  ;;  %v8202_v21 = vsub.s32 %v8082_v4, %v1758_v20  ;;  %v4909_v1 = vpop.eup %4908 }
 0x2c6   :  { %v4702_v41 = vcvt.f32.s32 %v2045_v44  ;;  %v2845_v31 = vadd.f32 0.5, %v2781_v55  ;;  %v3595_v0 = vmul.f32 %v5274_v33, %v8192_v10  ;;  %v682_v11 = vadd.f32 %v681_v59, %v5251_v18 }
 0x2c7   :  { %v3331_v9 = vsel %vm5268_vm2, %v3101_v13, %v5265_v26  ;;  %v3332_v23 = vsel %vm5313_vm8, %v3101_v13, %v5297_v48  ;;  %v1278_v3 = vmul.u32 256, %v4576_v19  ;;  %v1886_v30 = vcvt.s32.f32 %v8202_v21 }
 0x2c8   :  { %v2173_v54 = vmul.u32 16, %v4702_v41  ;;  %v2909_v6 = vmul.f32 8.0, %v2845_v31  ;;  %4910 = vtanh.f32 %v8195_v36  ;;  %v4247_v4 = vmul.f32 2.0, %v8195_v36  ;;  %v588_v31 = vpop.f32.mrf.mxu1 }
 0x2c9   :  { %v8216_v15 = vsel %vm5386_vm14, %v586_v7, %v4909_v1  ;;  %v1342_v39 = vsub.s32 %v8115_v22, %v1278_v3  ;;  %v1119_v46 = vfloor.f32 %v1055_v40  ;;  %v1950_v53 = vmul.f32 0.0625, %v1886_v30 }
 0x2ca   :  { %v2237_v58 = vsub.s32 %v8155_v57, %v2173_v54  ;;  %v3463_v5 = vsel %vm5292_vm4, %v2909_v6, %v3331_v9  ;;  %v3464_v17 = vsel %vm5332_vm9, %v2909_v6, %v3332_v23  ;;  %4312 = vst.msk [vmem:[%s9270_s5 + $0x1b8] sm:$0xff] %vm4256_vm10, %v4247_v4  ;;  %4912 = vtanh.f32 %v682_v11 }
 0x2cb   :  { %v3979_v7 = vadd.f32 %v8118_v16, %v3463_v5  ;;  %v3980_v62 = vadd.f32 %v8129_v51, %v3464_v17  ;;  %v2014_v50 = vfloor.f32 %v1950_v53  ;;  %v380_v42 = vadd.f32 %v379_v47, %v5236_v8 }
 0x2cc   :  { %vm2301_vm0 = vcmp.ge.s32.totalorder %v2237_v58, 16  ;;  %vm2493_vm5 = vcmp.lt.s32.totalorder %v2237_v58, 0  ;;  %vm1406_vm6 = vcmp.ge.s32.totalorder %v1342_v39, 256  ;;  %vm1598_vm7 = vcmp.lt.s32.totalorder %v1342_v39, 0 }
 0x2cd   :  { %v2365_v2 = vsel %vm2301_vm0, 1, %v4978_v45  ;;  %v2557_v52 = vsel %vm2493_vm5, 1, %v4978_v45  ;;  %4108 = vst [vmem:[%s9271_s4 + $0x160] sm:$0xff] %v3979_v7  ;;  %v1023_v16 = vcvt.s32.f32 %v8186_v61  ;;  %v4640_v51 = vcvt.f32.s32 %v2014_v50 }
 0x2ce   :  { %v2429_v14 = vadd.s32 %v4702_v41, %v2365_v2  ;;  %v4911_v44 = vpop.eup %4910  ;;  %4109 = vst.msk [vmem:[%s9271_s4 + $0x168] sm:$0xff] %vm4064_vm3, %v3980_v62  ;;  %v3596_v34 = vmul.f32 %v5279_v38, %v8216_v15  ;;  %v1470_v55 = vsel %vm1406_vm6, 1, %v4978_v45  ;;  %v1662_v13 = vsel %vm1598_vm7, 1, %v4978_v45 }
 0x2cf   :  { %v3915_v41 = vmul.f32 %v3787_v29, %v8135_v24  ;;  %v1534_v59 = vadd.s32 %v4576_v19, %v1470_v55  ;;  %v4514_v40 = vcvt.f32.s32 %v1119_v46  ;;  %v3916_v1 = vmul.f32 %v3788_v12, %v8165_v32 }
 0x2d0   :  { %v2621_v20 = vsub.s32 %v2429_v14, %v2557_v52  ;;  %v4913_v9 = vpop.eup %4912  ;;  %v2142_v23 = vmul.u32 16, %v4640_v51  ;;  %v3725_v54 = vadd.f32 %v5276_v35, %v3595_v0  ;;  %4914 = vtanh.f32 %v380_v42 }
 0x2d1   :  { %v1726_v30 = vsub.s32 %v1534_v59, %v1662_v13  ;;  %v8247_v4 = vmul.f32 0.00390625, %v1023_v16  ;;  %v3726_v39 = vadd.f32 %v5299_v49, %v3596_v34  ;;  %v1247_v24 = vmul.u32 256, %v4514_v40 }
 0x2d2   :  { %v2685_v3 = vmul.u32 16, %v2621_v20  ;;  %v3005_v6 = vcvt.s32.f32 %v2621_v20  ;;  %v2206_v58 = vsub.s32 %v8202_v21, %v2142_v23  ;;  %v8252_v29 = vadd.f32 %v588_v31, %v5251_v18 }
 0x2d3   :  { %v1790_v12 = vmul.u32 256, %v1726_v30  ;;  %v8258_v0 = vsel %vm5367_vm13, %v8195_v36, %v4911_v44  ;;  %v8262_v47 = vsel %vm5386_vm14, %v682_v11, %v4913_v9  ;;  %v1311_v46 = vsub.s32 %v8139_v37, %v1247_v24 }
 0x2d4   :  { %v2749_v19 = vsub.s32 %v8155_v57, %v2685_v3  ;;  %v3069_v32 = vadd.f32 0.5, %v3005_v6  ;;  %vm2270_vm11 = vcmp.ge.s32.totalorder %v2206_v58, 16  ;;  %vm2462_vm12 = vcmp.lt.s32.totalorder %v2206_v58, 0 }
 0x2d5   :  { %v2334_v53 = vsel %vm2270_vm11, 1, %v4978_v45  ;;  %v2526_v57 = vsel %vm2462_vm12, 1, %v4978_v45  ;;  %v8268_v2 = vsub.s32 %v8115_v22, %v1790_v12  ;;  %vm1375_vm15 = vcmp.ge.s32.totalorder %v1311_v46, 256 }
 0x2d6   :  { %v2813_v5 = vcvt.s32.f32 %v2749_v19  ;;  %v3133_v17 = vmul.f32 8.0, %v3069_v32  ;;  %v4915_v7 = vpop.eup %4914  ;;  %v2398_v62 = vadd.s32 %v4640_v51, %v2334_v53  ;;  %4916 = vtanh.f32 %v8252_v29 }
 0x2d7   :  { %v1439_v50 = vsel %vm1375_vm15, 1, %v4978_v45  ;;  %v1918_v16 = vcvt.s32.f32 %v8268_v2  ;;  %vm1567_vm1 = vcmp.lt.s32.totalorder %v1311_v46, 0  ;;  %v8282_v34 = vsel %vm5367_vm13, %v380_v42, %v4915_v7 }
 0x2d8   :  { %v2877_v36 = vadd.f32 0.5, %v2813_v5  ;;  %v3395_v11 = vsel %vm5268_vm2, %v3133_v17, %v5265_v26  ;;  %v3396_v52 = vsel %vm5313_vm8, %v3133_v17, %v5297_v48  ;;  %v2590_v14 = vsub.s32 %v2398_v62, %v2526_v57 }
 0x2d9   :  { %v1503_v44 = vadd.s32 %v4514_v40, %v1439_v50  ;;  %v1631_v51 = vsel %vm1567_vm1, 1, %v4978_v45  ;;  %v4216_v55 = vmul.f32 2.0, %v380_v42  ;;  %v1982_v59 = vmul.f32 0.0625, %v1918_v16  ;;  %v475_v42 = vpop.f32.mrf.mxu2 }
 0x2da   :  { %v2941_v22 = vmul.f32 8.0, %v2877_v36  ;;  %v2654_v13 = vmul.u32 16, %v2590_v14  ;;  %v2974_v20 = vcvt.s32.f32 %v2590_v14  ;;  %v3659_v40 = vmul.f32 %v5274_v33, %v8258_v0 }
 0x2db   :  { %v1695_v31 = vsub.s32 %v1503_v44, %v1631_v51  ;;  %v3660_v3 = vmul.f32 %v5279_v38, %v8262_v47  ;;  %4281 = vst.msk [vmem:[%s9270_s5 + $0xc0] sm:$0xff] %vm4256_vm10, %v4216_v55  ;;  %v3853_v32 = vmul.f32 %v3725_v54, %v8192_v10  ;;  %v2046_v12 = vfloor.f32 %v1982_v59 }
 0x2dc   :  { %v3527_v9 = vsel %vm5292_vm4, %v2941_v22, %v3395_v11  ;;  %v3528_v23 = vsel %vm5332_vm9, %v2941_v22, %v3396_v52  ;;  %v4917_v6 = vpop.eup %4916  ;;  %v2718_v24 = vsub.s32 %v8202_v21, %v2654_v13  ;;  %v3038_v19 = vadd.f32 0.5, %v2974_v20  ;;  %v684_v11 = vpop.f32.mrf.mxu3 }
 0x2dd   :  { %v4043_v30 = vadd.f32 %v3915_v41, %v3527_v9  ;;  %v4044_v58 = vadd.f32 %v3916_v1, %v3528_v23  ;;  %v1759_v46 = vmul.u32 256, %v1695_v31  ;;  %v3597_v5 = vmul.f32 %v5274_v33, %v8282_v34  ;;  %v382_v23 = vpop.f32.mrf.mxu0 }
 0x2de   :  { %v2782_v17 = vcvt.s32.f32 %v2718_v24  ;;  %v3102_v53 = vmul.f32 8.0, %v3038_v19  ;;  %v8304_v57 = vadd.f32 %v475_v42, %v5236_v8  ;;  %v1151_v41 = vfloor.f32 %v8247_v4 }
 0x2df   :  { %4172 = vst [vmem:[%s9271_s4 + $0x360] sm:$0xff] %v4043_v30  ;;  %v3854_v10 = vmul.f32 %v3726_v39, %v8216_v15  ;;  %v4704_v21 = vcvt.f32.s32 %v2046_v12  ;;  %v3789_v1 = vadd.f32 %v5276_v35, %v3659_v40  ;;  %v8314_v54 = vsub.s32 %v8139_v37, %v1759_v46 }
 0x2e0   :  { %4173 = vst.msk [vmem:[%s9271_s4 + $0x368] sm:$0xff] %vm4064_vm3, %v4044_v58  ;;  %v2846_v7 = vadd.f32 0.5, %v2782_v17  ;;  %v3333_v62 = vsel %vm5268_vm2, %v3102_v53, %v5265_v26  ;;  %v3790_v4 = vadd.f32 %v5299_v49, %v3660_v3  ;;  %v8323_v36 = vsel %vm5386_vm14, %v8252_v29, %v4917_v6 }
 0x2e1   :  { %v3334_v15 = vsel %vm5313_vm8, %v3102_v53, %v5297_v48  ;;  %v2174_v39 = vmul.u32 16, %v4704_v21  ;;  %v1887_v37 = vcvt.s32.f32 %v8314_v54  ;;  %v4578_v52 = vcvt.f32.s32 %v1151_v41 }
 0x2e2   :  { %v2910_v50 = vmul.f32 8.0, %v2846_v7  ;;  %v3727_v14 = vadd.f32 %v5276_v35, %v3597_v5  ;;  %v4248_v16 = vmul.f32 2.0, %v8304_v57  ;;  %v8332_v44 = vadd.s32 200, %v5113_v25 }
 0x2e3   :  { %v2238_v29 = vsub.s32 %v8268_v2, %v2174_v39  ;;  %v1951_v22 = vmul.f32 0.0625, %v1887_v37  ;;  %v1279_v51 = vmul.u32 256, %v4578_v52  ;;  %v685_v55 = vadd.f32 %v684_v11, %v5251_v18  ;;  %v591_v37 = vpop.f32.mrf.mxu1 }
 0x2e4   :  { %v3465_v13 = vsel %vm5292_vm4, %v2910_v50, %v3333_v62  ;;  %v3466_v20 = vsel %vm5332_vm9, %v2910_v50, %v3334_v15  ;;  %4918 = vtanh.f32 %v8304_v57  ;;  %4313 = vst.msk [vmem:[%s9270_s5 + $0x1c0] sm:$0xff] %vm4256_vm10, %v4248_v16  ;;  %v992_v59 = vcvt.s32.f32 %v8332_v44 }
 0x2e5   :  { %v3981_v31 = vadd.f32 %v3853_v32, %v3465_v13  ;;  %v3982_v9 = vadd.f32 %v3854_v10, %v3466_v20  ;;  %vm2302_vm0 = vcmp.ge.s32.totalorder %v2238_v29, 16  ;;  %vm2494_vm5 = vcmp.lt.s32.totalorder %v2238_v29, 0 }
 0x2e6   :  { %v2366_v40 = vsel %vm2302_vm0, 1, %v4978_v45  ;;  %v2558_v3 = vsel %vm2494_vm5, 1, %v4978_v45  ;;  %v2015_v42 = vfloor.f32 %v1951_v22  ;;  %v1343_v6 = vsub.s32 %v8186_v61, %v1279_v51 }
 0x2e7   :  { %4110 = vst [vmem:[%s9271_s4 + $0x170] sm:$0xff] %v3981_v31  ;;  %v2430_v30 = vadd.s32 %v4704_v21, %v2366_v40  ;;  %v3598_v58 = vmul.f32 %v5279_v38, %v8323_v36  ;;  %4920 = vtanh.f32 %v685_v55  ;;  %v1056_v24 = vmul.f32 0.00390625, %v992_v59 }
 0x2e8   :  { %4111 = vst.msk [vmem:[%s9271_s4 + $0x178] sm:$0xff] %vm4064_vm3, %v3982_v9  ;;  %v4642_v19 = vcvt.f32.s32 %v2015_v42  ;;  %vm1407_vm6 = vcmp.ge.s32.totalorder %v1343_v6, 256  ;;  %vm1599_vm7 = vcmp.lt.s32.totalorder %v1343_v6, 0  ;;  %v8359_v32 = vadd.f32 %v382_v23, %v5236_v8 }
 0x2e9   :  { %v2622_v12 = vsub.s32 %v2430_v30, %v2558_v3  ;;  %v3917_v46 = vmul.f32 %v3789_v1, %v8258_v0  ;;  %v1471_v5 = vsel %vm1407_vm6, 1, %v4978_v45  ;;  %v1663_v17 = vsel %vm1599_vm7, 1, %v4978_v45 }
 0x2ea   :  { %v4919_v53 = vpop.eup %4918  ;;  %v3918_v41 = vmul.f32 %v3790_v4, %v8262_v47  ;;  %v2143_v10 = vmul.u32 16, %v4642_v19  ;;  %v1535_v21 = vadd.s32 %v4578_v52, %v1471_v5  ;;  %v1120_v7 = vfloor.f32 %v1056_v24 }
 0x2eb   :  { %v2686_v62 = vmul.u32 16, %v2622_v12  ;;  %v3006_v11 = vcvt.s32.f32 %v2622_v12  ;;  %v8366_v15 = vmul.f32 %v3727_v14, %v8282_v34  ;;  %v8369_v39 = vadd.f32 %v5299_v49, %v3598_v58 }
 0x2ec   :  { %v2207_v0 = vsub.s32 %v8314_v54, %v2143_v10  ;;  %v1727_v1 = vsub.s32 %v1535_v21, %v1663_v17  ;;  %4922 = vtanh.f32 %v8359_v32  ;;  %v8374_v50 = vadd.s32 456, %v5113_v25 }
 0x2ed   :  { %v4921_v47 = vpop.eup %4920  ;;  %v2750_v4 = vsub.s32 %v8268_v2, %v2686_v62  ;;  %v3070_v52 = vadd.f32 0.5, %v3006_v11  ;;  %v8380_v34 = vsel %vm5367_vm13, %v8304_v57, %v4919_v53  ;;  %v4516_v14 = vcvt.f32.s32 %v1120_v7 }
 0x2ee   :  { %vm2271_vm11 = vcmp.ge.s32.totalorder %v2207_v0, 16  ;;  %vm2463_vm12 = vcmp.lt.s32.totalorder %v2207_v0, 0  ;;  %v1791_v16 = vmul.u32 256, %v1727_v1  ;;  %v8383_v29 = vadd.f32 %v591_v37, %v5251_v18  ;;  %v478_v1 = vpop.f32.mrf.mxu2 }
 0x2ef   :  { %v2814_v22 = vcvt.s32.f32 %v2750_v4  ;;  %v3134_v51 = vmul.f32 8.0, %v3070_v52  ;;  %v2335_v13 = vsel %vm2271_vm11, 1, %v4978_v45  ;;  %v2527_v20 = vsel %vm2463_vm12, 1, %v4978_v45 }
 0x2f0   :  { %v2399_v2 = vadd.s32 %v4642_v19, %v2335_v13  ;;  %v8388_v59 = vsub.s32 %v8186_v61, %v1791_v16  ;;  %v8392_v57 = vsel %vm5386_vm14, %v685_v55, %v4921_v47  ;;  %v1248_v31 = vmul.u32 256, %v4516_v14 }
 0x2f1   :  { %v2878_v9 = vadd.f32 0.5, %v2814_v22  ;;  %v3397_v23 = vsel %vm5268_vm2, %v3134_v51, %v5265_v26  ;;  %v3661_v40 = vmul.f32 %v5274_v33, %v8380_v34  ;;  %v8400_v3 = vadd.s32 208, %v5113_v25 }
 0x2f2   :  { %v4923_v42 = vpop.eup %4922  ;;  %v3398_v61 = vsel %vm5313_vm8, %v3134_v51, %v5297_v48  ;;  %v2591_v6 = vsub.s32 %v2399_v2, %v2527_v20  ;;  %v1919_v55 = vcvt.s32.f32 %v8388_v59  ;;  %v1312_v30 = vsub.s32 %v8332_v44, %v1248_v31 }
 0x2f3   :  { %v2942_v58 = vmul.f32 8.0, %v2878_v9  ;;  %v3662_v24 = vmul.f32 %v5279_v38, %v8392_v57  ;;  %4924 = vtanh.f32 %v8383_v29  ;;  %v1024_v19 = vcvt.s32.f32 %v8374_v50 }
 0x2f4   :  { %v2655_v12 = vmul.u32 16, %v2591_v6  ;;  %v2975_v5 = vcvt.s32.f32 %v2591_v6  ;;  %v1983_v17 = vmul.f32 0.0625, %v1919_v55  ;;  %vm1376_vm15 = vcmp.ge.s32.totalorder %v1312_v30, 256 }
 0x2f5   :  { %v3529_v53 = vsel %vm5292_vm4, %v2942_v58, %v3397_v23  ;;  %v3530_v10 = vsel %vm5332_vm9, %v2942_v58, %v3398_v61  ;;  %v1440_v21 = vsel %vm1376_vm15, 1, %v4978_v45  ;;  %vm1568_vm1 = vcmp.lt.s32.totalorder %v1312_v30, 0 }
 0x2f6   :  { %v4045_v7 = vadd.f32 %v3917_v46, %v3529_v53  ;;  %v4046_v62 = vadd.f32 %v3918_v41, %v3530_v10  ;;  %v2719_v11 = vsub.s32 %v8314_v54, %v2655_v12  ;;  %v3039_v0 = vadd.f32 0.5, %v2975_v5 }
 0x2f7   :  { %v2047_v37 = vfloor.f32 %v1983_v17  ;;  %v1504_v47 = vadd.s32 %v4516_v14, %v1440_v21  ;;  %v1632_v4 = vsel %vm1568_vm1, 1, %v4978_v45  ;;  %v1088_v52 = vmul.f32 0.00390625, %v1024_v19 }
 0x2f8   :  { %4174 = vst [vmem:[%s9271_s4 + $0x370] sm:$0xff] %v4045_v7  ;;  %v2783_v16 = vcvt.s32.f32 %v2719_v11  ;;  %v3103_v22 = vmul.f32 8.0, %v3039_v0  ;;  %v4217_v51 = vmul.f32 2.0, %v8359_v32  ;;  %v993_v46 = vcvt.s32.f32 %v8400_v3 }
 0x2f9   :  { %v4925_v41 = vpop.eup %4924  ;;  %4175 = vst.msk [vmem:[%s9271_s4 + $0x378] sm:$0xff] %vm4064_vm3, %v4046_v62  ;;  %v4706_v54 = vcvt.f32.s32 %v2047_v37  ;;  %v1696_v14 = vsub.s32 %v1504_v47, %v1632_v4  ;;  %v8430_v13 = vsel %vm5367_vm13, %v8359_v32, %v4923_v42  ;;  %v8433_v20 = vadd.f32 %v478_v1, %v5236_v8  ;;  %v385_v37 = vpop.f32.mrf.mxu0 }
 0x2fa   :  { %v2847_v2 = vadd.f32 0.5, %v2783_v16  ;;  %v3856_v31 = vmul.f32 %v8369_v39, %v8323_v36  ;;  %v3791_v9 = vadd.f32 %v5276_v35, %v3661_v40  ;;  %v3792_v23 = vadd.f32 %v5299_v49, %v3662_v24  ;;  %4282 = vst.msk [vmem:[%s9270_s5 + $0xc8] sm:$0xff] %vm4256_vm10, %v4217_v51  ;;  %v687_v36 = vpop.f32.mrf.mxu3 }
 0x2fb   :  { %v3335_v32 = vsel %vm5268_vm2, %v3103_v22, %v5265_v26  ;;  %v3336_v42 = vsel %vm5313_vm8, %v3103_v22, %v5297_v48  ;;  %v2175_v61 = vmul.u32 16, %v4706_v54  ;;  %v1760_v6 = vmul.u32 256, %v1696_v14 }
 0x2fc   :  { %v2911_v39 = vmul.f32 8.0, %v2847_v2  ;;  %v3599_v40 = vmul.f32 %v5274_v33, %v8430_v13  ;;  %4926 = vtanh.f32 %v8433_v20  ;;  %v1152_v55 = vfloor.f32 %v1088_v52 }
 0x2fd   :  { %v2239_v30 = vsub.s32 %v8388_v59, %v2175_v61  ;;  %v8454_v58 = vsub.s32 %v8332_v44, %v1760_v6  ;;  %v8457_v24 = vadd.f32 %v687_v36, %v5251_v18  ;;  %v1057_v19 = vmul.f32 0.00390625, %v993_v46 }
 0x2fe   :  { %v3467_v12 = vsel %vm5292_vm4, %v2911_v39, %v3335_v32  ;;  %v3468_v5 = vsel %vm5332_vm9, %v2911_v39, %v3336_v42  ;;  %v4580_v17 = vcvt.f32.s32 %v1152_v55  ;;  %v4249_v53 = vmul.f32 2.0, %v8433_v20  ;;  %v594_v39 = vpop.f32.mrf.mxu1 }
 0x2ff   :  { %v3983_v10 = vadd.f32 %v8366_v15, %v3467_v12  ;;  %v3984_v21 = vadd.f32 %v3856_v31, %v3468_v5  ;;  %vm2303_vm0 = vcmp.ge.s32.totalorder %v2239_v30, 16  ;;  %vm2495_vm5 = vcmp.lt.s32.totalorder %v2239_v30, 0 }
 0x300   :  { %v2367_v44 = vsel %vm2303_vm0, 1, %v4978_v45  ;;  %v2559_v7 = vsel %vm2495_vm5, 1, %v4978_v45  ;;  %v1888_v62 = vcvt.s32.f32 %v8454_v58  ;;  %v8471_v11 = vsel %vm5386_vm14, %v8383_v29, %v4925_v41  ;;  %4314 = vst.msk [vmem:[%s9270_s5 + $0x1c8] sm:$0xff] %vm4256_vm10, %v4249_v53 }
 0x301   :  { %4112 = vst [vmem:[%s9271_s4 + $0x180] sm:$0xff] %v3983_v10  ;;  %v2431_v15 = vadd.s32 %v4706_v54, %v2367_v44  ;;  %v8481_v0 = vmul.f32 %v3791_v9, %v8380_v34  ;;  %v1280_v1 = vmul.u32 256, %v4580_v17  ;;  %4928 = vtanh.f32 %v8457_v24 }
 0x302   :  { %v4927_v47 = vpop.eup %4926  ;;  %4113 = vst.msk [vmem:[%s9271_s4 + $0x188] sm:$0xff] %vm4064_vm3, %v3984_v21  ;;  %v1952_v29 = vmul.f32 0.0625, %v1888_v62  ;;  %v1121_v4 = vfloor.f32 %v1057_v19  ;;  %v8489_v52 = vadd.s32 464, %v5113_v25  ;;  %v3920_v22 = vmul.f32 %v3792_v23, %v8392_v57 }
 0x303   :  { %v2623_v16 = vsub.s32 %v2431_v15, %v2559_v7  ;;  %v3600_v34 = vmul.f32 %v5279_v38, %v8471_v11  ;;  %v1344_v51 = vsub.s32 %v8374_v50, %v1280_v1  ;;  %v8496_v41 = vadd.f32 %v5276_v35, %v3599_v40 }
 0x304   :  { %v2016_v46 = vfloor.f32 %v1952_v29  ;;  %v8499_v54 = vadd.f32 %v385_v37, %v5236_v8  ;;  %v4518_v14 = vcvt.f32.s32 %v1121_v4  ;;  %v1025_v32 = vcvt.s32.f32 %v8489_v52 }
 0x305   :  { %v2687_v2 = vmul.u32 16, %v2623_v16  ;;  %v3007_v31 = vcvt.s32.f32 %v2623_v16  ;;  %vm1408_vm6 = vcmp.ge.s32.totalorder %v1344_v51, 256  ;;  %vm1600_vm7 = vcmp.lt.s32.totalorder %v1344_v51, 0 }
 0x306   :  { %v4644_v9 = vcvt.f32.s32 %v2016_v46  ;;  %v1472_v57 = vsel %vm1408_vm6, 1, %v4978_v45  ;;  %v1664_v23 = vsel %vm1600_vm7, 1, %v4978_v45  ;;  %v3730_v6 = vadd.f32 %v5299_v49, %v3600_v34 }
 0x307   :  { %v2751_v42 = vsub.s32 %v8388_v59, %v2687_v2  ;;  %v3071_v61 = vadd.f32 0.5, %v3007_v31  ;;  %v1536_v36 = vadd.s32 %v4580_v17, %v1472_v57  ;;  %v4929_v40 = vpop.eup %4928  ;;  %v3267_v30 = vsel %vm5367_vm13, %v8433_v20, %v4927_v47 }
 0x308   :  { %v2144_v55 = vmul.u32 16, %v4644_v9  ;;  %v1249_v19 = vmul.u32 256, %v4518_v14  ;;  %v8510_v12 = vadd.s32 216, %v5113_v25  ;;  %4930 = vtanh.f32 %v8499_v54 }
 0x309   :  { %v2815_v5 = vcvt.s32.f32 %v2751_v42  ;;  %v3135_v53 = vmul.f32 8.0, %v3071_v61  ;;  %v1728_v10 = vsub.s32 %v1536_v36, %v1664_v23  ;;  %v8516_v21 = vadd.f32 %v594_v39, %v5251_v18 }
 0x30a   :  { %v2208_v59 = vsub.s32 %v8454_v58, %v2144_v55  ;;  %v1313_v17 = vsub.s32 %v8400_v3, %v1249_v19  ;;  %v1089_v44 = vmul.f32 0.00390625, %v1025_v32  ;;  %v3663_v20 = vmul.f32 %v5274_v33, %v3267_v30  ;;  %v481_v32 = vpop.f32.mrf.mxu2 }
 0x30b   :  { %v2879_v7 = vadd.f32 0.5, %v2815_v5  ;;  %v1792_v62 = vmul.u32 256, %v1728_v10  ;;  %v8522_v15 = vsel %vm5386_vm14, %v8457_v24, %v4929_v40  ;;  %v3399_v1 = vsel %vm5268_vm2, %v3135_v53, %v5265_v26 }
 0x30c   :  { %v3400_v37 = vsel %vm5313_vm8, %v3135_v53, %v5297_v48  ;;  %vm2272_vm11 = vcmp.ge.s32.totalorder %v2208_v59, 16  ;;  %vm2464_vm12 = vcmp.lt.s32.totalorder %v2208_v59, 0  ;;  %vm1377_vm15 = vcmp.ge.s32.totalorder %v1313_v17, 256 }
 0x30d   :  { %v2943_v47 = vmul.f32 8.0, %v2879_v7  ;;  %v2336_v29 = vsel %vm2272_vm11, 1, %v4978_v45  ;;  %v2528_v4 = vsel %vm2464_vm12, 1, %v4978_v45  ;;  %v8533_v16 = vsub.s32 %v8374_v50, %v1792_v62 }
 0x30e   :  { %v2400_v24 = vadd.s32 %v4644_v9, %v2336_v29  ;;  %vm1569_vm1 = vcmp.lt.s32.totalorder %v1313_v17, 0  ;;  %4932 = vtanh.f32 %v8516_v21  ;;  %v4931_v34 = vpop.eup %4930  ;;  %v1441_v31 = vsel %vm1377_vm15, 1, %v4978_v45 }
 0x30f   :  { %v3531_v51 = vsel %vm5292_vm4, %v2943_v47, %v3399_v1  ;;  %v3532_v46 = vsel %vm5332_vm9, %v2943_v47, %v3400_v37  ;;  %v1920_v2 = vcvt.s32.f32 %v8533_v16  ;;  %v1505_v9 = vadd.s32 %v4518_v14, %v1441_v31 }
 0x310   :  { %v4047_v57 = vadd.f32 %v8481_v0, %v3531_v51  ;;  %v4048_v50 = vadd.f32 %v3920_v22, %v3532_v46  ;;  %v2592_v23 = vsub.s32 %v2400_v24, %v2528_v4  ;;  %v3793_v61 = vadd.f32 %v5276_v35, %v3663_v20  ;;  %v690_v4 = vpop.f32.mrf.mxu3 }
 0x311   :  { %v1984_v42 = vmul.f32 0.0625, %v1920_v2  ;;  %v1633_v36 = vsel %vm1569_vm1, 1, %v4978_v45  ;;  %v4218_v39 = vmul.f32 2.0, %v8499_v54  ;;  %v3664_v0 = vmul.f32 %v5279_v38, %v8522_v15 }
 0x312   :  { %4176 = vst [vmem:[%s9271_s4 + $0x380] sm:$0xff] %v4047_v57  ;;  %v2656_v40 = vmul.u32 16, %v2592_v23  ;;  %v2976_v55 = vcvt.s32.f32 %v2592_v23  ;;  %v1697_v22 = vsub.s32 %v1505_v9, %v1633_v36  ;;  %v3857_v14 = vmul.f32 %v8496_v41, %v8430_v13 }
 0x313   :  { %4177 = vst.msk [vmem:[%s9271_s4 + $0x388] sm:$0xff] %vm4064_vm3, %v4048_v50  ;;  %v2048_v19 = vfloor.f32 %v1984_v42  ;;  %v482_v5 = vadd.f32 %v481_v32, %v5236_v8  ;;  %v1153_v53 = vfloor.f32 %v1089_v44  ;;  %v3858_v7 = vmul.f32 %v3730_v6, %v8471_v11 }
 0x314   :  { %v4933_v10 = vpop.eup %4932  ;;  %v2720_v59 = vsub.s32 %v8454_v58, %v2656_v40  ;;  %v3040_v17 = vadd.f32 0.5, %v2976_v55  ;;  %v1761_v62 = vmul.u32 256, %v1697_v22  ;;  %4283 = vst.msk [vmem:[%s9270_s5 + $0xd0] sm:$0xff] %vm4256_vm10, %v4218_v39  ;;  %v8564_v1 = vmul.f32 %v3793_v61, %v3267_v30 }
 0x315   :  { %v4708_v20 = vcvt.f32.s32 %v2048_v19  ;;  %v4582_v13 = vcvt.f32.s32 %v1153_v53  ;;  %v994_v41 = vcvt.s32.f32 %v8510_v12  ;;  %v3794_v47 = vadd.f32 %v5299_v49, %v3664_v0 }
 0x316   :  { %v2784_v37 = vcvt.s32.f32 %v2720_v59  ;;  %v3104_v44 = vmul.f32 8.0, %v3040_v17  ;;  %v8569_v58 = vsub.s32 %v8400_v3, %v1761_v62  ;;  %4934 = vtanh.f32 %v482_v5 }
 0x317   :  { %v2176_v11 = vmul.u32 16, %v4708_v20  ;;  %v1281_v6 = vmul.u32 256, %v4582_v13  ;;  %v4250_v29 = vmul.f32 2.0, %v482_v5  ;;  %v8575_v30 = vsel %vm5367_vm13, %v8499_v54, %v4931_v34 }
 0x318   :  { %v2848_v24 = vadd.f32 0.5, %v2784_v37  ;;  %v1889_v51 = vcvt.s32.f32 %v8569_v58  ;;  %v8580_v46 = vsel %vm5386_vm14, %v8516_v21, %v4933_v10  ;;  %v3337_v3 = vsel %vm5268_vm2, %v3104_v44, %v5265_v26 }
 0x319   :  { %v3338_v2 = vsel %vm5313_vm8, %v3104_v44, %v5297_v48  ;;  %v2240_v31 = vsub.s32 %v8533_v16, %v2176_v11  ;;  %v1345_v57 = vsub.s32 %v8489_v52, %v1281_v6  ;;  %4315 = vst.msk [vmem:[%s9270_s5 + $0x1d0] sm:$0xff] %vm4256_vm10, %v4250_v29  ;;  %v8595_v34 = vadd.f32 %v690_v4, %v5251_v18 }
 0x31a   :  { %v2912_v54 = vmul.f32 8.0, %v2848_v24  ;;  %v1953_v21 = vmul.f32 0.0625, %v1889_v51  ;;  %v1058_v50 = vmul.f32 0.00390625, %v994_v41  ;;  %v3922_v0 = vmul.f32 %v3794_v47, %v8522_v15 }
 0x31b   :  { %vm2304_vm0 = vcmp.ge.s32.totalorder %v2240_v31, 16  ;;  %vm2496_vm5 = vcmp.lt.s32.totalorder %v2240_v31, 0  ;;  %vm1409_vm6 = vcmp.ge.s32.totalorder %v1345_v57, 256  ;;  %vm1601_vm7 = vcmp.lt.s32.totalorder %v1345_v57, 0 }
 0x31c   :  { %v3469_v23 = vsel %vm5292_vm4, %v2912_v54, %v3337_v3  ;;  %v3470_v9 = vsel %vm5332_vm9, %v2912_v54, %v3338_v2  ;;  %v2368_v32 = vsel %vm2304_vm0, 1, %v4978_v45  ;;  %v2560_v42 = vsel %vm2496_vm5, 1, %v4978_v45  ;;  %v4935_v61 = vpop.eup %4934  ;;  %v597_v3 = vpop.f32.mrf.mxu1 }
 0x31d   :  { %v3985_v36 = vadd.f32 %v3857_v14, %v3469_v23  ;;  %v3986_v39 = vadd.f32 %v3858_v7, %v3470_v9  ;;  %v2432_v40 = vadd.s32 %v4708_v20, %v2368_v32  ;;  %v2017_v55 = vfloor.f32 %v1953_v21  ;;  %v388_v7 = vpop.f32.mrf.mxu0 }
 0x31e   :  { %v3601_v22 = vmul.f32 %v5274_v33, %v8575_v30  ;;  %v1473_v19 = vsel %vm1409_vm6, 1, %v4978_v45  ;;  %v1665_v53 = vsel %vm1601_vm7, 1, %v4978_v45  ;;  %v3602_v14 = vmul.f32 %v5279_v38, %v8580_v46 }
 0x31f   :  { %4114 = vst [vmem:[%s9271_s4 + $0x190] sm:$0xff] %v3985_v36  ;;  %v2624_v10 = vsub.s32 %v2432_v40, %v2560_v42  ;;  %v4646_v59 = vcvt.f32.s32 %v2017_v55  ;;  %v1537_v17 = vadd.s32 %v4582_v13, %v1473_v19  ;;  %v8619_v15 = vsel %vm5367_vm13, %v482_v5, %v4935_v61 }
 0x320   :  { %4115 = vst.msk [vmem:[%s9271_s4 + $0x198] sm:$0xff] %vm4064_vm3, %v3986_v39  ;;  %4936 = vtanh.f32 %v8595_v34  ;;  %v1122_v62 = vfloor.f32 %v1058_v50  ;;  %v8623_v20 = vadd.s32 472, %v5113_v25  ;;  %v3731_v47 = vadd.f32 %v5276_v35, %v3601_v22 }
 0x321   :  { %v2688_v41 = vmul.u32 16, %v2624_v10  ;;  %v3008_v37 = vcvt.s32.f32 %v2624_v10  ;;  %v2145_v44 = vmul.u32 16, %v4646_v59  ;;  %v1729_v13 = vsub.s32 %v1537_v17, %v1665_v53 }
 0x322   :  { %v8627_v11 = vadd.f32 %v388_v7, %v5236_v8  ;;  %v4520_v6 = vcvt.f32.s32 %v1122_v62  ;;  %v8630_v29 = vadd.s32 224, %v5113_v25  ;;  %v3732_v2 = vadd.f32 %v5299_v49, %v3602_v14 }
 0x323   :  { %v2752_v5 = vsub.s32 %v8533_v16, %v2688_v41  ;;  %v3072_v4 = vadd.f32 0.5, %v3008_v37  ;;  %v2209_v24 = vsub.s32 %v8569_v58, %v2145_v44  ;;  %v1793_v51 = vmul.u32 256, %v1729_v13 }
 0x324   :  { %v3665_v31 = vmul.f32 %v5274_v33, %v8619_v15  ;;  %v1250_v57 = vmul.u32 256, %v4520_v6  ;;  %v1026_v54 = vcvt.s32.f32 %v8623_v20  ;;  %v598_v42 = vadd.f32 %v597_v3, %v5251_v18 }
 0x325   :  { %v2816_v21 = vcvt.s32.f32 %v2752_v5  ;;  %v3136_v50 = vmul.f32 8.0, %v3072_v4  ;;  %vm2273_vm11 = vcmp.ge.s32.totalorder %v2209_v24, 16  ;;  %vm2465_vm12 = vcmp.lt.s32.totalorder %v2209_v24, 0 }
 0x326   :  { %v4937_v23 = vpop.eup %4936  ;;  %v2337_v16 = vsel %vm2273_vm11, 1, %v4978_v45  ;;  %v2529_v9 = vsel %vm2465_vm12, 1, %v4978_v45  ;;  %v8641_v32 = vsub.s32 %v8489_v52, %v1793_v51  ;;  %4938 = vtanh.f32 %v8627_v11 }
 0x327   :  { %v2880_v61 = vadd.f32 0.5, %v2816_v21  ;;  %v2401_v36 = vadd.s32 %v4646_v59, %v2337_v16  ;;  %v995_v39 = vcvt.s32.f32 %v8630_v29  ;;  %v3401_v40 = vsel %vm5268_vm2, %v3136_v50, %v5265_v26 }
 0x328   :  { %v3402_v55 = vsel %vm5313_vm8, %v3136_v50, %v5297_v48  ;;  %v1921_v22 = vcvt.s32.f32 %v8641_v32  ;;  %v1314_v52 = vsub.s32 %v8510_v12, %v1250_v57  ;;  %v8657_v10 = vsel %vm5386_vm14, %v8595_v34, %v4937_v23 }
 0x329   :  { %v2944_v19 = vmul.f32 8.0, %v2880_v61  ;;  %v2593_v53 = vsub.s32 %v2401_v36, %v2529_v9  ;;  %v1090_v59 = vmul.f32 0.00390625, %v1026_v54  ;;  %4940 = vtanh.f32 %v598_v42  ;;  %v484_v36 = vpop.f32.mrf.mxu2 }
 0x32a   :  { %v1985_v14 = vmul.f32 0.0625, %v1921_v22  ;;  %vm1378_vm15 = vcmp.ge.s32.totalorder %v1314_v52, 256  ;;  %vm1570_vm1 = vcmp.lt.s32.totalorder %v1314_v52, 0  ;;  %v3666_v34 = vmul.f32 %v5279_v38, %v8657_v10 }
 0x32b   :  { %v3533_v17 = vsel %vm5292_vm4, %v2944_v19, %v3401_v40  ;;  %v3534_v7 = vsel %vm5332_vm9, %v2944_v19, %v3402_v55  ;;  %v2657_v62 = vmul.u32 16, %v2593_v53  ;;  %v2977_v41 = vcvt.s32.f32 %v2593_v53 }
 0x32c   :  { %v4049_v37 = vadd.f32 %v8564_v1, %v3533_v17  ;;  %v4050_v44 = vadd.f32 %v3922_v0, %v3534_v7  ;;  %v2049_v13 = vfloor.f32 %v1985_v14  ;;  %v4939_v5 = vpop.eup %4938  ;;  %v1442_v51 = vsel %vm1378_vm15, 1, %v4978_v45 }
 0x32d   :  { %v2721_v4 = vsub.s32 %v8569_v58, %v2657_v62  ;;  %v3041_v24 = vadd.f32 0.5, %v2977_v41  ;;  %v1634_v3 = vsel %vm1570_vm1, 1, %v4978_v45  ;;  %v1506_v54 = vadd.s32 %v4520_v6, %v1442_v51 }
 0x32e   :  { %4178 = vst [vmem:[%s9271_s4 + $0x390] sm:$0xff] %v4049_v37  ;;  %v4710_v57 = vcvt.f32.s32 %v2049_v13  ;;  %v4219_v1 = vmul.f32 2.0, %v8627_v11  ;;  %v3859_v21 = vmul.f32 %v3731_v47, %v8575_v30  ;;  %v1154_v50 = vfloor.f32 %v1090_v59  ;;  %v693_v13 = vpop.f32.mrf.mxu3 }
 0x32f   :  { %4179 = vst.msk [vmem:[%s9271_s4 + $0x398] sm:$0xff] %vm4064_vm3, %v4050_v44  ;;  %v2785_v0 = vcvt.s32.f32 %v2721_v4  ;;  %v3105_v58 = vmul.f32 8.0, %v3041_v24  ;;  %v4941_v23 = vpop.eup %4940  ;;  %v3860_v16 = vmul.f32 %v3732_v2, %v8580_v46  ;;  %v1698_v61 = vsub.s32 %v1506_v54, %v1634_v3  ;;  %v391_v3 = vpop.f32.mrf.mxu0 }
 0x330   :  { %v2177_v9 = vmul.u32 16, %v4710_v57  ;;  %v8682_v6 = vsel %vm5367_vm13, %v8627_v11, %v4939_v5  ;;  %4284 = vst.msk [vmem:[%s9270_s5 + $0xd8] sm:$0xff] %vm4256_vm10, %v4219_v1  ;;  %v3795_v30 = vadd.f32 %v5276_v35, %v3665_v31  ;;  %v3796_v47 = vadd.f32 %v5299_v49, %v3666_v34 }
 0x331   :  { %v2849_v40 = vadd.f32 0.5, %v2785_v0  ;;  %v1059_v55 = vmul.f32 0.00390625, %v995_v39  ;;  %v3339_v46 = vsel %vm5268_vm2, %v3105_v58, %v5265_v26  ;;  %v3340_v11 = vsel %vm5313_vm8, %v3105_v58, %v5297_v48 }
 0x332   :  { %v2241_v2 = vsub.s32 %v8641_v32, %v2177_v9  ;;  %v1762_v22 = vmul.u32 256, %v1698_v61  ;;  %v3603_v19 = vmul.f32 %v5274_v33, %v8682_v6  ;;  %v485_v31 = vadd.f32 %v484_v36, %v5236_v8 }
 0x333   :  { %v2913_v52 = vmul.f32 8.0, %v2849_v40  ;;  %v4584_v53 = vcvt.f32.s32 %v1154_v50  ;;  %v8705_v59 = vsel %vm5386_vm14, %v598_v42, %v4941_v23  ;;  %v3923_v24 = vmul.f32 %v3795_v30, %v8619_v15 }
 0x334   :  { %vm2305_vm0 = vcmp.ge.s32.totalorder %v2241_v2, 16  ;;  %vm2497_vm5 = vcmp.lt.s32.totalorder %v2241_v2, 0  ;;  %v8701_v39 = vsub.s32 %v8510_v12, %v1762_v22  ;;  %v3604_v42 = vmul.f32 %v5279_v38, %v8705_v59 }
 0x335   :  { %v3471_v14 = vsel %vm5292_vm4, %v2913_v52, %v3339_v46  ;;  %v3472_v17 = vsel %vm5332_vm9, %v2913_v52, %v3340_v11  ;;  %v2369_v7 = vsel %vm2305_vm0, 1, %v4978_v45  ;;  %v2561_v62 = vsel %vm2497_vm5, 1, %v4978_v45  ;;  %v600_v11 = vpop.f32.mrf.mxu1 }
 0x336   :  { %v3987_v41 = vadd.f32 %v3859_v21, %v3471_v14  ;;  %v3988_v37 = vadd.f32 %v3860_v16, %v3472_v17  ;;  %v2433_v44 = vadd.s32 %v4710_v57, %v2369_v7  ;;  %v1890_v12 = vcvt.s32.f32 %v8701_v39 }
 0x337   :  { %4942 = vtanh.f32 %v485_v31  ;;  %v1282_v34 = vmul.u32 256, %v4584_v53  ;;  %v4251_v5 = vmul.f32 2.0, %v485_v31  ;;  %v1123_v54 = vfloor.f32 %v1059_v55 }
 0x338   :  { %4116 = vst [vmem:[%s9271_s4 + $0x1a0] sm:$0xff] %v3987_v41  ;;  %v2625_v4 = vsub.s32 %v2433_v44, %v2561_v62  ;;  %v1954_v51 = vmul.f32 0.0625, %v1890_v12  ;;  %v3924_v57 = vmul.f32 %v3796_v47, %v8657_v10  ;;  %v3733_v1 = vadd.f32 %v5276_v35, %v3603_v19 }
 0x339   :  { %4117 = vst.msk [vmem:[%s9271_s4 + $0x1a8] sm:$0xff] %vm4064_vm3, %v3988_v37  ;;  %v1346_v0 = vsub.s32 %v8623_v20, %v1282_v34  ;;  %v694_v58 = vadd.f32 %v693_v13, %v5251_v18  ;;  %v4522_v15 = vcvt.f32.s32 %v1123_v54  ;;  %v3734_v16 = vadd.f32 %v5299_v49, %v3604_v42 }
 0x33a   :  { %v2689_v21 = vmul.u32 16, %v2625_v4  ;;  %v3009_v50 = vcvt.s32.f32 %v2625_v4  ;;  %v2018_v23 = vfloor.f32 %v1954_v51  ;;  %4316 = vst.msk [vmem:[%s9270_s5 + $0x1d8] sm:$0xff] %vm4256_vm10, %v4251_v5  ;;  %v8734_v10 = vadd.f32 %v391_v3, %v5236_v8 }
 0x33b   :  { %vm1410_vm6 = vcmp.ge.s32.totalorder %v1346_v0, 256  ;;  %vm1602_vm7 = vcmp.lt.s32.totalorder %v1346_v0, 0  ;;  %4944 = vtanh.f32 %v694_v58  ;;  %v1251_v46 = vmul.u32 256, %v4522_v15 }
 0x33c   :  { %v2753_v9 = vsub.s32 %v8641_v32, %v2689_v21  ;;  %v3073_v61 = vadd.f32 0.5, %v3009_v50  ;;  %v4648_v36 = vcvt.f32.s32 %v2018_v23  ;;  %v1474_v40 = vsel %vm1410_vm6, 1, %v4978_v45 }
 0x33d   :  { %v4943_v30 = vpop.eup %4942  ;;  %v1538_v47 = vadd.s32 %v4584_v53, %v1474_v40  ;;  %v1666_v55 = vsel %vm1602_vm7, 1, %v4978_v45  ;;  %v8740_v19 = vadd.s32 480, %v5113_v25  ;;  %4946 = vtanh.f32 %v8734_v10 }
 0x33e   :  { %v2817_v2 = vcvt.s32.f32 %v2753_v9  ;;  %v3137_v22 = vmul.f32 8.0, %v3073_v61  ;;  %v2146_v52 = vmul.u32 16, %v4648_v36  ;;  %v1315_v32 = vsub.s32 %v8630_v29, %v1251_v46 }
 0x33f   :  { %v1730_v14 = vsub.s32 %v1538_v47, %v1666_v55  ;;  %v8745_v17 = vadd.s32 232, %v5113_v25  ;;  %v3271_v62 = vsel %vm5367_vm13, %v485_v31, %v4943_v30  ;;  %v8751_v41 = vadd.f32 %v600_v11, %v5251_v18 }
 0x340   :  { %v2881_v53 = vadd.f32 0.5, %v2817_v2  ;;  %v2210_v7 = vsub.s32 %v8701_v39, %v2146_v52  ;;  %v3403_v37 = vsel %vm5268_vm2, %v3137_v22, %v5265_v26  ;;  %v3404_v44 = vsel %vm5313_vm8, %v3137_v22, %v5297_v48 }
 0x341   :  { %v1794_v12 = vmul.u32 256, %v1730_v14  ;;  %vm1379_vm11 = vcmp.ge.s32.totalorder %v1315_v32, 256  ;;  %v4945_v34 = vpop.eup %4944  ;;  %v3667_v51 = vmul.f32 %v5274_v33, %v3271_v62  ;;  %vm1571_vm1 = vcmp.lt.s32.totalorder %v1315_v32, 0 }
 0x342   :  { %v2945_v13 = vmul.f32 8.0, %v2881_v53  ;;  %vm2274_vm12 = vcmp.ge.s32.totalorder %v2210_v7, 16  ;;  %vm2466_vm15 = vcmp.lt.s32.totalorder %v2210_v7, 0  ;;  %v1443_v42 = vsel %vm1379_vm11, 1, %v4978_v45  ;;  %v487_v7 = vpop.f32.mrf.mxu2 }
 0x343   :  { %v2338_v31 = vsel %vm2274_vm12, 1, %v4978_v45  ;;  %v2530_v5 = vsel %vm2466_vm15, 1, %v4978_v45  ;;  %v8763_v4 = vsub.s32 %v8623_v20, %v1794_v12  ;;  %v1507_v21 = vadd.s32 %v4522_v15, %v1443_v42  ;;  %v4947_v50 = vpop.eup %4946 }
 0x344   :  { %v3535_v3 = vsel %vm5292_vm4, %v2945_v13, %v3403_v37  ;;  %v3536_v54 = vsel %vm5332_vm9, %v2945_v13, %v3404_v44  ;;  %v2402_v0 = vadd.s32 %v4648_v36, %v2338_v31  ;;  %v3861_v20 = vmul.f32 %v3733_v1, %v8682_v6 }
 0x345   :  { %v4051_v23 = vadd.f32 %v3923_v24, %v3535_v3  ;;  %v4052_v9 = vadd.f32 %v3924_v57, %v3536_v54  ;;  %v1922_v61 = vcvt.s32.f32 %v8763_v4  ;;  %v1635_v30 = vsel %vm1571_vm1, 1, %v4978_v45 }
 0x346   :  { %v2594_v40 = vsub.s32 %v2402_v0, %v2530_v5  ;;  %v4220_v47 = vmul.f32 2.0, %v8734_v10  ;;  %v3272_v15 = vsel %vm5386_vm14, %v694_v58, %v4945_v34  ;;  %v1699_v24 = vsub.s32 %v1507_v21, %v1635_v30 }
 0x347   :  { %4180 = vst [vmem:[%s9271_s4 + $0x3a0] sm:$0xff] %v4051_v23  ;;  %v1986_v55 = vmul.f32 0.0625, %v1922_v61  ;;  %4948 = vtanh.f32 %v8751_v41  ;;  %v3862_v1 = vmul.f32 %v3734_v16, %v8705_v59  ;;  %v1027_v36 = vcvt.s32.f32 %v8740_v19 }
 0x348   :  { %4181 = vst.msk [vmem:[%s9271_s4 + $0x3a8] sm:$0xff] %vm4064_vm3, %v4052_v9  ;;  %v2658_v6 = vmul.u32 16, %v2594_v40  ;;  %v2978_v57 = vcvt.s32.f32 %v2594_v40  ;;  %v3797_v11 = vadd.f32 %v5276_v35, %v3667_v51  ;;  %v1763_v2 = vmul.u32 256, %v1699_v24 }
 0x349   :  { %v2050_v46 = vfloor.f32 %v1986_v55  ;;  %4285 = vst.msk [vmem:[%s9270_s5 + $0xe0] sm:$0xff] %vm4256_vm10, %v4220_v47  ;;  %v996_v58 = vcvt.s32.f32 %v8745_v17  ;;  %v3668_v14 = vmul.f32 %v5279_v38, %v3272_v15  ;;  %v1091_v32 = vmul.f32 0.00390625, %v1027_v36 }
 0x34a   :  { %v2722_v22 = vsub.s32 %v8701_v39, %v2658_v6  ;;  %v3042_v52 = vadd.f32 0.5, %v2978_v57  ;;  %v8795_v16 = vsub.s32 %v8630_v29, %v1763_v2  ;;  %v8800_v53 = vsel %vm5367_vm13, %v8734_v10, %v4947_v50 }
 0x34b   :  { %v4712_v59 = vcvt.f32.s32 %v2050_v46  ;;  %v1060_v37 = vmul.f32 0.00390625, %v996_v58  ;;  %v1155_v13 = vfloor.f32 %v1091_v32  ;;  %v8803_v39 = vadd.s32 488, %v5113_v25 }
 0x34c   :  { %v2786_v44 = vcvt.s32.f32 %v2722_v22  ;;  %v3106_v12 = vmul.f32 8.0, %v3042_v52  ;;  %v8805_v31 = vmul.f32 %v3797_v11, %v3271_v62  ;;  %v1891_v29 = vcvt.s32.f32 %v8795_v16 }
 0x34d   :  { %v4949_v42 = vpop.eup %4948  ;;  %v2178_v34 = vmul.u32 16, %v4712_v59  ;;  %v1124_v5 = vfloor.f32 %v1060_v37  ;;  %v3798_v3 = vadd.f32 %v5299_v49, %v3668_v14  ;;  %v3605_v10 = vmul.f32 %v5274_v33, %v8800_v53  ;;  %v696_v14 = vpop.f32.mrf.mxu3 }
 0x34e   :  { %v2850_v51 = vadd.f32 0.5, %v2786_v44  ;;  %v8812_v54 = vadd.f32 %v487_v7, %v5236_v8  ;;  %v3341_v0 = vsel %vm5268_vm2, %v3106_v12, %v5265_v26  ;;  %v3342_v62 = vsel %vm5313_vm8, %v3106_v12, %v5297_v48 }
 0x34f   :  { %v2242_v21 = vsub.s32 %v8763_v4, %v2178_v34  ;;  %v1955_v50 = vmul.f32 0.0625, %v1891_v29  ;;  %v8824_v9 = vsel %vm5386_vm14, %v8751_v41, %v4949_v42  ;;  %v4586_v61 = vcvt.f32.s32 %v1155_v13 }
 0x350   :  { %v2914_v23 = vmul.f32 8.0, %v2850_v51  ;;  %v1028_v40 = vcvt.s32.f32 %v8803_v39  ;;  %v8827_v47 = vcvt.f32.s32 %v1124_v5  ;;  %v8835_v2 = vmul.f32 %v3798_v3, %v3272_v15 }
 0x351   :  { %vm2306_vm0 = vcmp.ge.s32.totalorder %v2242_v21, 16  ;;  %vm2498_vm5 = vcmp.lt.s32.totalorder %v2242_v21, 0  ;;  %v2019_v30 = vfloor.f32 %v1955_v50  ;;  %v8838_v58 = vadd.f32 %v5276_v35, %v3605_v10  ;;  %v603_v10 = vpop.f32.mrf.mxu1 }
 0x352   :  { %v3473_v55 = vsel %vm5292_vm4, %v2914_v23, %v3341_v0  ;;  %v3474_v24 = vsel %vm5332_vm9, %v2914_v23, %v3342_v62  ;;  %v2370_v6 = vsel %vm2306_vm0, 1, %v4978_v45  ;;  %v2562_v57 = vsel %vm2498_vm5, 1, %v4978_v45 }
 0x353   :  { %v3989_v41 = vadd.f32 %v3861_v20, %v3473_v55  ;;  %v3990_v36 = vadd.f32 %v3862_v1, %v3474_v24  ;;  %v2434_v46 = vadd.s32 %v4712_v59, %v2370_v6  ;;  %v4650_v11 = vcvt.f32.s32 %v2019_v30  ;;  %v394_v20 = vpop.f32.mrf.mxu0 }
 0x354   :  { %v1283_v22 = vmul.u32 256, %v4586_v61  ;;  %v4252_v52 = vmul.f32 2.0, %v8812_v54  ;;  %4950 = vtanh.f32 %v8812_v54  ;;  %v1252_v1 = vmul.u32 256, %v8827_v47 }
 0x355   :  { %4118 = vst [vmem:[%s9271_s4 + $0x1b0] sm:$0xff] %v3989_v41  ;;  %v2626_v32 = vsub.s32 %v2434_v46, %v2562_v57  ;;  %v2147_v7 = vmul.u32 16, %v4650_v11  ;;  %v3606_v15 = vmul.f32 %v5279_v38, %v8824_v9  ;;  %v8853_v37 = vmul.f32 0.00390625, %v1028_v40 }
 0x356   :  { %4119 = vst.msk [vmem:[%s9271_s4 + $0x1b8] sm:$0xff] %vm4064_vm3, %v3990_v36  ;;  %v1347_v59 = vsub.s32 %v8740_v19, %v1283_v22  ;;  %v8856_v44 = vadd.s32 240, %v5113_v25  ;;  %v8864_v34 = vadd.f32 %v696_v14, %v5251_v18  ;;  %v8867_v29 = vadd.f32 %v394_v20, %v5236_v8 }
 0x357   :  { %v2690_v12 = vmul.u32 16, %v2626_v32  ;;  %v3010_v13 = vcvt.s32.f32 %v2626_v32  ;;  %v2211_v42 = vsub.s32 %v8795_v16, %v2147_v7  ;;  %4317 = vst.msk [vmem:[%s9270_s5 + $0x1e0] sm:$0xff] %vm4256_vm10, %v4252_v52  ;;  %v1316_v5 = vsub.s32 %v8745_v17, %v1252_v1 }
 0x358   :  { %vm1411_vm6 = vcmp.ge.s32.totalorder %v1347_v59, 256  ;;  %vm1603_vm7 = vcmp.lt.s32.totalorder %v1347_v59, 0  ;;  %v3736_v6 = vadd.f32 %v5299_v49, %v3606_v15  ;;  %v997_v57 = vcvt.s32.f32 %v8856_v44 }
 0x359   :  { %v2754_v51 = vsub.s32 %v8763_v4, %v2690_v12  ;;  %v3074_v3 = vadd.f32 0.5, %v3010_v13  ;;  %vm2275_vm11 = vcmp.ge.s32.totalorder %v2211_v42, 16  ;;  %vm2467_vm12 = vcmp.lt.s32.totalorder %v2211_v42, 0 }
 0x35a   :  { %v2339_v0 = vsel %vm2275_vm11, 1, %v4978_v45  ;;  %v2531_v62 = vsel %vm2467_vm12, 1, %v4978_v45  ;;  %v1475_v21 = vsel %vm1411_vm6, 1, %v4978_v45  ;;  %v1667_v50 = vsel %vm1603_vm7, 1, %v4978_v45  ;;  %v4951_v23 = vpop.eup %4950 }
 0x35b   :  { %v2818_v40 = vcvt.s32.f32 %v2754_v51  ;;  %v3138_v30 = vmul.f32 8.0, %v3074_v3  ;;  %v2403_v55 = vadd.s32 %v4650_v11, %v2339_v0  ;;  %v1539_v24 = vadd.s32 %v4586_v61, %v1475_v21 }
 0x35c   :  { %vm1380_vm15 = vcmp.ge.s32.totalorder %v1316_v5, 256  ;;  %v604_v4 = vadd.f32 %v603_v10, %v5251_v18  ;;  %4952 = vtanh.f32 %v8864_v34  ;;  %vm1572_vm1 = vcmp.lt.s32.totalorder %v1316_v5, 0 }
 0x35d   :  { %v2882_v41 = vadd.f32 0.5, %v2818_v40  ;;  %v2595_v36 = vsub.s32 %v2403_v55, %v2531_v62  ;;  %v3405_v46 = vsel %vm5268_vm2, %v3138_v30, %v5265_v26  ;;  %v3406_v61 = vsel %vm5313_vm8, %v3138_v30, %v5297_v48 }
 0x35e   :  { %v1731_v11 = vsub.s32 %v1539_v24, %v1667_v50  ;;  %v1444_v22 = vsel %vm1380_vm15, 1, %v4978_v45  ;;  %4954 = vtanh.f32 %v8867_v29  ;;  %v1636_v1 = vsel %vm1572_vm1, 1, %v4978_v45 }
 0x35f   :  { %v2946_v52 = vmul.f32 8.0, %v2882_v41  ;;  %v2659_v14 = vmul.u32 16, %v2595_v36  ;;  %v2979_v32 = vcvt.s32.f32 %v2595_v36  ;;  %v1508_v20 = vadd.s32 %v8827_v47, %v1444_v22 }
 0x360   :  { %v1795_v7 = vmul.u32 256, %v1731_v11  ;;  %4956 = vtanh.f32 %v604_v4  ;;  %v1156_v62 = vfloor.f32 %v8853_v37  ;;  %v3863_v50 = vmul.f32 %v8838_v58, %v8800_v53 }
 0x361   :  { %v3537_v15 = vsel %vm5292_vm4, %v2946_v52, %v3405_v46  ;;  %v3538_v59 = vsel %vm5332_vm9, %v2946_v52, %v3406_v61  ;;  %v2723_v12 = vsub.s32 %v8795_v16, %v2659_v14  ;;  %v3043_v13 = vadd.f32 0.5, %v2979_v32 }
 0x362   :  { %v4053_v42 = vadd.f32 %v8805_v31, %v3537_v15  ;;  %v4054_v5 = vadd.f32 %v8835_v2, %v3538_v59  ;;  %v8897_v51 = vsub.s32 %v8740_v19, %v1795_v7  ;;  %v4953_v47 = vpop.eup %4952  ;;  %v1700_v0 = vsub.s32 %v1508_v20, %v1636_v1  ;;  %v490_v2 = vpop.f32.mrf.mxu2 }
 0x363   :  { %v2787_v3 = vcvt.s32.f32 %v2723_v12  ;;  %v3107_v10 = vmul.f32 8.0, %v3043_v13  ;;  %v8907_v31 = vsel %vm5367_vm13, %v8812_v54, %v4951_v23  ;;  %v4221_v19 = vmul.f32 2.0, %v8867_v29  ;;  %v699_v13 = vpop.f32.mrf.mxu3 }
 0x364   :  { %4182 = vst [vmem:[%s9271_s4 + $0x3b0] sm:$0xff] %v4053_v42  ;;  %v1923_v16 = vcvt.s32.f32 %v8897_v51  ;;  %v4955_v21 = vpop.eup %4954  ;;  %v3864_v40 = vmul.f32 %v3736_v6, %v8824_v9  ;;  %v1061_v30 = vmul.f32 0.00390625, %v997_v57  ;;  %v1764_v41 = vmul.u32 256, %v1700_v0 }
 0x365   :  { %4183 = vst.msk [vmem:[%s9271_s4 + $0x3b8] sm:$0xff] %vm4064_vm3, %v4054_v5  ;;  %v2851_v37 = vadd.f32 0.5, %v2787_v3  ;;  %v3343_v54 = vsel %vm5268_vm2, %v3107_v10, %v5265_v26  ;;  %v3344_v23 = vsel %vm5313_vm8, %v3107_v10, %v5297_v48  ;;  %v3669_v9 = vmul.f32 %v5274_v33, %v8907_v31 }
 0x366   :  { %v4957_v55 = vpop.eup %4956  ;;  %v1987_v24 = vmul.f32 0.0625, %v1923_v16  ;;  %4286 = vst.msk [vmem:[%s9270_s5 + $0xe8] sm:$0xff] %vm4256_vm10, %v4221_v19  ;;  %v8930_v58 = vadd.f32 %v490_v2, %v5236_v8  ;;  %v4588_v6 = vcvt.f32.s32 %v1156_v62  ;;  %v3274_v36 = vsel %vm5386_vm14, %v8864_v34, %v4953_v47 }
 0x367   :  { %v2915_v53 = vmul.f32 8.0, %v2851_v37  ;;  %v8936_v46 = vsub.s32 %v8745_v17, %v1764_v41  ;;  %v3211_v61 = vsel %vm5367_vm13, %v8867_v29, %v4955_v21  ;;  %v3212_v52 = vsel %vm5386_vm14, %v604_v4, %v4957_v55 }
 0x368   :  { %v2051_v57 = vfloor.f32 %v1987_v24  ;;  %v1284_v14 = vmul.u32 256, %v4588_v6  ;;  %v3670_v20 = vmul.f32 %v5279_v38, %v3274_v36  ;;  %v4253_v29 = vmul.f32 2.0, %v8930_v58 }
 0x369   :  { %v3475_v11 = vsel %vm5292_vm4, %v2915_v53, %v3343_v54  ;;  %v3476_v22 = vsel %vm5332_vm9, %v2915_v53, %v3344_v23  ;;  %v1892_v17 = vcvt.s32.f32 %v8936_v46  ;;  %v3799_v59 = vadd.f32 %v5276_v35, %v3669_v9 }
 0x36a   :  { %v3991_v32 = vadd.f32 %v3863_v50, %v3475_v11  ;;  %v3992_v7 = vadd.f32 %v3864_v40, %v3476_v22  ;;  %v4714_v34 = vcvt.f32.s32 %v2051_v57  ;;  %v1348_v1 = vsub.s32 %v8803_v39, %v1284_v14  ;;  %4318 = vst.msk [vmem:[%s9270_s5 + $0x1e8] sm:$0xff] %vm4256_vm10, %v4253_v29 }
 0x36b   :  { %v1956_v4 = vmul.f32 0.0625, %v1892_v17  ;;  %v3607_v12 = vmul.f32 %v5274_v33, %v3211_v61  ;;  %v3608_v42 = vmul.f32 %v5279_v38, %v3212_v52  ;;  %v1125_v5 = vfloor.f32 %v1061_v30  ;;  %v397_v17 = vpop.f32.mrf.mxu0 }
 0x36c   :  { %4120 = vst [vmem:[%s9271_s4 + $0x1c0] sm:$0xff] %v3991_v32  ;;  %v2179_v15 = vmul.u32 16, %v4714_v34  ;;  %vm1412_vm0 = vcmp.ge.s32.totalorder %v1348_v1, 256  ;;  %vm1604_vm5 = vcmp.lt.s32.totalorder %v1348_v1, 0  ;;  %v3800_v62 = vadd.f32 %v5299_v49, %v3670_v20 }
 0x36d   :  { %4121 = vst.msk [vmem:[%s9271_s4 + $0x1c8] sm:$0xff] %vm4064_vm3, %v3992_v7  ;;  %v2020_v3 = vfloor.f32 %v1956_v4  ;;  %v1476_v10 = vsel %vm1412_vm0, 1, %v4978_v45  ;;  %v1668_v0 = vsel %vm1604_vm5, 1, %v4978_v45  ;;  %v8970_v19 = vadd.f32 %v699_v13, %v5251_v18 }
 0x36e   :  { %v2243_v47 = vsub.s32 %v8897_v51, %v2179_v15  ;;  %v1540_v16 = vadd.s32 %v4588_v6, %v1476_v10  ;;  %v4526_v2 = vcvt.f32.s32 %v1125_v5  ;;  %v3737_v37 = vadd.f32 %v5276_v35, %v3607_v12 }
 0x36f   :  { %v4652_v21 = vcvt.f32.s32 %v2020_v3  ;;  %v3738_v30 = vadd.f32 %v5299_v49, %v3608_v42  ;;  %4958 = vtanh.f32 %v8930_v58  ;;  %v3927_v41 = vmul.f32 %v3799_v59, %v8907_v31 }
 0x370   :  { %vm2307_vm6 = vcmp.ge.s32.totalorder %v2243_v47, 16  ;;  %vm2499_vm7 = vcmp.lt.s32.totalorder %v2243_v47, 0  ;;  %v1732_v55 = vsub.s32 %v1540_v16, %v1668_v0  ;;  %v1253_v24 = vmul.u32 256, %v4526_v2 }
 0x371   :  { %v2371_v50 = vsel %vm2307_vm6, 1, %v4978_v45  ;;  %v2563_v40 = vsel %vm2499_vm7, 1, %v4978_v45  ;;  %v2148_v23 = vmul.u32 16, %v4652_v21  ;;  %v8979_v9 = vadd.s32 496, %v5113_v25 }
 0x372   :  { %v2435_v54 = vadd.s32 %v4714_v34, %v2371_v50  ;;  %v1796_v53 = vmul.u32 256, %v1732_v55  ;;  %v3928_v57 = vmul.f32 %v3800_v62, %v3274_v36  ;;  %v1317_v22 = vsub.s32 %v8856_v44, %v1253_v24  ;;  %v606_v50 = vpop.f32.mrf.mxu1 }
 0x373   :  { %v2212_v11 = vsub.s32 %v8936_v46, %v2148_v23  ;;  %v8983_v14 = vmul.f32 %v3737_v37, %v3211_v61  ;;  %v8985_v32 = vmul.f32 %v3738_v30, %v3212_v52  ;;  %4960 = vtanh.f32 %v8970_v19 }
 0x374   :  { %v2627_v6 = vsub.s32 %v2435_v54, %v2563_v40  ;;  %v8988_v7 = vsub.s32 %v8803_v39, %v1796_v53  ;;  %v1029_v61 = vcvt.s32.f32 %v8979_v9  ;;  %vm1381_vm15 = vcmp.ge.s32.totalorder %v1317_v22, 256 }
 0x375   :  { %vm2276_vm11 = vcmp.ge.s32.totalorder %v2212_v11, 16  ;;  %vm2468_vm12 = vcmp.lt.s32.totalorder %v2212_v11, 0  ;;  %v4959_v52 = vpop.eup %4958  ;;  %v8997_v4 = vadd.f32 %v397_v17, %v5236_v8  ;;  %v1445_v12 = vsel %vm1381_vm15, 1, %v4978_v45 }
 0x376   :  { %v2691_v31 = vmul.u32 16, %v2627_v6  ;;  %v3011_v34 = vcvt.s32.f32 %v2627_v6  ;;  %v2340_v36 = vsel %vm2276_vm11, 1, %v4978_v45  ;;  %v2532_v20 = vsel %vm2468_vm12, 1, %v4978_v45 }
 0x377   :  { %v1924_v1 = vcvt.s32.f32 %v8988_v7  ;;  %v2404_v15 = vadd.s32 %v4652_v21, %v2340_v36  ;;  %vm1573_vm1 = vcmp.lt.s32.totalorder %v1317_v22, 0  ;;  %v1509_v47 = vadd.s32 %v4526_v2, %v1445_v12 }
 0x378   :  { %v2755_v29 = vsub.s32 %v8897_v51, %v2691_v31  ;;  %v3075_v39 = vadd.f32 0.5, %v3011_v34  ;;  %v9003_v51 = vsel %vm5367_vm13, %v8930_v58, %v4959_v52  ;;  %v1637_v0 = vsel %vm1573_vm1, 1, %v4978_v45  ;;  %v493_v31 = vpop.f32.mrf.mxu2 }
 0x379   :  { %v1988_v59 = vmul.f32 0.0625, %v1924_v1  ;;  %v2596_v5 = vsub.s32 %v2404_v15, %v2532_v20  ;;  %v4961_v3 = vpop.eup %4960  ;;  %v4222_v62 = vmul.f32 2.0, %v8997_v4  ;;  %v1093_v40 = vmul.f32 0.00390625, %v1029_v61 }
 0x37a   :  { %v2819_v13 = vcvt.s32.f32 %v2755_v29  ;;  %v3139_v42 = vmul.f32 8.0, %v3075_v39  ;;  %v1701_v58 = vsub.s32 %v1509_v47, %v1637_v0  ;;  %v3671_v24 = vmul.f32 %v5274_v33, %v9003_v51 }
 0x37b   :  { %v2052_v10 = vfloor.f32 %v1988_v59  ;;  %v2660_v37 = vmul.u32 16, %v2596_v5  ;;  %v2980_v30 = vcvt.s32.f32 %v2596_v5  ;;  %4287 = vst.msk [vmem:[%s9270_s5 + $0xf0] sm:$0xff] %vm4256_vm10, %v4222_v62  ;;  %4962 = vtanh.f32 %v8997_v4 }
 0x37c   :  { %v2883_v16 = vadd.f32 0.5, %v2819_v13  ;;  %v3407_v21 = vsel %vm5268_vm2, %v3139_v42, %v5265_v26  ;;  %v3408_v2 = vsel %vm5313_vm8, %v3139_v42, %v5297_v48  ;;  %v1765_v11 = vmul.u32 256, %v1701_v58 }
 0x37d   :  { %v4716_v55 = vcvt.f32.s32 %v2052_v10  ;;  %v2724_v23 = vsub.s32 %v8936_v46, %v2660_v37  ;;  %v3044_v53 = vadd.f32 0.5, %v2980_v30  ;;  %v9022_v22 = vadd.f32 %v606_v50, %v5251_v18 }
 0x37e   :  { %v2947_v54 = vmul.f32 8.0, %v2883_v16  ;;  %v1157_v46 = vfloor.f32 %v1093_v40  ;;  %v3276_v39 = vsel %vm5386_vm14, %v8970_v19, %v4961_v3  ;;  %v9033_v15 = vsub.s32 %v8856_v44, %v1765_v11 }
 0x37f   :  { %v2180_v6 = vmul.u32 16, %v4716_v55  ;;  %v2788_v36 = vcvt.s32.f32 %v2724_v23  ;;  %v3108_v61 = vmul.f32 8.0, %v3044_v53  ;;  %v9036_v59 = vadd.f32 %v493_v31, %v5236_v8 }
 0x380   :  { %v3539_v34 = vsel %vm5292_vm4, %v2947_v54, %v3407_v21  ;;  %v3540_v17 = vsel %vm5332_vm9, %v2947_v54, %v3408_v2  ;;  %v1893_v42 = vcvt.s32.f32 %v9033_v15  ;;  %v3672_v47 = vmul.f32 %v5279_v38, %v3276_v39 }
 0x381   :  { %v4055_v20 = vadd.f32 %v3927_v41, %v3539_v34  ;;  %v4056_v1 = vadd.f32 %v3928_v57, %v3540_v17  ;;  %v2244_v52 = vsub.s32 %v8988_v7, %v2180_v6  ;;  %v2852_v29 = vadd.f32 0.5, %v2788_v36  ;;  %v4963_v19 = vpop.eup %4962 }
 0x382   :  { %v3345_v41 = vsel %vm5268_vm2, %v3108_v61, %v5265_v26  ;;  %v3346_v57 = vsel %vm5313_vm8, %v3108_v61, %v5297_v48  ;;  %4964 = vtanh.f32 %v9022_v22  ;;  %v4590_v3 = vcvt.f32.s32 %v1157_v46 }
 0x383   :  { %4184 = vst [vmem:[%s9271_s4 + $0x3c0] sm:$0xff] %v4055_v20  ;;  %vm2308_vm0 = vcmp.ge.s32.totalorder %v2244_v52, 16  ;;  %vm2500_vm5 = vcmp.lt.s32.totalorder %v2244_v52, 0  ;;  %v2916_v44 = vmul.f32 8.0, %v2852_v29  ;;  %v1957_v62 = vmul.f32 0.0625, %v1893_v42 }
 0x384   :  { %4185 = vst.msk [vmem:[%s9271_s4 + $0x3c8] sm:$0xff] %vm4064_vm3, %v4056_v1  ;;  %v2372_v12 = vsel %vm2308_vm0, 1, %v4978_v45  ;;  %v2564_v13 = vsel %vm2500_vm5, 1, %v4978_v45  ;;  %v4254_v16 = vmul.f32 2.0, %v9036_v59  ;;  %v1285_v40 = vmul.u32 256, %v4590_v3 }
 0x385   :  { %v2436_v5 = vadd.s32 %v4716_v55, %v2372_v12  ;;  %v3477_v10 = vsel %vm5292_vm4, %v2916_v44, %v3345_v41  ;;  %v3478_v0 = vsel %vm5332_vm9, %v2916_v44, %v3346_v57  ;;  %v3801_v2 = vadd.f32 %v5276_v35, %v3671_v24  ;;  %v702_v44 = vpop.f32.mrf.mxu3 }
 0x386   :  { %v3993_v21 = vadd.f32 %v8983_v14, %v3477_v10  ;;  %v3994_v37 = vadd.f32 %v8985_v32, %v3478_v0  ;;  %v2021_v30 = vfloor.f32 %v1957_v62  ;;  %4319 = vst.msk [vmem:[%s9270_s5 + $0x1f0] sm:$0xff] %vm4256_vm10, %v4254_v16  ;;  %v9069_v55 = vadd.s32 248, %v5113_v25 }
 0x387   :  { %v2628_v50 = vsub.s32 %v2436_v5, %v2564_v13  ;;  %v3802_v32 = vadd.f32 %v5299_v49, %v3672_v47  ;;  %v1349_v54 = vsub.s32 %v8979_v9, %v1285_v40  ;;  %v9083_v24 = vsel %vm5367_vm13, %v8997_v4, %v4963_v19 }
 0x388   :  { %4122 = vst [vmem:[%s9271_s4 + $0x1d0] sm:$0xff] %v3993_v21  ;;  %v4654_v23 = vcvt.f32.s32 %v2021_v30  ;;  %v998_v53 = vcvt.s32.f32 %v9069_v55  ;;  %v4965_v6 = vpop.eup %4964  ;;  %v3929_v34 = vmul.f32 %v3801_v2, %v9003_v51  ;;  %v3609_v29 = vmul.f32 %v5274_v33, %v9083_v24 }
 0x389   :  { %v2692_v14 = vmul.u32 16, %v2628_v50  ;;  %v3012_v58 = vcvt.s32.f32 %v2628_v50  ;;  %4123 = vst.msk [vmem:[%s9271_s4 + $0x1d8] sm:$0xff] %vm4064_vm3, %v3994_v37  ;;  %vm1413_vm6 = vcmp.ge.s32.totalorder %v1349_v54, 256  ;;  %vm1605_vm7 = vcmp.lt.s32.totalorder %v1349_v54, 0 }
 0x38a   :  { %v2149_v17 = vmul.u32 16, %v4654_v23  ;;  %v1477_v36 = vsel %vm1413_vm6, 1, %v4978_v45  ;;  %v1669_v46 = vsel %vm1605_vm7, 1, %v4978_v45  ;;  %v3930_v61 = vmul.f32 %v3802_v32, %v3276_v39 }
 0x38b   :  { %v2756_v11 = vsub.s32 %v8988_v7, %v2692_v14  ;;  %v3076_v31 = vadd.f32 0.5, %v3012_v58  ;;  %v1541_v4 = vadd.s32 %v4590_v3, %v1477_v36  ;;  %v3214_v7 = vsel %vm5386_vm14, %v9022_v22, %v4965_v6 }
 0x38c   :  { %v2213_v52 = vsub.s32 %v9033_v15, %v2149_v17  ;;  %v1062_v41 = vmul.f32 0.00390625, %v998_v53  ;;  %v9100_v39 = vadd.s32 504, %v5113_v25  ;;  %v3610_v10 = vmul.f32 %v5279_v38, %v3214_v7  ;;  %v400_v25 = vpop.f32.mrf.mxu0 }
 0x38d   :  { %v2820_v20 = vcvt.s32.f32 %v2756_v11  ;;  %v3140_v1 = vmul.f32 8.0, %v3076_v31  ;;  %v1733_v19 = vsub.s32 %v1541_v4, %v1669_v46  ;;  %v703_v0 = vadd.f32 %v702_v44, %v5251_v18 }
 0x38e   :  { %vm2277_vm11 = vcmp.ge.s32.totalorder %v2213_v52, 16  ;;  %vm2469_vm12 = vcmp.lt.s32.totalorder %v2213_v52, 0  ;;  %v1126_v13 = vfloor.f32 %v1062_v41  ;;  %v1030_v50 = vcvt.s32.f32 %v9100_v39 }
 0x38f   :  { %v2884_v51 = vadd.f32 0.5, %v2820_v20  ;;  %v3409_v57 = vsel %vm5268_vm2, %v3140_v1, %v5265_v26  ;;  %v3410_v12 = vsel %vm5313_vm8, %v3140_v1, %v5297_v48  ;;  %v2341_v22 = vsel %vm2277_vm11, 1, %v4978_v45 }
 0x390   :  { %v2533_v5 = vsel %vm2469_vm12, 1, %v4978_v45  ;;  %v1797_v47 = vmul.u32 256, %v1733_v19  ;;  %v2405_v3 = vadd.s32 %v4654_v23, %v2341_v22  ;;  %v4528_v62 = vcvt.f32.s32 %v1126_v13 }
 0x391   :  { %v2948_v42 = vmul.f32 8.0, %v2884_v51  ;;  %v3739_v58 = vadd.f32 %v5276_v35, %v3609_v29  ;;  %4966 = vtanh.f32 %v9036_v59  ;;  %v9121_v54 = vadd.f32 %v400_v25, %v5236_v8 }
 0x392   :  { %v9114_v37 = vsub.s32 %v8979_v9, %v1797_v47  ;;  %v2597_v30 = vsub.s32 %v2405_v3, %v2533_v5  ;;  %v1254_v14 = vmul.u32 256, %v4528_v62  ;;  %4968 = vtanh.f32 %v703_v0 }
 0x393   :  { %v3541_v16 = vsel %vm5292_vm4, %v2948_v42, %v3409_v57  ;;  %v3542_v21 = vsel %vm5332_vm9, %v2948_v42, %v3410_v12  ;;  %v3740_v6 = vadd.f32 %v5299_v49, %v3610_v10  ;;  %v4223_v31 = vmul.f32 2.0, %v9121_v54 }
 0x394   :  { %v4057_v40 = vadd.f32 %v3929_v34, %v3541_v16  ;;  %v4058_v2 = vadd.f32 %v3930_v61, %v3542_v21  ;;  %v1925_v32 = vcvt.s32.f32 %v9114_v37  ;;  %v2661_v9 = vmul.u32 16, %v2597_v30  ;;  %v496_v34 = vpop.f32.mrf.mxu2 }
 0x395   :  { %v2981_v23 = vcvt.s32.f32 %v2597_v30  ;;  %v1318_v53 = vsub.s32 %v9069_v55, %v1254_v14  ;;  %v1094_v17 = vmul.f32 0.00390625, %v1030_v50  ;;  %4288 = vst.msk [vmem:[%s9270_s5 + $0xf8] sm:$0xff] %vm4256_vm10, %v4223_v31  ;;  %v9141_v41 = vadd.f32 %v496_v34, %v5236_v8  ;;  %v609_v8 = vpop.f32.mrf.mxu1 }
 0x396   :  { %4186 = vst [vmem:[%s9271_s4 + $0x3d0] sm:$0xff] %v4057_v40  ;;  %v1989_v11 = vmul.f32 0.0625, %v1925_v32  ;;  %v2725_v36 = vsub.s32 %v9033_v15, %v2661_v9  ;;  %v3867_v12 = vmul.f32 %v3739_v58, %v9083_v24  ;;  %v3868_v13 = vmul.f32 %v3740_v6, %v3214_v7 }
 0x397   :  { %4187 = vst.msk [vmem:[%s9271_s4 + $0x3d8] sm:$0xff] %vm4064_vm3, %v4058_v2  ;;  %v3045_v46 = vadd.f32 0.5, %v2981_v23  ;;  %vm1382_vm15 = vcmp.ge.s32.totalorder %v1318_v53, 256  ;;  %vm1574_vm1 = vcmp.lt.s32.totalorder %v1318_v53, 0  ;;  %v4967_v15 = vpop.eup %4966  ;;  %v1158_v57 = vfloor.f32 %v1094_v17 }
 0x398   :  { %v2053_v20 = vfloor.f32 %v1989_v11  ;;  %v1446_v1 = vsel %vm1382_vm15, 1, %v4978_v45  ;;  %v1638_v61 = vsel %vm1574_vm1, 1, %v4978_v45  ;;  %v2789_v4 = vcvt.s32.f32 %v2725_v36  ;;  %v4969_v19 = vpop.eup %4968 }
 0x399   :  { %v3109_v52 = vmul.f32 8.0, %v3045_v46  ;;  %v1510_v29 = vadd.s32 %v4528_v62, %v1446_v1  ;;  %v4592_v3 = vcvt.f32.s32 %v1158_v57  ;;  %v4255_v62 = vmul.f32 2.0, %v9141_v41 }
 0x39a   :  { %v4718_v51 = vcvt.f32.s32 %v2053_v20  ;;  %v2853_v44 = vadd.f32 0.5, %v2789_v4  ;;  %v3277_v24 = vsel %vm5367_vm13, %v9036_v59, %v4967_v15  ;;  %v3278_v7 = vsel %vm5386_vm14, %v703_v0, %v4969_v19 }
 0x39b   :  { %v1702_v42 = vsub.s32 %v1510_v29, %v1638_v61  ;;  %v3347_v22 = vsel %vm5268_vm2, %v3109_v52, %v5265_v26  ;;  %v3348_v5 = vsel %vm5313_vm8, %v3109_v52, %v5297_v48  ;;  %v1286_v21 = vmul.u32 256, %v4592_v3  ;;  %4320 = vst.msk [vmem:[%s9270_s5 + $0x1f8] sm:$0xff] %vm4256_vm10, %v4255_v62 }
 0x39c   :  { %v2181_v47 = vmul.u32 16, %v4718_v51  ;;  %v2917_v10 = vmul.f32 8.0, %v2853_v44  ;;  %v610_v30 = vadd.f32 %v609_v8, %v5251_v18  ;;  %4970 = vtanh.f32 %v9121_v54 }
 0x39d   :  { %v1766_v25 = vmul.u32 256, %v1702_v42  ;;  %v1350_v9 = vsub.s32 %v9100_v39, %v1286_v21  ;;  %v3673_v23 = vmul.f32 %v5274_v33, %v3277_v24  ;;  %v3674_v53 = vmul.f32 %v5279_v38, %v3278_v7 }
 0x39e   :  { %v2245_v16 = vsub.s32 %v9114_v37, %v2181_v47  ;;  %v3479_v50 = vsel %vm5292_vm4, %v2917_v10, %v3347_v22  ;;  %v3480_v40 = vsel %vm5332_vm9, %v2917_v10, %v3348_v5  ;;  %4972 = vtanh.f32 %v610_v30  ;;  %v705_v10 = vpop.f32.mrf.mxu3 }
 0x39f   :  { %v9162_v2 = vsub.s32 %v9069_v55, %v1766_v25  ;;  %v3995_v59 = vadd.f32 %v3867_v12, %v3479_v50  ;;  %v3996_v14 = vadd.f32 %v3868_v13, %v3480_v40  ;;  %vm1414_vm10 = vcmp.ge.s32.totalorder %v1350_v9, 256 }
 0x3a0   :  { %vm2309_vm0 = vcmp.ge.s32.totalorder %v2245_v16, 16  ;;  %vm2501_vm5 = vcmp.lt.s32.totalorder %v2245_v16, 0  ;;  %vm1606_vm6 = vcmp.lt.s32.totalorder %v1350_v9, 0  ;;  %v1478_v34 = vsel %vm1414_vm10, 1, %v4978_v45 }
 0x3a1   :  { %v2373_v0 = vsel %vm2309_vm0, 1, %v4978_v45  ;;  %v2565_v58 = vsel %vm2501_vm5, 1, %v4978_v45  ;;  %v1894_v32 = vcvt.s32.f32 %v9162_v2  ;;  %4124 = vst [vmem:[%s9271_s4 + $0x1e0] sm:$0xff] %v3995_v59  ;;  %v1670_v17 = vsel %vm1606_vm6, 1, %v4978_v45 }
 0x3a2   :  { %v2437_v55 = vadd.s32 %v4718_v51, %v2373_v0  ;;  %4125 = vst.msk [vmem:[%s9271_s4 + $0x1e8] sm:$0xff] %vm4064_vm3, %v3996_v14  ;;  %v1542_v20 = vadd.s32 %v4592_v3, %v1478_v34  ;;  %v3803_v1 = vadd.f32 %v5276_v35, %v3673_v23  ;;  %v3804_v61 = vadd.f32 %v5299_v49, %v3674_v53  ;;  %v4971_v52 = vpop.eup %4970 }
 0x3a3   :  { %v1958_v6 = vmul.f32 0.0625, %v1894_v32  ;;  %v3215_v8 = vsel %vm5367_vm13, %v9121_v54, %v4971_v52  ;;  %4974 = vtanh.f32 %v9141_v41 }
 0x3a4   :  { %v2629_v11 = vsub.s32 %v2437_v55, %v2565_v58  ;;  %v1734_v51 = vsub.s32 %v1542_v20, %v1670_v17  ;;  %v4973_v57 = vpop.eup %4972  ;;  %v3931_v42 = vmul.f32 %v3803_v1, %v3277_v24  ;;  %v3932_v22 = vmul.f32 %v3804_v61, %v3278_v7 }
 0x3a5   :  { %v2022_v31 = vfloor.f32 %v1958_v6  ;;  %v3216_v3 = vsel %vm5386_vm14, %v610_v30, %v4973_v57  ;;  %v3611_v30 = vmul.f32 %v5274_v33, %v3215_v8 }
 0x3a6   :  { %v2693_v36 = vmul.u32 16, %v2629_v11  ;;  %v3013_v46 = vcvt.s32.f32 %v2629_v11  ;;  %v1798_v13 = vmul.u32 256, %v1734_v51  ;;  %v3612_v32 = vmul.f32 %v5279_v38, %v3216_v3 }
 0x3a7   :  { %v4656_v4 = vcvt.f32.s32 %v2022_v31  ;;  %v3741_v11 = vadd.f32 %v5276_v35, %v3611_v30 }
 0x3a8   :  { %v2757_v29 = vsub.s32 %v9114_v37, %v2693_v36  ;;  %v3077_v15 = vadd.f32 0.5, %v3013_v46  ;;  %v1862_v37 = vsub.s32 %v9100_v39, %v1798_v13  ;;  %v706_v39 = vadd.f32 %v705_v10, %v5251_v18 }
 0x3a9   :  { %v2150_v19 = vmul.u32 16, %v4656_v4  ;;  %v3742_v31 = vadd.f32 %v5299_v49, %v3612_v32  ;;  %v4975_v46 = vpop.eup %4974 }
 0x3aa   :  { %v2821_v44 = vcvt.s32.f32 %v2757_v29  ;;  %v3141_v12 = vmul.f32 8.0, %v3077_v15  ;;  %v1926_v7 = vcvt.s32.f32 %v1862_v37  ;;  %4976 = vtanh.f32 %v706_v39 }
 0x3ab   :  { %v2214_v5 = vsub.s32 %v9162_v2, %v2150_v19  ;;  %v3870_v52 = vmul.f32 %v3742_v31, %v3216_v3 }
 0x3ac   :  { %v2885_v47 = vadd.f32 0.5, %v2821_v44  ;;  %v3411_v25 = vsel %vm5268_vm2, %v3141_v12, %v5265_v26  ;;  %v3412_v62 = vsel %vm5313_vm8, %v3141_v12, %v5297_v48  ;;  %v1990_v59 = vmul.f32 0.0625, %v1926_v7 }
 0x3ad   :  { %vm2278_vm7 = vcmp.ge.s32.totalorder %v2214_v5, 16  ;;  %vm2470_vm11 = vcmp.lt.s32.totalorder %v2214_v5, 0  ;;  %v3279_v44 = vsel %vm5367_vm13, %v9141_v41, %v4975_v46 }
 0x3ae   :  { %v2949_v16 = vmul.f32 8.0, %v2885_v47  ;;  %v2342_v24 = vsel %vm2278_vm7, 1, %v4978_v45  ;;  %v2534_v54 = vsel %vm2470_vm11, 1, %v4978_v45  ;;  %v2054_v55 = vfloor.f32 %v1990_v59 }
 0x3af   :  { %v2406_v21 = vadd.s32 %v4656_v4, %v2342_v24  ;;  %v3869_v4 = vmul.f32 %v3741_v11, %v3215_v8  ;;  %v3675_v8 = vmul.f32 %v5274_v33, %v3279_v44 }
 0x3b0   :  { %v3543_v50 = vsel %vm5292_vm4, %v2949_v16, %v3411_v25  ;;  %v3544_v40 = vsel %vm5332_vm9, %v2949_v16, %v3412_v62  ;;  %v4720_v23 = vcvt.f32.s32 %v2054_v55  ;;  %v4977_v1 = vpop.eup %4976 }
 0x3b1   :  { %v4059_v14 = vadd.f32 %v3931_v42, %v3543_v50  ;;  %v4060_v0 = vadd.f32 %v3932_v22, %v3544_v40  ;;  %v2598_v58 = vsub.s32 %v2406_v21, %v2534_v54  ;;  %v3280_v12 = vsel %vm5386_vm14, %v706_v39, %v4977_v1 }
 0x3b2   :  { %v2182_v34 = vmul.u32 16, %v4720_v23  ;;  %v3805_v10 = vadd.f32 %v5276_v35, %v3675_v8 }
 0x3b3   :  { %4188 = vst [vmem:[%s9271_s4 + $0x3e0] sm:$0xff] %v4059_v14  ;;  %v2662_v18 = vmul.u32 16, %v2598_v58  ;;  %v2982_v9 = vcvt.s32.f32 %v2598_v58 }
 0x3b4   :  { %4189 = vst.msk [vmem:[%s9271_s4 + $0x3e8] sm:$0xff] %vm4064_vm3, %v4060_v0  ;;  %v2246_v20 = vsub.s32 %v1862_v37, %v2182_v34  ;;  %v3933_v24 = vmul.f32 %v3805_v10, %v3279_v44 }
 0x3b5   :  { %v2726_v53 = vsub.s32 %v9162_v2, %v2662_v18  ;;  %v3046_v6 = vadd.f32 0.5, %v2982_v9 }
 0x3b6   :  { %vm2310_vm12 = vcmp.ge.s32.totalorder %v2246_v20, 16  ;;  %vm2502_vm15 = vcmp.lt.s32.totalorder %v2246_v20, 0 }
 0x3b7   :  { %v2790_v17 = vcvt.s32.f32 %v2726_v53  ;;  %v3110_v36 = vmul.f32 8.0, %v3046_v6  ;;  %v2374_v51 = vsel %vm2310_vm12, 1, %v4978_v45  ;;  %v2566_v57 = vsel %vm2502_vm15, 1, %v4978_v45 }
 0x3b8   :  { %v2438_v19 = vadd.s32 %v4720_v23, %v2374_v51  ;;  %v3676_v45 = vmul.f32 %v5279_v38, %v3280_v12 }
 0x3b9   :  { %v2854_v61 = vadd.f32 0.5, %v2790_v17  ;;  %v3349_v29 = vsel %vm5268_vm2, %v3110_v36, %v5265_v26  ;;  %v3350_v2 = vsel %vm5313_vm8, %v3110_v36, %v5297_v48 }
 0x3ba   :  { %v2630_v47 = vsub.s32 %v2438_v19, %v2566_v57  ;;  %v3806_v25 = vadd.f32 %v5299_v49, %v3676_v45 }
 0x3bb   :  { %v2918_v15 = vmul.f32 8.0, %v2854_v61 }
 0x3bc   :  { %v2694_v60 = vmul.u32 16, %v2630_v47  ;;  %v3014_v56 = vcvt.s32.f32 %v2630_v47  ;;  %v3934_v7 = vmul.f32 %v3806_v25, %v3280_v12 }
 0x3bd   :  { %v3481_v13 = vsel %vm5292_vm4, %v2918_v15, %v3349_v29  ;;  %v3482_v42 = vsel %vm5332_vm9, %v2918_v15, %v3350_v2 }
 0x3be   :  { %v3997_v22 = vadd.f32 %v3869_v4, %v3481_v13  ;;  %v3998_v5 = vadd.f32 %v3870_v52, %v3482_v42  ;;  %v2758_v41 = vsub.s32 %v1862_v37, %v2694_v60  ;;  %v3078_v3 = vadd.f32 0.5, %v3014_v56 }
 0x3c0   :  { %4126 = vst [vmem:[%s9271_s4 + $0x1f0] sm:$0xff] %v3997_v22  ;;  %v2822_v33 = vcvt.s32.f32 %v2758_v41  ;;  %v3142_v62 = vmul.f32 8.0, %v3078_v3 }
 0x3c1   :  { %4127 = vst.msk [vmem:[%s9271_s4 + $0x1f8] sm:$0xff] %vm4064_vm3, %v3998_v5 }
 0x3c2   :  { %v2886_v38 = vadd.f32 0.5, %v2822_v33  ;;  %v3413_v16 = vsel %vm5268_vm2, %v3142_v62, %v5265_v26  ;;  %v3414_v54 = vsel %vm5313_vm8, %v3142_v62, %v5297_v48 }
 0x3c4   :  { %v2950_v21 = vmul.f32 8.0, %v2886_v38 }
 0x3c6   :  { %v3545_v37 = vsel %vm5292_vm4, %v2950_v21, %v3413_v16  ;;  %v3546_v35 = vsel %vm5332_vm9, %v2950_v21, %v3414_v54 }
 0x3c7   :  { %v4061_v49 = vadd.f32 %v3933_v24, %v3545_v37  ;;  %v4062_v39 = vadd.f32 %v3934_v7, %v3546_v35 }
 0x3c9   :  { %4190 = vst [vmem:[%s9271_s4 + $0x3f0] sm:$0xff] %v4061_v49 }
 0x3ca   :  { %4191 = vst.msk [vmem:[%s9271_s4 + $0x3f8] sm:$0xff] %vm4064_vm3, %v4062_v39 }

</bundles_post_ra>
